<compile_context>
chip_gen: v5e
topology: v5e:2x2
jax: 0.10.0
libtpu: 0.0.40
codegen_flags: <defaults>
</compile_context>

<pallas_src>
import functools
import numpy as np

import jax
import jax.numpy as jnp
from jax import lax
from jax.experimental import pallas as pl
from jax.experimental.pallas import tpu as pltpu

HIDDEN = 64          # fixed by AttentionModel.__init__ default
NUM_HEADS = 4        # fixed by MultiHeadAttentionModel default
LN_EPS = 1e-5        # torch nn.LayerNorm default
LANES = 128          # vreg lane width
VOCAB_PAD = 128      # padded one-hot vocab contraction width (lane-dense input DMA)
OUT_PAD = 128        # padded logits width (lane-dense store)
AW_PAD = 128         # padded attention-weight key width (lane-dense store)


# ------------------------------ fused kernel --------------------------------

def _transformer_kernel(de_ref, en_ref, w_ref, v_ref, logits_ref, aw_ref, *,
                        widx, vidx, batch, lde, dlen, n_enc, n_dec, n_heads):
    """Single invocation (no grid): the whole encoder/decoder stack in VMEM."""
    H = HIDDEN
    dv = H // n_heads
    inv_scale = 1.0 / float(np.sqrt(dv))      # torch: / sqrt(d_k), d_k = per-head dim

    # --- static-offset accessors into the two packed weight buffers ---------
    def W(name):
        off, r, c = widx[name]
        return w_ref[off:off + r, :c]

    def V(name):
        off, r, c = vidx[name]
        return v_ref[off:off + r, :c]

    def linear(x, wname, bname, relu=False):
        y = jnp.dot(x, W(wname), preferred_element_type=jnp.float32) + V(bname)
        return jnp.maximum(y, 0.0) if relu else y

    def layer_norm(z, gname, bname):
        mu = jnp.mean(z, axis=-1, keepdims=True)
        var = jnp.mean(jnp.square(z - mu), axis=-1, keepdims=True)
        return (z - mu) * lax.rsqrt(var + LN_EPS) * V(gname) + V(bname)

    def tile_rows(x):                          # broadcast pos-enc over the batch
        return x if batch == 1 else jnp.concatenate([x] * batch, axis=0)

    def softmax(s):
        s = s - jnp.max(s, axis=-1, keepdims=True)
        e = jnp.exp(s)
        # EUP reciprocal (approx): rows sum to 1 only to ~1e-4 relative error.
        return e * pl.reciprocal(jnp.sum(e, axis=-1, keepdims=True), approx=True)

    # causal mask: built ONCE, reused by every decoder self-attention layer
    row = lax.broadcasted_iota(jnp.int32, (dlen, dlen), 0)
    col = lax.broadcasted_iota(jnp.int32, (dlen, dlen), 1)
    causal_mask = col > row
    zero_pad_aw = jnp.zeros((dlen, AW_PAD - lde), jnp.float32)

    def mha(x_q, x_kv, prefix, lq, lk, causal=False, write_aw=False):
        # batched projections over all B*L rows (one matmul each)
        q = linear(x_q, prefix + "_wq", prefix + "_bq")
        k = linear(x_kv, prefix + "_wk", prefix + "_bk")
        v = linear(x_kv, prefix + "_wv", prefix + "_bv")
        per_batch = []
        for b in range(batch):                         # statically unrolled
            qb = q[b * lq:(b + 1) * lq]
            kb = k[b * lk:(b + 1) * lk]
            vb = v[b * lk:(b + 1) * lk]
            heads = []
            for h in range(n_heads):                   # statically unrolled
                sl = slice(h * dv, (h + 1) * dv)
                s = lax.dot_general(qb[:, sl], kb[:, sl], (((1,), (1,)), ((), ())),
                                    preferred_element_type=jnp.float32) * inv_scale
                if causal:
                    s = jnp.where(causal_mask, -1e30, s)   # NaN-safe stand-in for -inf
                p = softmax(s)
                if write_aw:
                    # lane-dense (lq, 128) store; padded key columns are exact zeros
                    aw_ref[b, h] = jnp.concatenate([p, zero_pad_aw], axis=-1)
                heads.append(jnp.dot(p, vb[:, sl], preferred_element_type=jnp.float32))
            per_batch.append(jnp.concatenate(heads, axis=-1))       # (lq, H)
        concat = per_batch[0] if batch == 1 else jnp.concatenate(per_batch, axis=0)
        # ONE output projection for all heads and all batch elements
        return (jnp.dot(concat, W(prefix + "_wo"), preferred_element_type=jnp.float32)
                + V(prefix + "_bo"))

    # ------------------------------- encoder --------------------------------
    enc = linear(de_ref[...], "in_emb_w", "in_emb_b") + tile_rows(V("in_pos"))
    for l in range(n_enc):
        pre = f"enc{l}"
        att = mha(enc, enc, pre, lde, lde)
        x = layer_norm(att + enc, pre + "_ln0_g", pre + "_ln0_b")
        ff = linear(linear(x, pre + "_ff1_w", pre + "_ff1_b", relu=True),
                    pre + "_ff2_w", pre + "_ff2_b")
        enc = layer_norm(ff + x, pre + "_ln1_g", pre + "_ln1_b")

    # ------------------------------- decoder --------------------------------
    # faithful to the reference: `decoding` (dec_in) is NOT updated across layers
    dec_in = linear(en_ref[...], "out_emb_w", "out_emb_b") + tile_rows(V("out_pos"))
    x = dec_in
    for l in range(n_dec):
        pre = f"dec{l}"
        att = mha(dec_in, dec_in, pre + "_self", dlen, dlen, causal=True)
        x = layer_norm(att + dec_in, pre + "_ln0_g", pre + "_ln0_b")
        att = mha(x, enc, pre + "_cross", dlen, lde,
                  write_aw=(l == n_dec - 1))           # only the returned weights
        x = layer_norm(att + x, pre + "_ln1_g", pre + "_ln1_b")
        ff = linear(linear(x, pre + "_ff1_w", pre + "_ff1_b", relu=True),
                    pre + "_ff2_w", pre + "_ff2_b")
        x = layer_norm(ff + x, pre + "_ln2_g", pre + "_ln2_b")

    if n_dec == 0:   # review edge case: never leave the aw output uninitialized
        aw_ref[...] = jnp.zeros(aw_ref.shape, aw_ref.dtype)

    # final projection: (B*Len, 64) @ (64, 128) -> lane-dense store
    logits_ref[...] = linear(x, "fin_w", "fin_b")


# ----------------------------- parameter init -------------------------------

def _init_linear(key, fan_in, fan_out):
    k1, k2 = jax.random.split(key)
    bound = 1.0 / np.sqrt(fan_in)
    return {"w": jax.random.uniform(k1, (fan_in, fan_out), jnp.float32, -bound, bound),
            "b": jax.random.uniform(k2, (fan_out,), jnp.float32, -bound, bound)}


def _init_mha(key, hidden):
    ks = jax.random.split(key, 4)
    return {"q": _init_linear(ks[0], hidden, hidden),
            "k": _init_linear(ks[1], hidden, hidden),
            "v": _init_linear(ks[2], hidden, hidden),
            "o": _init_linear(ks[3], hidden, hidden)}


def _init_ln(hidden):
    return {"g": jnp.ones((hidden,), jnp.float32),
            "b": jnp.zeros((hidden,), jnp.float32)}


def _init_ffn(key, hidden):
    k1, k2 = jax.random.split(key)
    return {"l1": _init_linear(k1, hidden, 2 * hidden),
            "l2": _init_linear(k2, 2 * hidden, hidden)}


def init_params(key, en_vocab, de_vocab, max_len, num_enc_layers, num_dec_layers,
                hidden=HIDDEN):
    keys = iter(jax.random.split(key, 8 + 2 * num_enc_layers + 3 * num_dec_layers))
    p = {
        "input_embedding": _init_linear(next(keys), de_vocab, hidden),
        "input_pos_enc": 0.02 * jax.random.normal(next(keys), (1, max_len, hidden),
                                                  jnp.float32),
        "output_embedding": _init_linear(next(keys), en_vocab, hidden),
        "output_pos_enc": 0.02 * jax.random.normal(next(keys), (1, max_len + 1, hidden),
                                                   jnp.float32),
        "enc": [],
        "dec": [],
        "final": _init_linear(next(keys), hidden, en_vocab),
    }
    for _ in range(num_enc_layers):
        p["enc"].append({
            "mha": _init_mha(next(keys), hidden),
            "att_norm": _init_ln(hidden),
            "ffn": _init_ffn(next(keys), hidden),
            "ffn_norm": _init_ln(hidden),
        })
    for _ in range(num_dec_layers):
        p["dec"].append({
            "self_mha": _init_mha(next(keys), hidden),
            "self_norm": _init_ln(hidden),
            "cross_mha": _init_mha(next(keys), hidden),
            "cross_norm": _init_ln(hidden),
            "ffn": _init_ffn(next(keys), hidden),
            "ffn_norm": _init_ln(hidden),
        })
    return p


# ----------------------- packing params for the kernel -----------------------

def _round_up(n, m):
    return ((n + m - 1) // m) * m


class _Packer:
    """Packs many small 2-D arrays into one (rows, 128) f32 buffer.

    Every entry starts on an 8-row (sublane-group) boundary so the kernel-side
    static slices stay aligned; narrow entries sit in the low lanes."""

    def __init__(self):
        self._parts, self._index, self._rows = [], {}, 0

    def add(self, name, arr):
        arr = jnp.asarray(arr, jnp.float32)
        if arr.ndim == 1:
            arr = arr.reshape(1, -1)
        r, c = arr.shape
        rp = _round_up(r, 8)
        self._index[name] = (self._rows, r, c)
        self._parts.append(jnp.pad(arr, ((0, rp - r), (0, LANES - c))))
        self._rows += rp

    def finalize(self):
        return jnp.concatenate(self._parts, axis=0), dict(self._index)


def pack_params(p, en_vocab, de_vocab):
    wp, vp = _Packer(), _Packer()

    def pad_rows(a, rows):
        return jnp.pad(a, ((0, rows - a.shape[0]), (0, 0)))

    wp.add("in_emb_w", pad_rows(p["input_embedding"]["w"], VOCAB_PAD))
    vp.add("in_emb_b", p["input_embedding"]["b"])
    vp.add("in_pos", p["input_pos_enc"][0])
    wp.add("out_emb_w", pad_rows(p["output_embedding"]["w"], VOCAB_PAD))
    vp.add("out_emb_b", p["output_embedding"]["b"])
    vp.add("out_pos", p["output_pos_enc"][0])

    def add_mha(prefix, m):
        for tag, key in (("wq", "q"), ("wk", "k"), ("wv", "v"), ("wo", "o")):
            wp.add(f"{prefix}_{tag}", m[key]["w"])
        for tag, key in (("bq", "q"), ("bk", "k"), ("bv", "v"), ("bo", "o")):
            vp.add(f"{prefix}_{tag}", m[key]["b"])

    def add_ln(prefix, ln):
        vp.add(prefix + "_g", ln["g"])
        vp.add(prefix + "_b", ln["b"])

    def add_ffn(prefix, f):
        wp.add(prefix + "_ff1_w", f["l1"]["w"])
        vp.add(prefix + "_ff1_b", f["l1"]["b"])
        wp.add(prefix + "_ff2_w", f["l2"]["w"])
        vp.add(prefix + "_ff2_b", f["l2"]["b"])

    for l, lp in enumerate(p["enc"]):
        pre = f"enc{l}"
        add_mha(pre, lp["mha"])
        add_ln(pre + "_ln0", lp["att_norm"])
        add_ffn(pre, lp["ffn"])
        add_ln(pre + "_ln1", lp["ffn_norm"])

    for l, lp in enumerate(p["dec"]):
        pre = f"dec{l}"
        add_mha(pre + "_self", lp["self_mha"])
        add_ln(pre + "_ln0", lp["self_norm"])
        add_mha(pre + "_cross", lp["cross_mha"])
        add_ln(pre + "_ln1", lp["cross_norm"])
        add_ffn(pre, lp["ffn"])
        add_ln(pre + "_ln2", lp["ffn_norm"])

    wp.add("fin_w", jnp.pad(p["final"]["w"], ((0, 0), (0, OUT_PAD - en_vocab))))
    vp.add("fin_b", jnp.pad(p["final"]["b"], (0, OUT_PAD - en_vocab)))

    wbuf, widx = wp.finalize()
    vbuf, vidx = vp.finalize()
    return {"wbuf": wbuf, "vbuf": vbuf, "widx": widx, "vidx": vidx,
            "en_vocab": en_vocab, "de_vocab": de_vocab,
            "n_enc": len(p["enc"]), "n_dec": len(p["dec"])}


# -------------------------------- forward -----------------------------------

def make_forward(packed):
    wbuf, vbuf = packed["wbuf"], packed["vbuf"]
    widx, vidx = packed["widx"], packed["vidx"]
    en_vocab = packed["en_vocab"]
    n_enc, n_dec = packed["n_enc"], packed["n_dec"]

    @jax.jit
    def forward(wbuf, vbuf, de, en):
        B, Lde, dvocab = de.shape
        _, Len, evocab = en.shape
        # batch folded: flatten to (B*L, vocab) and pad vocab to 128 lanes
        de_f = jnp.pad(de.reshape(B * Lde, dvocab), ((0, 0), (0, VOCAB_PAD - dvocab)))
        en_f = jnp.pad(en.reshape(B * Len, evocab), ((0, 0), (0, VOCAB_PAD - evocab)))

        kernel = functools.partial(
            _transformer_kernel, widx=widx, vidx=vidx,
            batch=B, lde=Lde, dlen=Len,
            n_enc=n_enc, n_dec=n_dec, n_heads=NUM_HEADS)

        # No grid: a single kernel invocation; every operand (4 inputs, 2 outputs,
        # ~1.5 MiB total) is single-buffered and fully resident in VMEM.
        logits_p, aw = pl.pallas_call(
            kernel,
            out_shape=(jax.ShapeDtypeStruct((B * Len, OUT_PAD), jnp.float32),
                       jax.ShapeDtypeStruct((B, NUM_HEADS, Len, AW_PAD), jnp.float32)),
            compiler_params=pltpu.CompilerParams(vmem_limit_bytes=32 * 1024 * 1024),
        )(de_f, en_f, wbuf, vbuf)

        logits = logits_p[:, :en_vocab].reshape(B, Len, en_vocab)
        attn = [aw[:, h, :, :Lde] for h in range(NUM_HEADS)]   # torch: list per head
        return logits, attn

    return lambda de, en: forward(wbuf, vbuf, de, en)


# --------------------------- pure-JAX reference ------------------------------

def _reference_forward(params, de, en):
    def lin(x, l):
        return x @ l["w"] + l["b"]

    def ln(x, l):
        mu = x.mean(-1, keepdims=True)
        var = ((x - mu) ** 2).mean(-1, keepdims=True)
        return (x - mu) / jnp.sqrt(var + LN_EPS) * l["g"] + l["b"]

    def sdpa(q, k, v, mask):
        dk = q.shape[-1]
        s = jnp.einsum("bqd,bkd->bqk", q, k) / np.sqrt(dk)
        if mask:
            m = jnp.triu(jnp.ones_like(s), k=1).astype(bool)
            s = jnp.where(m, -jnp.inf, s)
        w = jax.nn.softmax(s, axis=-1)
        return jnp.einsum("bqk,bkd->bqd", w, v), w

    def mha(q, k, v, m, mask=False):
        H = q.shape[-1]
        dv = H // NUM_HEADS
        qp, kp, vp = lin(q, m["q"]), lin(k, m["k"]), lin(v, m["v"])
        heads, ws = [], []
        for h in range(NUM_HEADS):
            o, w = sdpa(qp[..., h * dv:(h + 1) * dv], kp[..., h * dv:(h + 1) * dv],
                        vp[..., h * dv:(h + 1) * dv], mask)
            heads.append(o)
            ws.append(w)
        return lin(jnp.concatenate(heads, -1), m["o"]), ws

    enc = lin(de, params["input_embedding"]) + params["input_pos_enc"]
    for lp in params["enc"]:
        a, _ = mha(enc, enc, enc, lp["mha"])
        x = ln(a + enc, lp["att_norm"])
        f = lin(jax.nn.relu(lin(x, lp["ffn"]["l1"])), lp["ffn"]["l2"])
        enc = ln(f + x, lp["ffn_norm"])

    dec = lin(en, params["output_embedding"]) + params["output_pos_enc"]
    x, aw = dec, None
    for lp in params["dec"]:
        a, _ = mha(dec, dec, dec, lp["self_mha"], mask=True)
        x = ln(a + dec, lp["self_norm"])
        a, aw = mha(x, enc, enc, lp["cross_mha"])
        x = ln(a + x, lp["cross_norm"])
        f = lin(jax.nn.relu(lin(x, lp["ffn"]["l1"])), lp["ffn"]["l2"])
        x = ln(f + x, lp["ffn_norm"])
    return lin(x, params["final"]), aw


# ---------------------------------- main -------------------------------------

if __name__ == "__main__":
    EN_VOCAB = 5
    DE_VOCAB = 7
    MAX_LEN = 8            # de seq = MAX_LEN, en seq = MAX_LEN + 1
    NUM_ENC_LAYERS = 1     # default from PosEncLayersAttentionModel
    NUM_DEC_LAYERS = 2     # constructor argument (kept small)
    BATCH = 2

    root = jax.random.PRNGKey(0)
    kp, kde, ken = jax.random.split(root, 3)

    params = init_params(kp, EN_VOCAB, DE_VOCAB, MAX_LEN, NUM_ENC_LAYERS, NUM_DEC_LAYERS)
    packed = pack_params(params, EN_VOCAB, DE_VOCAB)

    de = jax.random.normal(kde, (BATCH, MAX_LEN, DE_VOCAB), jnp.float32)
    en = jax.random.normal(ken, (BATCH, MAX_LEN + 1, EN_VOCAB), jnp.float32)

    forward = make_forward(packed)
    logits, attn_weights = forward(de, en)
    jax.block_until_ready(logits)
    jax.block_until_ready(attn_weights)

    assert logits.shape == (BATCH, MAX_LEN + 1, EN_VOCAB)
    assert len(attn_weights) == NUM_HEADS
    assert attn_weights[0].shape == (BATCH, MAX_LEN + 1, MAX_LEN)

    # correctness check against a pure-JAX transcription of the PyTorch reference
    # (tolerance accounts for the EUP approx-reciprocal softmax normalization)
    ref_logits, ref_aw = _reference_forward(params, de, en)
    TOL = 3e-3
    np.testing.assert_allclose(np.asarray(logits), np.asarray(ref_logits),
                               rtol=TOL, atol=TOL)
    for h in range(NUM_HEADS):
        np.testing.assert_allclose(np.asarray(attn_weights[h]), np.asarray(ref_aw[h]),
                                   rtol=TOL, atol=TOL)

    print("KERNEL_OK")
</pallas_src>

<mosaic_0001>
module attributes {stable_mosaic.version = 11 : i64} {
  func.func @_transformer_kernel(%arg0: memref<16x128xf32, #tpu.memory_space<vmem>>, %arg1: memref<18x128xf32, #tpu.memory_space<vmem>>, %arg2: memref<2176x128xf32, #tpu.memory_space<vmem>>, %arg3: memref<384x128xf32, #tpu.memory_space<vmem>>, %arg4: memref<18x128xf32, #tpu.memory_space<vmem>>, %arg5: memref<2x4x9x128xf32, #tpu.memory_space<vmem>>) attributes {dimension_semantics = [], scalar_prefetch = 0 : i64, scratch_operands = 0 : i64, tpu.core_type = #tpu.core_type<tc>} {
    %0 = tpu.iota {dimensions = array<i32: 0>} : vector<9x9xi32>
    %1 = tpu.iota {dimensions = array<i32: 1>} : vector<9x9xi32>
    %2 = arith.cmpi sgt, %1, %0 : vector<9x9xi32>
    %cst = arith.constant 0.000000e+00 : f32
    %3 = vector.broadcast %cst : f32 to vector<9x120xf32>
    %c0 = arith.constant 0 : index
    %c0_0 = arith.constant 0 : index
    %4 = vector.load %arg0[%c0, %c0_0] : memref<16x128xf32, #tpu.memory_space<vmem>>, vector<16x128xf32>
    %c0_1 = arith.constant 0 : index
    %c0_2 = arith.constant 0 : index
    %5 = vector.load %arg2[%c0_1, %c0_2] : memref<2176x128xf32, #tpu.memory_space<vmem>>, vector<128x64xf32>
    %cst_3 = arith.constant dense<0.000000e+00> : vector<16x64xf32>
    %6 = tpu.matmul %4, %5, %cst_3 {dimension_numbers = #tpu.dot_dimension_numbers<[1], [0], [0], [1], [0, 0, 1, 1], [], []>} : vector<16x128xf32>, vector<128x64xf32>, vector<16x64xf32> -> vector<16x64xf32>
    %c0_4 = arith.constant 0 : index
    %c0_5 = arith.constant 0 : index
    %7 = vector.load %arg3[%c0_4, %c0_5] : memref<384x128xf32, #tpu.memory_space<vmem>>, vector<1x64xf32>
    %8 = vector.broadcast %7 : vector<1x64xf32> to vector<16x64xf32>
    %9 = arith.addf %6, %8 : vector<16x64xf32>
    %c8 = arith.constant 8 : index
    %c0_6 = arith.constant 0 : index
    %10 = vector.load %arg3[%c8, %c0_6] : memref<384x128xf32, #tpu.memory_space<vmem>>, vector<8x64xf32>
    %11 = tpu.concatenate %10, %10 in 0 : vector<8x64xf32>, vector<8x64xf32> -> vector<16x64xf32>
    %12 = arith.addf %9, %11 : vector<16x64xf32>
    %c256 = arith.constant 256 : index
    %c0_7 = arith.constant 0 : index
    %13 = vector.load %arg2[%c256, %c0_7] : memref<2176x128xf32, #tpu.memory_space<vmem>>, vector<64x64xf32>
    %cst_8 = arith.constant dense<0.000000e+00> : vector<16x64xf32>
    %14 = tpu.matmul %12, %13, %cst_8 {dimension_numbers = #tpu.dot_dimension_numbers<[1], [0], [0], [1], [0, 0, 1, 1], [], []>} : vector<16x64xf32>, vector<64x64xf32>, vector<16x64xf32> -> vector<16x64xf32>
    %c40 = arith.constant 40 : index
    %c0_9 = arith.constant 0 : index
    %15 = vector.load %arg3[%c40, %c0_9] : memref<384x128xf32, #tpu.memory_space<vmem>>, vector<1x64xf32>
    %16 = vector.broadcast %15 : vector<1x64xf32> to vector<16x64xf32>
    %17 = arith.addf %14, %16 : vector<16x64xf32>
    %c320 = arith.constant 320 : index
    %c0_10 = arith.constant 0 : index
    %18 = vector.load %arg2[%c320, %c0_10] : memref<2176x128xf32, #tpu.memory_space<vmem>>, vector<64x64xf32>
    %cst_11 = arith.constant dense<0.000000e+00> : vector<16x64xf32>
    %19 = tpu.matmul %12, %18, %cst_11 {dimension_numbers = #tpu.dot_dimension_numbers<[1], [0], [0], [1], [0, 0, 1, 1], [], []>} : vector<16x64xf32>, vector<64x64xf32>, vector<16x64xf32> -> vector<16x64xf32>
    %c48 = arith.constant 48 : index
    %c0_12 = arith.constant 0 : index
    %20 = vector.load %arg3[%c48, %c0_12] : memref<384x128xf32, #tpu.memory_space<vmem>>, vector<1x64xf32>
    %21 = vector.broadcast %20 : vector<1x64xf32> to vector<16x64xf32>
    %22 = arith.addf %19, %21 : vector<16x64xf32>
    %c384 = arith.constant 384 : index
    %c0_13 = arith.constant 0 : index
    %23 = vector.load %arg2[%c384, %c0_13] : memref<2176x128xf32, #tpu.memory_space<vmem>>, vector<64x64xf32>
    %cst_14 = arith.constant dense<0.000000e+00> : vector<16x64xf32>
    %24 = tpu.matmul %12, %23, %cst_14 {dimension_numbers = #tpu.dot_dimension_numbers<[1], [0], [0], [1], [0, 0, 1, 1], [], []>} : vector<16x64xf32>, vector<64x64xf32>, vector<16x64xf32> -> vector<16x64xf32>
    %c56 = arith.constant 56 : index
    %c0_15 = arith.constant 0 : index
    %25 = vector.load %arg3[%c56, %c0_15] : memref<384x128xf32, #tpu.memory_space<vmem>>, vector<1x64xf32>
    %26 = vector.broadcast %25 : vector<1x64xf32> to vector<16x64xf32>
    %27 = arith.addf %24, %26 : vector<16x64xf32>
    %28 = vector.extract_strided_slice %17 {offsets = [0, 0], sizes = [8, 64], strides = [1, 1]} : vector<16x64xf32> to vector<8x64xf32>
    %29 = vector.extract_strided_slice %22 {offsets = [0, 0], sizes = [8, 64], strides = [1, 1]} : vector<16x64xf32> to vector<8x64xf32>
    %30 = vector.extract_strided_slice %27 {offsets = [0, 0], sizes = [8, 64], strides = [1, 1]} : vector<16x64xf32> to vector<8x64xf32>
    %31 = vector.extract_strided_slice %28 {offsets = [0, 0], sizes = [8, 16], strides = [1, 1]} : vector<8x64xf32> to vector<8x16xf32>
    %32 = vector.extract_strided_slice %29 {offsets = [0, 0], sizes = [8, 16], strides = [1, 1]} : vector<8x64xf32> to vector<8x16xf32>
    %cst_16 = arith.constant dense<0.000000e+00> : vector<8x8xf32>
    %33 = tpu.matmul %31, %32, %cst_16 {dimension_numbers = #tpu.dot_dimension_numbers<[1], [1], [0], [0], [0, 0, 1, 0], [], []>} : vector<8x16xf32>, vector<8x16xf32>, vector<8x8xf32> -> vector<8x8xf32>
    %cst_17 = arith.constant 2.500000e-01 : f32
    %34 = vector.broadcast %cst_17 : f32 to vector<8x8xf32>
    %35 = arith.mulf %33, %34 : vector<8x8xf32>
    %cst_18 = arith.constant dense<0xFF800000> : vector<8xf32>
    %36 = vector.multi_reduction <maximumf>, %35, %cst_18 [1] : vector<8x8xf32> to vector<8xf32>
    %37 = vector.shape_cast %36 : vector<8xf32> to vector<8x1xf32>
    %38 = vector.broadcast %37 : vector<8x1xf32> to vector<8x8xf32>
    %39 = arith.subf %35, %38 : vector<8x8xf32>
    %40 = math.exp %39 : vector<8x8xf32>
    %cst_19 = arith.constant dense<0.000000e+00> : vector<8xf32>
    %41 = vector.multi_reduction <add>, %40, %cst_19 [1] : vector<8x8xf32> to vector<8xf32>
    %42 = vector.shape_cast %41 : vector<8xf32> to vector<8x1xf32>
    %43 = tpu.reciprocal %42 {approx = true} : vector<8x1xf32> -> vector<8x1xf32>
    %44 = vector.broadcast %43 : vector<8x1xf32> to vector<8x8xf32>
    %45 = arith.mulf %40, %44 : vector<8x8xf32>
    %46 = vector.extract_strided_slice %30 {offsets = [0, 0], sizes = [8, 16], strides = [1, 1]} : vector<8x64xf32> to vector<8x16xf32>
    %cst_20 = arith.constant dense<0.000000e+00> : vector<8x16xf32>
    %47 = tpu.matmul %45, %46, %cst_20 {dimension_numbers = #tpu.dot_dimension_numbers<[1], [0], [0], [1], [0, 0, 1, 1], [], []>} : vector<8x8xf32>, vector<8x16xf32>, vector<8x16xf32> -> vector<8x16xf32>
    %48 = vector.extract_strided_slice %28 {offsets = [0, 16], sizes = [8, 16], strides = [1, 1]} : vector<8x64xf32> to vector<8x16xf32>
    %49 = vector.extract_strided_slice %29 {offsets = [0, 16], sizes = [8, 16], strides = [1, 1]} : vector<8x64xf32> to vector<8x16xf32>
    %cst_21 = arith.constant dense<0.000000e+00> : vector<8x8xf32>
    %50 = tpu.matmul %48, %49, %cst_21 {dimension_numbers = #tpu.dot_dimension_numbers<[1], [1], [0], [0], [0, 0, 1, 0], [], []>} : vector<8x16xf32>, vector<8x16xf32>, vector<8x8xf32> -> vector<8x8xf32>
    %cst_22 = arith.constant 2.500000e-01 : f32
    %51 = vector.broadcast %cst_22 : f32 to vector<8x8xf32>
    %52 = arith.mulf %50, %51 : vector<8x8xf32>
    %cst_23 = arith.constant dense<0xFF800000> : vector<8xf32>
    %53 = vector.multi_reduction <maximumf>, %52, %cst_23 [1] : vector<8x8xf32> to vector<8xf32>
    %54 = vector.shape_cast %53 : vector<8xf32> to vector<8x1xf32>
    %55 = vector.broadcast %54 : vector<8x1xf32> to vector<8x8xf32>
    %56 = arith.subf %52, %55 : vector<8x8xf32>
    %57 = math.exp %56 : vector<8x8xf32>
    %cst_24 = arith.constant dense<0.000000e+00> : vector<8xf32>
    %58 = vector.multi_reduction <add>, %57, %cst_24 [1] : vector<8x8xf32> to vector<8xf32>
    %59 = vector.shape_cast %58 : vector<8xf32> to vector<8x1xf32>
    %60 = tpu.reciprocal %59 {approx = true} : vector<8x1xf32> -> vector<8x1xf32>
    %61 = vector.broadcast %60 : vector<8x1xf32> to vector<8x8xf32>
    %62 = arith.mulf %57, %61 : vector<8x8xf32>
    %63 = vector.extract_strided_slice %30 {offsets = [0, 16], sizes = [8, 16], strides = [1, 1]} : vector<8x64xf32> to vector<8x16xf32>
    %cst_25 = arith.constant dense<0.000000e+00> : vector<8x16xf32>
    %64 = tpu.matmul %62, %63, %cst_25 {dimension_numbers = #tpu.dot_dimension_numbers<[1], [0], [0], [1], [0, 0, 1, 1], [], []>} : vector<8x8xf32>, vector<8x16xf32>, vector<8x16xf32> -> vector<8x16xf32>
    %65 = vector.extract_strided_slice %28 {offsets = [0, 32], sizes = [8, 16], strides = [1, 1]} : vector<8x64xf32> to vector<8x16xf32>
    %66 = vector.extract_strided_slice %29 {offsets = [0, 32], sizes = [8, 16], strides = [1, 1]} : vector<8x64xf32> to vector<8x16xf32>
    %cst_26 = arith.constant dense<0.000000e+00> : vector<8x8xf32>
    %67 = tpu.matmul %65, %66, %cst_26 {dimension_numbers = #tpu.dot_dimension_numbers<[1], [1], [0], [0], [0, 0, 1, 0], [], []>} : vector<8x16xf32>, vector<8x16xf32>, vector<8x8xf32> -> vector<8x8xf32>
    %cst_27 = arith.constant 2.500000e-01 : f32
    %68 = vector.broadcast %cst_27 : f32 to vector<8x8xf32>
    %69 = arith.mulf %67, %68 : vector<8x8xf32>
    %cst_28 = arith.constant dense<0xFF800000> : vector<8xf32>
    %70 = vector.multi_reduction <maximumf>, %69, %cst_28 [1] : vector<8x8xf32> to vector<8xf32>
    %71 = vector.shape_cast %70 : vector<8xf32> to vector<8x1xf32>
    %72 = vector.broadcast %71 : vector<8x1xf32> to vector<8x8xf32>
    %73 = arith.subf %69, %72 : vector<8x8xf32>
    %74 = math.exp %73 : vector<8x8xf32>
    %cst_29 = arith.constant dense<0.000000e+00> : vector<8xf32>
    %75 = vector.multi_reduction <add>, %74, %cst_29 [1] : vector<8x8xf32> to vector<8xf32>
    %76 = vector.shape_cast %75 : vector<8xf32> to vector<8x1xf32>
    %77 = tpu.reciprocal %76 {approx = true} : vector<8x1xf32> -> vector<8x1xf32>
    %78 = vector.broadcast %77 : vector<8x1xf32> to vector<8x8xf32>
    %79 = arith.mulf %74, %78 : vector<8x8xf32>
    %80 = vector.extract_strided_slice %30 {offsets = [0, 32], sizes = [8, 16], strides = [1, 1]} : vector<8x64xf32> to vector<8x16xf32>
    %cst_30 = arith.constant dense<0.000000e+00> : vector<8x16xf32>
    %81 = tpu.matmul %79, %80, %cst_30 {dimension_numbers = #tpu.dot_dimension_numbers<[1], [0], [0], [1], [0, 0, 1, 1], [], []>} : vector<8x8xf32>, vector<8x16xf32>, vector<8x16xf32> -> vector<8x16xf32>
    %82 = vector.extract_strided_slice %28 {offsets = [0, 48], sizes = [8, 16], strides = [1, 1]} : vector<8x64xf32> to vector<8x16xf32>
    %83 = vector.extract_strided_slice %29 {offsets = [0, 48], sizes = [8, 16], strides = [1, 1]} : vector<8x64xf32> to vector<8x16xf32>
    %cst_31 = arith.constant dense<0.000000e+00> : vector<8x8xf32>
    %84 = tpu.matmul %82, %83, %cst_31 {dimension_numbers = #tpu.dot_dimension_numbers<[1], [1], [0], [0], [0, 0, 1, 0], [], []>} : vector<8x16xf32>, vector<8x16xf32>, vector<8x8xf32> -> vector<8x8xf32>
    %cst_32 = arith.constant 2.500000e-01 : f32
    %85 = vector.broadcast %cst_32 : f32 to vector<8x8xf32>
    %86 = arith.mulf %84, %85 : vector<8x8xf32>
    %cst_33 = arith.constant dense<0xFF800000> : vector<8xf32>
    %87 = vector.multi_reduction <maximumf>, %86, %cst_33 [1] : vector<8x8xf32> to vector<8xf32>
    %88 = vector.shape_cast %87 : vector<8xf32> to vector<8x1xf32>
    %89 = vector.broadcast %88 : vector<8x1xf32> to vector<8x8xf32>
    %90 = arith.subf %86, %89 : vector<8x8xf32>
    %91 = math.exp %90 : vector<8x8xf32>
    %cst_34 = arith.constant dense<0.000000e+00> : vector<8xf32>
    %92 = vector.multi_reduction <add>, %91, %cst_34 [1] : vector<8x8xf32> to vector<8xf32>
    %93 = vector.shape_cast %92 : vector<8xf32> to vector<8x1xf32>
    %94 = tpu.reciprocal %93 {approx = true} : vector<8x1xf32> -> vector<8x1xf32>
    %95 = vector.broadcast %94 : vector<8x1xf32> to vector<8x8xf32>
    %96 = arith.mulf %91, %95 : vector<8x8xf32>
    %97 = vector.extract_strided_slice %30 {offsets = [0, 48], sizes = [8, 16], strides = [1, 1]} : vector<8x64xf32> to vector<8x16xf32>
    %cst_35 = arith.constant dense<0.000000e+00> : vector<8x16xf32>
    %98 = tpu.matmul %96, %97, %cst_35 {dimension_numbers = #tpu.dot_dimension_numbers<[1], [0], [0], [1], [0, 0, 1, 1], [], []>} : vector<8x8xf32>, vector<8x16xf32>, vector<8x16xf32> -> vector<8x16xf32>
    %99 = tpu.concatenate %47, %64, %81, %98 in 1 : vector<8x16xf32>, vector<8x16xf32>, vector<8x16xf32>, vector<8x16xf32> -> vector<8x64xf32>
    %100 = vector.extract_strided_slice %17 {offsets = [8, 0], sizes = [8, 64], strides = [1, 1]} : vector<16x64xf32> to vector<8x64xf32>
    %101 = vector.extract_strided_slice %22 {offsets = [8, 0], sizes = [8, 64], strides = [1, 1]} : vector<16x64xf32> to vector<8x64xf32>
    %102 = vector.extract_strided_slice %27 {offsets = [8, 0], sizes = [8, 64], strides = [1, 1]} : vector<16x64xf32> to vector<8x64xf32>
    %103 = vector.extract_strided_slice %100 {offsets = [0, 0], sizes = [8, 16], strides = [1, 1]} : vector<8x64xf32> to vector<8x16xf32>
    %104 = vector.extract_strided_slice %101 {offsets = [0, 0], sizes = [8, 16], strides = [1, 1]} : vector<8x64xf32> to vector<8x16xf32>
    %cst_36 = arith.constant dense<0.000000e+00> : vector<8x8xf32>
    %105 = tpu.matmul %103, %104, %cst_36 {dimension_numbers = #tpu.dot_dimension_numbers<[1], [1], [0], [0], [0, 0, 1, 0], [], []>} : vector<8x16xf32>, vector<8x16xf32>, vector<8x8xf32> -> vector<8x8xf32>
    %cst_37 = arith.constant 2.500000e-01 : f32
    %106 = vector.broadcast %cst_37 : f32 to vector<8x8xf32>
    %107 = arith.mulf %105, %106 : vector<8x8xf32>
    %cst_38 = arith.constant dense<0xFF800000> : vector<8xf32>
    %108 = vector.multi_reduction <maximumf>, %107, %cst_38 [1] : vector<8x8xf32> to vector<8xf32>
    %109 = vector.shape_cast %108 : vector<8xf32> to vector<8x1xf32>
    %110 = vector.broadcast %109 : vector<8x1xf32> to vector<8x8xf32>
    %111 = arith.subf %107, %110 : vector<8x8xf32>
    %112 = math.exp %111 : vector<8x8xf32>
    %cst_39 = arith.constant dense<0.000000e+00> : vector<8xf32>
    %113 = vector.multi_reduction <add>, %112, %cst_39 [1] : vector<8x8xf32> to vector<8xf32>
    %114 = vector.shape_cast %113 : vector<8xf32> to vector<8x1xf32>
    %115 = tpu.reciprocal %114 {approx = true} : vector<8x1xf32> -> vector<8x1xf32>
    %116 = vector.broadcast %115 : vector<8x1xf32> to vector<8x8xf32>
    %117 = arith.mulf %112, %116 : vector<8x8xf32>
    %118 = vector.extract_strided_slice %102 {offsets = [0, 0], sizes = [8, 16], strides = [1, 1]} : vector<8x64xf32> to vector<8x16xf32>
    %cst_40 = arith.constant dense<0.000000e+00> : vector<8x16xf32>
    %119 = tpu.matmul %117, %118, %cst_40 {dimension_numbers = #tpu.dot_dimension_numbers<[1], [0], [0], [1], [0, 0, 1, 1], [], []>} : vector<8x8xf32>, vector<8x16xf32>, vector<8x16xf32> -> vector<8x16xf32>
    %120 = vector.extract_strided_slice %100 {offsets = [0, 16], sizes = [8, 16], strides = [1, 1]} : vector<8x64xf32> to vector<8x16xf32>
    %121 = vector.extract_strided_slice %101 {offsets = [0, 16], sizes = [8, 16], strides = [1, 1]} : vector<8x64xf32> to vector<8x16xf32>
    %cst_41 = arith.constant dense<0.000000e+00> : vector<8x8xf32>
    %122 = tpu.matmul %120, %121, %cst_41 {dimension_numbers = #tpu.dot_dimension_numbers<[1], [1], [0], [0], [0, 0, 1, 0], [], []>} : vector<8x16xf32>, vector<8x16xf32>, vector<8x8xf32> -> vector<8x8xf32>
    %cst_42 = arith.constant 2.500000e-01 : f32
    %123 = vector.broadcast %cst_42 : f32 to vector<8x8xf32>
    %124 = arith.mulf %122, %123 : vector<8x8xf32>
    %cst_43 = arith.constant dense<0xFF800000> : vector<8xf32>
    %125 = vector.multi_reduction <maximumf>, %124, %cst_43 [1] : vector<8x8xf32> to vector<8xf32>
    %126 = vector.shape_cast %125 : vector<8xf32> to vector<8x1xf32>
    %127 = vector.broadcast %126 : vector<8x1xf32> to vector<8x8xf32>
    %128 = arith.subf %124, %127 : vector<8x8xf32>
    %129 = math.exp %128 : vector<8x8xf32>
    %cst_44 = arith.constant dense<0.000000e+00> : vector<8xf32>
    %130 = vector.multi_reduction <add>, %129, %cst_44 [1] : vector<8x8xf32> to vector<8xf32>
    %131 = vector.shape_cast %130 : vector<8xf32> to vector<8x1xf32>
    %132 = tpu.reciprocal %131 {approx = true} : vector<8x1xf32> -> vector<8x1xf32>
    %133 = vector.broadcast %132 : vector<8x1xf32> to vector<8x8xf32>
    %134 = arith.mulf %129, %133 : vector<8x8xf32>
    %135 = vector.extract_strided_slice %102 {offsets = [0, 16], sizes = [8, 16], strides = [1, 1]} : vector<8x64xf32> to vector<8x16xf32>
    %cst_45 = arith.constant dense<0.000000e+00> : vector<8x16xf32>
    %136 = tpu.matmul %134, %135, %cst_45 {dimension_numbers = #tpu.dot_dimension_numbers<[1], [0], [0], [1], [0, 0, 1, 1], [], []>} : vector<8x8xf32>, vector<8x16xf32>, vector<8x16xf32> -> vector<8x16xf32>
    %137 = vector.extract_strided_slice %100 {offsets = [0, 32], sizes = [8, 16], strides = [1, 1]} : vector<8x64xf32> to vector<8x16xf32>
    %138 = vector.extract_strided_slice %101 {offsets = [0, 32], sizes = [8, 16], strides = [1, 1]} : vector<8x64xf32> to vector<8x16xf32>
    %cst_46 = arith.constant dense<0.000000e+00> : vector<8x8xf32>
    %139 = tpu.matmul %137, %138, %cst_46 {dimension_numbers = #tpu.dot_dimension_numbers<[1], [1], [0], [0], [0, 0, 1, 0], [], []>} : vector<8x16xf32>, vector<8x16xf32>, vector<8x8xf32> -> vector<8x8xf32>
    %cst_47 = arith.constant 2.500000e-01 : f32
    %140 = vector.broadcast %cst_47 : f32 to vector<8x8xf32>
    %141 = arith.mulf %139, %140 : vector<8x8xf32>
    %cst_48 = arith.constant dense<0xFF800000> : vector<8xf32>
    %142 = vector.multi_reduction <maximumf>, %141, %cst_48 [1] : vector<8x8xf32> to vector<8xf32>
    %143 = vector.shape_cast %142 : vector<8xf32> to vector<8x1xf32>
    %144 = vector.broadcast %143 : vector<8x1xf32> to vector<8x8xf32>
    %145 = arith.subf %141, %144 : vector<8x8xf32>
    %146 = math.exp %145 : vector<8x8xf32>
    %cst_49 = arith.constant dense<0.000000e+00> : vector<8xf32>
    %147 = vector.multi_reduction <add>, %146, %cst_49 [1] : vector<8x8xf32> to vector<8xf32>
    %148 = vector.shape_cast %147 : vector<8xf32> to vector<8x1xf32>
    %149 = tpu.reciprocal %148 {approx = true} : vector<8x1xf32> -> vector<8x1xf32>
    %150 = vector.broadcast %149 : vector<8x1xf32> to vector<8x8xf32>
    %151 = arith.mulf %146, %150 : vector<8x8xf32>
    %152 = vector.extract_strided_slice %102 {offsets = [0, 32], sizes = [8, 16], strides = [1, 1]} : vector<8x64xf32> to vector<8x16xf32>
    %cst_50 = arith.constant dense<0.000000e+00> : vector<8x16xf32>
    %153 = tpu.matmul %151, %152, %cst_50 {dimension_numbers = #tpu.dot_dimension_numbers<[1], [0], [0], [1], [0, 0, 1, 1], [], []>} : vector<8x8xf32>, vector<8x16xf32>, vector<8x16xf32> -> vector<8x16xf32>
    %154 = vector.extract_strided_slice %100 {offsets = [0, 48], sizes = [8, 16], strides = [1, 1]} : vector<8x64xf32> to vector<8x16xf32>
    %155 = vector.extract_strided_slice %101 {offsets = [0, 48], sizes = [8, 16], strides = [1, 1]} : vector<8x64xf32> to vector<8x16xf32>
    %cst_51 = arith.constant dense<0.000000e+00> : vector<8x8xf32>
    %156 = tpu.matmul %154, %155, %cst_51 {dimension_numbers = #tpu.dot_dimension_numbers<[1], [1], [0], [0], [0, 0, 1, 0], [], []>} : vector<8x16xf32>, vector<8x16xf32>, vector<8x8xf32> -> vector<8x8xf32>
    %cst_52 = arith.constant 2.500000e-01 : f32
    %157 = vector.broadcast %cst_52 : f32 to vector<8x8xf32>
    %158 = arith.mulf %156, %157 : vector<8x8xf32>
    %cst_53 = arith.constant dense<0xFF800000> : vector<8xf32>
    %159 = vector.multi_reduction <maximumf>, %158, %cst_53 [1] : vector<8x8xf32> to vector<8xf32>
    %160 = vector.shape_cast %159 : vector<8xf32> to vector<8x1xf32>
    %161 = vector.broadcast %160 : vector<8x1xf32> to vector<8x8xf32>
    %162 = arith.subf %158, %161 : vector<8x8xf32>
    %163 = math.exp %162 : vector<8x8xf32>
    %cst_54 = arith.constant dense<0.000000e+00> : vector<8xf32>
    %164 = vector.multi_reduction <add>, %163, %cst_54 [1] : vector<8x8xf32> to vector<8xf32>
    %165 = vector.shape_cast %164 : vector<8xf32> to vector<8x1xf32>
    %166 = tpu.reciprocal %165 {approx = true} : vector<8x1xf32> -> vector<8x1xf32>
    %167 = vector.broadcast %166 : vector<8x1xf32> to vector<8x8xf32>
    %168 = arith.mulf %163, %167 : vector<8x8xf32>
    %169 = vector.extract_strided_slice %102 {offsets = [0, 48], sizes = [8, 16], strides = [1, 1]} : vector<8x64xf32> to vector<8x16xf32>
    %cst_55 = arith.constant dense<0.000000e+00> : vector<8x16xf32>
    %170 = tpu.matmul %168, %169, %cst_55 {dimension_numbers = #tpu.dot_dimension_numbers<[1], [0], [0], [1], [0, 0, 1, 1], [], []>} : vector<8x8xf32>, vector<8x16xf32>, vector<8x16xf32> -> vector<8x16xf32>
    %171 = tpu.concatenate %119, %136, %153, %170 in 1 : vector<8x16xf32>, vector<8x16xf32>, vector<8x16xf32>, vector<8x16xf32> -> vector<8x64xf32>
    %172 = tpu.concatenate %99, %171 in 0 : vector<8x64xf32>, vector<8x64xf32> -> vector<16x64xf32>
    %c448 = arith.constant 448 : index
    %c0_56 = arith.constant 0 : index
    %173 = vector.load %arg2[%c448, %c0_56] : memref<2176x128xf32, #tpu.memory_space<vmem>>, vector<64x64xf32>
    %cst_57 = arith.constant dense<0.000000e+00> : vector<16x64xf32>
    %174 = tpu.matmul %172, %173, %cst_57 {dimension_numbers = #tpu.dot_dimension_numbers<[1], [0], [0], [1], [0, 0, 1, 1], [], []>} : vector<16x64xf32>, vector<64x64xf32>, vector<16x64xf32> -> vector<16x64xf32>
    %c64 = arith.constant 64 : index
    %c0_58 = arith.constant 0 : index
    %175 = vector.load %arg3[%c64, %c0_58] : memref<384x128xf32, #tpu.memory_space<vmem>>, vector<1x64xf32>
    %176 = vector.broadcast %175 : vector<1x64xf32> to vector<16x64xf32>
    %177 = arith.addf %174, %176 : vector<16x64xf32>
    %178 = arith.addf %177, %12 : vector<16x64xf32>
    %cst_59 = arith.constant dense<0.000000e+00> : vector<16xf32>
    %179 = vector.multi_reduction <add>, %178, %cst_59 [1] : vector<16x64xf32> to vector<16xf32>
    %180 = vector.shape_cast %179 : vector<16xf32> to vector<16x1xf32>
    %cst_60 = arith.constant 6.400000e+01 : f32
    %181 = vector.broadcast %cst_60 : f32 to vector<16x1xf32>
    %182 = arith.divf %180, %181 : vector<16x1xf32>
    %183 = vector.broadcast %182 : vector<16x1xf32> to vector<16x64xf32>
    %184 = arith.subf %178, %183 : vector<16x64xf32>
    %185 = arith.mulf %184, %184 : vector<16x64xf32>
    %cst_61 = arith.constant dense<0.000000e+00> : vector<16xf32>
    %186 = vector.multi_reduction <add>, %185, %cst_61 [1] : vector<16x64xf32> to vector<16xf32>
    %187 = vector.shape_cast %186 : vector<16xf32> to vector<16x1xf32>
    %cst_62 = arith.constant 6.400000e+01 : f32
    %188 = vector.broadcast %cst_62 : f32 to vector<16x1xf32>
    %189 = arith.divf %187, %188 : vector<16x1xf32>
    %190 = vector.broadcast %182 : vector<16x1xf32> to vector<16x64xf32>
    %191 = arith.subf %178, %190 : vector<16x64xf32>
    %cst_63 = arith.constant 9.99999974E-6 : f32
    %192 = vector.broadcast %cst_63 : f32 to vector<16x1xf32>
    %193 = arith.addf %189, %192 : vector<16x1xf32>
    %194 = math.rsqrt %193 : vector<16x1xf32>
    %195 = vector.broadcast %194 : vector<16x1xf32> to vector<16x64xf32>
    %196 = arith.mulf %191, %195 : vector<16x64xf32>
    %c72 = arith.constant 72 : index
    %c0_64 = arith.constant 0 : index
    %197 = vector.load %arg3[%c72, %c0_64] : memref<384x128xf32, #tpu.memory_space<vmem>>, vector<1x64xf32>
    %198 = vector.broadcast %197 : vector<1x64xf32> to vector<16x64xf32>
    %199 = arith.mulf %196, %198 : vector<16x64xf32>
    %c80 = arith.constant 80 : index
    %c0_65 = arith.constant 0 : index
    %200 = vector.load %arg3[%c80, %c0_65] : memref<384x128xf32, #tpu.memory_space<vmem>>, vector<1x64xf32>
    %201 = vector.broadcast %200 : vector<1x64xf32> to vector<16x64xf32>
    %202 = arith.addf %199, %201 : vector<16x64xf32>
    %c512 = arith.constant 512 : index
    %c0_66 = arith.constant 0 : index
    %203 = vector.load %arg2[%c512, %c0_66] : memref<2176x128xf32, #tpu.memory_space<vmem>>, vector<64x128xf32>
    %cst_67 = arith.constant dense<0.000000e+00> : vector<16x128xf32>
    %204 = tpu.matmul %202, %203, %cst_67 {dimension_numbers = #tpu.dot_dimension_numbers<[1], [0], [0], [1], [0, 0, 1, 1], [], []>} : vector<16x64xf32>, vector<64x128xf32>, vector<16x128xf32> -> vector<16x128xf32>
    %c88 = arith.constant 88 : index
    %c0_68 = arith.constant 0 : index
    %205 = vector.load %arg3[%c88, %c0_68] : memref<384x128xf32, #tpu.memory_space<vmem>>, vector<1x128xf32>
    %206 = vector.broadcast %205 : vector<1x128xf32> to vector<16x128xf32>
    %207 = arith.addf %204, %206 : vector<16x128xf32>
    %cst_69 = arith.constant 0.000000e+00 : f32
    %208 = vector.broadcast %cst_69 : f32 to vector<16x128xf32>
    %209 = arith.maximumf %207, %208 : vector<16x128xf32>
    %c576 = arith.constant 576 : index
    %c0_70 = arith.constant 0 : index
    %210 = vector.load %arg2[%c576, %c0_70] : memref<2176x128xf32, #tpu.memory_space<vmem>>, vector<128x64xf32>
    %cst_71 = arith.constant dense<0.000000e+00> : vector<16x64xf32>
    %211 = tpu.matmul %209, %210, %cst_71 {dimension_numbers = #tpu.dot_dimension_numbers<[1], [0], [0], [1], [0, 0, 1, 1], [], []>} : vector<16x128xf32>, vector<128x64xf32>, vector<16x64xf32> -> vector<16x64xf32>
    %c96 = arith.constant 96 : index
    %c0_72 = arith.constant 0 : index
    %212 = vector.load %arg3[%c96, %c0_72] : memref<384x128xf32, #tpu.memory_space<vmem>>, vector<1x64xf32>
    %213 = vector.broadcast %212 : vector<1x64xf32> to vector<16x64xf32>
    %214 = arith.addf %211, %213 : vector<16x64xf32>
    %215 = arith.addf %214, %202 : vector<16x64xf32>
    %cst_73 = arith.constant dense<0.000000e+00> : vector<16xf32>
    %216 = vector.multi_reduction <add>, %215, %cst_73 [1] : vector<16x64xf32> to vector<16xf32>
    %217 = vector.shape_cast %216 : vector<16xf32> to vector<16x1xf32>
    %cst_74 = arith.constant 6.400000e+01 : f32
    %218 = vector.broadcast %cst_74 : f32 to vector<16x1xf32>
    %219 = arith.divf %217, %218 : vector<16x1xf32>
    %220 = vector.broadcast %219 : vector<16x1xf32> to vector<16x64xf32>
    %221 = arith.subf %215, %220 : vector<16x64xf32>
    %222 = arith.mulf %221, %221 : vector<16x64xf32>
    %cst_75 = arith.constant dense<0.000000e+00> : vector<16xf32>
    %223 = vector.multi_reduction <add>, %222, %cst_75 [1] : vector<16x64xf32> to vector<16xf32>
    %224 = vector.shape_cast %223 : vector<16xf32> to vector<16x1xf32>
    %cst_76 = arith.constant 6.400000e+01 : f32
    %225 = vector.broadcast %cst_76 : f32 to vector<16x1xf32>
    %226 = arith.divf %224, %225 : vector<16x1xf32>
    %227 = vector.broadcast %219 : vector<16x1xf32> to vector<16x64xf32>
    %228 = arith.subf %215, %227 : vector<16x64xf32>
    %cst_77 = arith.constant 9.99999974E-6 : f32
    %229 = vector.broadcast %cst_77 : f32 to vector<16x1xf32>
    %230 = arith.addf %226, %229 : vector<16x1xf32>
    %231 = math.rsqrt %230 : vector<16x1xf32>
    %232 = vector.broadcast %231 : vector<16x1xf32> to vector<16x64xf32>
    %233 = arith.mulf %228, %232 : vector<16x64xf32>
    %c104 = arith.constant 104 : index
    %c0_78 = arith.constant 0 : index
    %234 = vector.load %arg3[%c104, %c0_78] : memref<384x128xf32, #tpu.memory_space<vmem>>, vector<1x64xf32>
    %235 = vector.broadcast %234 : vector<1x64xf32> to vector<16x64xf32>
    %236 = arith.mulf %233, %235 : vector<16x64xf32>
    %c112 = arith.constant 112 : index
    %c0_79 = arith.constant 0 : index
    %237 = vector.load %arg3[%c112, %c0_79] : memref<384x128xf32, #tpu.memory_space<vmem>>, vector<1x64xf32>
    %238 = vector.broadcast %237 : vector<1x64xf32> to vector<16x64xf32>
    %239 = arith.addf %236, %238 : vector<16x64xf32>
    %c0_80 = arith.constant 0 : index
    %c0_81 = arith.constant 0 : index
    %240 = vector.load %arg1[%c0_80, %c0_81] : memref<18x128xf32, #tpu.memory_space<vmem>>, vector<18x128xf32>
    %c128 = arith.constant 128 : index
    %c0_82 = arith.constant 0 : index
    %241 = vector.load %arg2[%c128, %c0_82] : memref<2176x128xf32, #tpu.memory_space<vmem>>, vector<128x64xf32>
    %cst_83 = arith.constant dense<0.000000e+00> : vector<18x64xf32>
    %242 = tpu.matmul %240, %241, %cst_83 {dimension_numbers = #tpu.dot_dimension_numbers<[1], [0], [0], [1], [0, 0, 1, 1], [], []>} : vector<18x128xf32>, vector<128x64xf32>, vector<18x64xf32> -> vector<18x64xf32>
    %c16 = arith.constant 16 : index
    %c0_84 = arith.constant 0 : index
    %243 = vector.load %arg3[%c16, %c0_84] : memref<384x128xf32, #tpu.memory_space<vmem>>, vector<1x64xf32>
    %244 = vector.broadcast %243 : vector<1x64xf32> to vector<18x64xf32>
    %245 = arith.addf %242, %244 : vector<18x64xf32>
    %c24 = arith.constant 24 : index
    %c0_85 = arith.constant 0 : index
    %246 = vector.load %arg3[%c24, %c0_85] : memref<384x128xf32, #tpu.memory_space<vmem>>, vector<9x64xf32>
    %247 = tpu.concatenate %246, %246 in 0 : vector<9x64xf32>, vector<9x64xf32> -> vector<18x64xf32>
    %248 = arith.addf %245, %247 : vector<18x64xf32>
    %c1408 = arith.constant 1408 : index
    %c0_86 = arith.constant 0 : index
    %249 = vector.load %arg2[%c1408, %c0_86] : memref<2176x128xf32, #tpu.memory_space<vmem>>, vector<64x64xf32>
    %cst_87 = arith.constant dense<0.000000e+00> : vector<18x64xf32>
    %250 = tpu.matmul %248, %249, %cst_87 {dimension_numbers = #tpu.dot_dimension_numbers<[1], [0], [0], [1], [0, 0, 1, 1], [], []>} : vector<18x64xf32>, vector<64x64xf32>, vector<18x64xf32> -> vector<18x64xf32>
    %c248 = arith.constant 248 : index
    %c0_88 = arith.constant 0 : index
    %251 = vector.load %arg3[%c248, %c0_88] : memref<384x128xf32, #tpu.memory_space<vmem>>, vector<1x64xf32>
    %252 = vector.broadcast %251 : vector<1x64xf32> to vector<18x64xf32>
    %253 = arith.addf %250, %252 : vector<18x64xf32>
    %c1472 = arith.constant 1472 : index
    %c0_89 = arith.constant 0 : index
    %254 = vector.load %arg2[%c1472, %c0_89] : memref<2176x128xf32, #tpu.memory_space<vmem>>, vector<64x64xf32>
    %cst_90 = arith.constant dense<0.000000e+00> : vector<18x64xf32>
    %255 = tpu.matmul %248, %254, %cst_90 {dimension_numbers = #tpu.dot_dimension_numbers<[1], [0], [0], [1], [0, 0, 1, 1], [], []>} : vector<18x64xf32>, vector<64x64xf32>, vector<18x64xf32> -> vector<18x64xf32>
    %c256_91 = arith.constant 256 : index
    %c0_92 = arith.constant 0 : index
    %256 = vector.load %arg3[%c256_91, %c0_92] : memref<384x128xf32, #tpu.memory_space<vmem>>, vector<1x64xf32>
    %257 = vector.broadcast %256 : vector<1x64xf32> to vector<18x64xf32>
    %258 = arith.addf %255, %257 : vector<18x64xf32>
    %c1536 = arith.constant 1536 : index
    %c0_93 = arith.constant 0 : index
    %259 = vector.load %arg2[%c1536, %c0_93] : memref<2176x128xf32, #tpu.memory_space<vmem>>, vector<64x64xf32>
    %cst_94 = arith.constant dense<0.000000e+00> : vector<18x64xf32>
    %260 = tpu.matmul %248, %259, %cst_94 {dimension_numbers = #tpu.dot_dimension_numbers<[1], [0], [0], [1], [0, 0, 1, 1], [], []>} : vector<18x64xf32>, vector<64x64xf32>, vector<18x64xf32> -> vector<18x64xf32>
    %c264 = arith.constant 264 : index
    %c0_95 = arith.constant 0 : index
    %261 = vector.load %arg3[%c264, %c0_95] : memref<384x128xf32, #tpu.memory_space<vmem>>, vector<1x64xf32>
    %262 = vector.broadcast %261 : vector<1x64xf32> to vector<18x64xf32>
    %263 = arith.addf %260, %262 : vector<18x64xf32>
    %264 = vector.extract_strided_slice %253 {offsets = [0, 0], sizes = [9, 64], strides = [1, 1]} : vector<18x64xf32> to vector<9x64xf32>
    %265 = vector.extract_strided_slice %258 {offsets = [0, 0], sizes = [9, 64], strides = [1, 1]} : vector<18x64xf32> to vector<9x64xf32>
    %266 = vector.extract_strided_slice %263 {offsets = [0, 0], sizes = [9, 64], strides = [1, 1]} : vector<18x64xf32> to vector<9x64xf32>
    %267 = vector.extract_strided_slice %264 {offsets = [0, 0], sizes = [9, 16], strides = [1, 1]} : vector<9x64xf32> to vector<9x16xf32>
    %268 = vector.extract_strided_slice %265 {offsets = [0, 0], sizes = [9, 16], strides = [1, 1]} : vector<9x64xf32> to vector<9x16xf32>
    %cst_96 = arith.constant dense<0.000000e+00> : vector<9x9xf32>
    %269 = tpu.matmul %267, %268, %cst_96 {dimension_numbers = #tpu.dot_dimension_numbers<[1], [1], [0], [0], [0, 0, 1, 0], [], []>} : vector<9x16xf32>, vector<9x16xf32>, vector<9x9xf32> -> vector<9x9xf32>
    %cst_97 = arith.constant 2.500000e-01 : f32
    %270 = vector.broadcast %cst_97 : f32 to vector<9x9xf32>
    %271 = arith.mulf %269, %270 : vector<9x9xf32>
    %cst_98 = arith.constant -1.000000e+30 : f32
    %272 = vector.broadcast %cst_98 : f32 to vector<9x9xf32>
    %273 = arith.select %2, %272, %271 : vector<9x9xi1>, vector<9x9xf32>
    %cst_99 = arith.constant dense<0xFF800000> : vector<9xf32>
    %274 = vector.multi_reduction <maximumf>, %273, %cst_99 [1] : vector<9x9xf32> to vector<9xf32>
    %275 = vector.shape_cast %274 : vector<9xf32> to vector<9x1xf32>
    %276 = vector.broadcast %275 : vector<9x1xf32> to vector<9x9xf32>
    %277 = arith.subf %273, %276 : vector<9x9xf32>
    %278 = math.exp %277 : vector<9x9xf32>
    %cst_100 = arith.constant dense<0.000000e+00> : vector<9xf32>
    %279 = vector.multi_reduction <add>, %278, %cst_100 [1] : vector<9x9xf32> to vector<9xf32>
    %280 = vector.shape_cast %279 : vector<9xf32> to vector<9x1xf32>
    %281 = tpu.reciprocal %280 {approx = true} : vector<9x1xf32> -> vector<9x1xf32>
    %282 = vector.broadcast %281 : vector<9x1xf32> to vector<9x9xf32>
    %283 = arith.mulf %278, %282 : vector<9x9xf32>
    %284 = vector.extract_strided_slice %266 {offsets = [0, 0], sizes = [9, 16], strides = [1, 1]} : vector<9x64xf32> to vector<9x16xf32>
    %cst_101 = arith.constant dense<0.000000e+00> : vector<9x16xf32>
    %285 = tpu.matmul %283, %284, %cst_101 {dimension_numbers = #tpu.dot_dimension_numbers<[1], [0], [0], [1], [0, 0, 1, 1], [], []>} : vector<9x9xf32>, vector<9x16xf32>, vector<9x16xf32> -> vector<9x16xf32>
    %286 = vector.extract_strided_slice %264 {offsets = [0, 16], sizes = [9, 16], strides = [1, 1]} : vector<9x64xf32> to vector<9x16xf32>
    %287 = vector.extract_strided_slice %265 {offsets = [0, 16], sizes = [9, 16], strides = [1, 1]} : vector<9x64xf32> to vector<9x16xf32>
    %cst_102 = arith.constant dense<0.000000e+00> : vector<9x9xf32>
    %288 = tpu.matmul %286, %287, %cst_102 {dimension_numbers = #tpu.dot_dimension_numbers<[1], [1], [0], [0], [0, 0, 1, 0], [], []>} : vector<9x16xf32>, vector<9x16xf32>, vector<9x9xf32> -> vector<9x9xf32>
    %cst_103 = arith.constant 2.500000e-01 : f32
    %289 = vector.broadcast %cst_103 : f32 to vector<9x9xf32>
    %290 = arith.mulf %288, %289 : vector<9x9xf32>
    %cst_104 = arith.constant -1.000000e+30 : f32
    %291 = vector.broadcast %cst_104 : f32 to vector<9x9xf32>
    %292 = arith.select %2, %291, %290 : vector<9x9xi1>, vector<9x9xf32>
    %cst_105 = arith.constant dense<0xFF800000> : vector<9xf32>
    %293 = vector.multi_reduction <maximumf>, %292, %cst_105 [1] : vector<9x9xf32> to vector<9xf32>
    %294 = vector.shape_cast %293 : vector<9xf32> to vector<9x1xf32>
    %295 = vector.broadcast %294 : vector<9x1xf32> to vector<9x9xf32>
    %296 = arith.subf %292, %295 : vector<9x9xf32>
    %297 = math.exp %296 : vector<9x9xf32>
    %cst_106 = arith.constant dense<0.000000e+00> : vector<9xf32>
    %298 = vector.multi_reduction <add>, %297, %cst_106 [1] : vector<9x9xf32> to vector<9xf32>
    %299 = vector.shape_cast %298 : vector<9xf32> to vector<9x1xf32>
    %300 = tpu.reciprocal %299 {approx = true} : vector<9x1xf32> -> vector<9x1xf32>
    %301 = vector.broadcast %300 : vector<9x1xf32> to vector<9x9xf32>
    %302 = arith.mulf %297, %301 : vector<9x9xf32>
    %303 = vector.extract_strided_slice %266 {offsets = [0, 16], sizes = [9, 16], strides = [1, 1]} : vector<9x64xf32> to vector<9x16xf32>
    %cst_107 = arith.constant dense<0.000000e+00> : vector<9x16xf32>
    %304 = tpu.matmul %302, %303, %cst_107 {dimension_numbers = #tpu.dot_dimension_numbers<[1], [0], [0], [1], [0, 0, 1, 1], [], []>} : vector<9x9xf32>, vector<9x16xf32>, vector<9x16xf32> -> vector<9x16xf32>
    %305 = vector.extract_strided_slice %264 {offsets = [0, 32], sizes = [9, 16], strides = [1, 1]} : vector<9x64xf32> to vector<9x16xf32>
    %306 = vector.extract_strided_slice %265 {offsets = [0, 32], sizes = [9, 16], strides = [1, 1]} : vector<9x64xf32> to vector<9x16xf32>
    %cst_108 = arith.constant dense<0.000000e+00> : vector<9x9xf32>
    %307 = tpu.matmul %305, %306, %cst_108 {dimension_numbers = #tpu.dot_dimension_numbers<[1], [1], [0], [0], [0, 0, 1, 0], [], []>} : vector<9x16xf32>, vector<9x16xf32>, vector<9x9xf32> -> vector<9x9xf32>
    %cst_109 = arith.constant 2.500000e-01 : f32
    %308 = vector.broadcast %cst_109 : f32 to vector<9x9xf32>
    %309 = arith.mulf %307, %308 : vector<9x9xf32>
    %cst_110 = arith.constant -1.000000e+30 : f32
    %310 = vector.broadcast %cst_110 : f32 to vector<9x9xf32>
    %311 = arith.select %2, %310, %309 : vector<9x9xi1>, vector<9x9xf32>
    %cst_111 = arith.constant dense<0xFF800000> : vector<9xf32>
    %312 = vector.multi_reduction <maximumf>, %311, %cst_111 [1] : vector<9x9xf32> to vector<9xf32>
    %313 = vector.shape_cast %312 : vector<9xf32> to vector<9x1xf32>
    %314 = vector.broadcast %313 : vector<9x1xf32> to vector<9x9xf32>
    %315 = arith.subf %311, %314 : vector<9x9xf32>
    %316 = math.exp %315 : vector<9x9xf32>
    %cst_112 = arith.constant dense<0.000000e+00> : vector<9xf32>
    %317 = vector.multi_reduction <add>, %316, %cst_112 [1] : vector<9x9xf32> to vector<9xf32>
    %318 = vector.shape_cast %317 : vector<9xf32> to vector<9x1xf32>
    %319 = tpu.reciprocal %318 {approx = true} : vector<9x1xf32> -> vector<9x1xf32>
    %320 = vector.broadcast %319 : vector<9x1xf32> to vector<9x9xf32>
    %321 = arith.mulf %316, %320 : vector<9x9xf32>
    %322 = vector.extract_strided_slice %266 {offsets = [0, 32], sizes = [9, 16], strides = [1, 1]} : vector<9x64xf32> to vector<9x16xf32>
    %cst_113 = arith.constant dense<0.000000e+00> : vector<9x16xf32>
    %323 = tpu.matmul %321, %322, %cst_113 {dimension_numbers = #tpu.dot_dimension_numbers<[1], [0], [0], [1], [0, 0, 1, 1], [], []>} : vector<9x9xf32>, vector<9x16xf32>, vector<9x16xf32> -> vector<9x16xf32>
    %324 = vector.extract_strided_slice %264 {offsets = [0, 48], sizes = [9, 16], strides = [1, 1]} : vector<9x64xf32> to vector<9x16xf32>
    %325 = vector.extract_strided_slice %265 {offsets = [0, 48], sizes = [9, 16], strides = [1, 1]} : vector<9x64xf32> to vector<9x16xf32>
    %cst_114 = arith.constant dense<0.000000e+00> : vector<9x9xf32>
    %326 = tpu.matmul %324, %325, %cst_114 {dimension_numbers = #tpu.dot_dimension_numbers<[1], [1], [0], [0], [0, 0, 1, 0], [], []>} : vector<9x16xf32>, vector<9x16xf32>, vector<9x9xf32> -> vector<9x9xf32>
    %cst_115 = arith.constant 2.500000e-01 : f32
    %327 = vector.broadcast %cst_115 : f32 to vector<9x9xf32>
    %328 = arith.mulf %326, %327 : vector<9x9xf32>
    %cst_116 = arith.constant -1.000000e+30 : f32
    %329 = vector.broadcast %cst_116 : f32 to vector<9x9xf32>
    %330 = arith.select %2, %329, %328 : vector<9x9xi1>, vector<9x9xf32>
    %cst_117 = arith.constant dense<0xFF800000> : vector<9xf32>
    %331 = vector.multi_reduction <maximumf>, %330, %cst_117 [1] : vector<9x9xf32> to vector<9xf32>
    %332 = vector.shape_cast %331 : vector<9xf32> to vector<9x1xf32>
    %333 = vector.broadcast %332 : vector<9x1xf32> to vector<9x9xf32>
    %334 = arith.subf %330, %333 : vector<9x9xf32>
    %335 = math.exp %334 : vector<9x9xf32>
    %cst_118 = arith.constant dense<0.000000e+00> : vector<9xf32>
    %336 = vector.multi_reduction <add>, %335, %cst_118 [1] : vector<9x9xf32> to vector<9xf32>
    %337 = vector.shape_cast %336 : vector<9xf32> to vector<9x1xf32>
    %338 = tpu.reciprocal %337 {approx = true} : vector<9x1xf32> -> vector<9x1xf32>
    %339 = vector.broadcast %338 : vector<9x1xf32> to vector<9x9xf32>
    %340 = arith.mulf %335, %339 : vector<9x9xf32>
    %341 = vector.extract_strided_slice %266 {offsets = [0, 48], sizes = [9, 16], strides = [1, 1]} : vector<9x64xf32> to vector<9x16xf32>
    %cst_119 = arith.constant dense<0.000000e+00> : vector<9x16xf32>
    %342 = tpu.matmul %340, %341, %cst_119 {dimension_numbers = #tpu.dot_dimension_numbers<[1], [0], [0], [1], [0, 0, 1, 1], [], []>} : vector<9x9xf32>, vector<9x16xf32>, vector<9x16xf32> -> vector<9x16xf32>
    %343 = tpu.concatenate %285, %304, %323, %342 in 1 : vector<9x16xf32>, vector<9x16xf32>, vector<9x16xf32>, vector<9x16xf32> -> vector<9x64xf32>
    %344 = vector.extract_strided_slice %253 {offsets = [9, 0], sizes = [9, 64], strides = [1, 1]} : vector<18x64xf32> to vector<9x64xf32>
    %345 = vector.extract_strided_slice %258 {offsets = [9, 0], sizes = [9, 64], strides = [1, 1]} : vector<18x64xf32> to vector<9x64xf32>
    %346 = vector.extract_strided_slice %263 {offsets = [9, 0], sizes = [9, 64], strides = [1, 1]} : vector<18x64xf32> to vector<9x64xf32>
    %347 = vector.extract_strided_slice %344 {offsets = [0, 0], sizes = [9, 16], strides = [1, 1]} : vector<9x64xf32> to vector<9x16xf32>
    %348 = vector.extract_strided_slice %345 {offsets = [0, 0], sizes = [9, 16], strides = [1, 1]} : vector<9x64xf32> to vector<9x16xf32>
    %cst_120 = arith.constant dense<0.000000e+00> : vector<9x9xf32>
    %349 = tpu.matmul %347, %348, %cst_120 {dimension_numbers = #tpu.dot_dimension_numbers<[1], [1], [0], [0], [0, 0, 1, 0], [], []>} : vector<9x16xf32>, vector<9x16xf32>, vector<9x9xf32> -> vector<9x9xf32>
    %cst_121 = arith.constant 2.500000e-01 : f32
    %350 = vector.broadcast %cst_121 : f32 to vector<9x9xf32>
    %351 = arith.mulf %349, %350 : vector<9x9xf32>
    %cst_122 = arith.constant -1.000000e+30 : f32
    %352 = vector.broadcast %cst_122 : f32 to vector<9x9xf32>
    %353 = arith.select %2, %352, %351 : vector<9x9xi1>, vector<9x9xf32>
    %cst_123 = arith.constant dense<0xFF800000> : vector<9xf32>
    %354 = vector.multi_reduction <maximumf>, %353, %cst_123 [1] : vector<9x9xf32> to vector<9xf32>
    %355 = vector.shape_cast %354 : vector<9xf32> to vector<9x1xf32>
    %356 = vector.broadcast %355 : vector<9x1xf32> to vector<9x9xf32>
    %357 = arith.subf %353, %356 : vector<9x9xf32>
    %358 = math.exp %357 : vector<9x9xf32>
    %cst_124 = arith.constant dense<0.000000e+00> : vector<9xf32>
    %359 = vector.multi_reduction <add>, %358, %cst_124 [1] : vector<9x9xf32> to vector<9xf32>
    %360 = vector.shape_cast %359 : vector<9xf32> to vector<9x1xf32>
    %361 = tpu.reciprocal %360 {approx = true} : vector<9x1xf32> -> vector<9x1xf32>
    %362 = vector.broadcast %361 : vector<9x1xf32> to vector<9x9xf32>
    %363 = arith.mulf %358, %362 : vector<9x9xf32>
    %364 = vector.extract_strided_slice %346 {offsets = [0, 0], sizes = [9, 16], strides = [1, 1]} : vector<9x64xf32> to vector<9x16xf32>
    %cst_125 = arith.constant dense<0.000000e+00> : vector<9x16xf32>
    %365 = tpu.matmul %363, %364, %cst_125 {dimension_numbers = #tpu.dot_dimension_numbers<[1], [0], [0], [1], [0, 0, 1, 1], [], []>} : vector<9x9xf32>, vector<9x16xf32>, vector<9x16xf32> -> vector<9x16xf32>
    %366 = vector.extract_strided_slice %344 {offsets = [0, 16], sizes = [9, 16], strides = [1, 1]} : vector<9x64xf32> to vector<9x16xf32>
    %367 = vector.extract_strided_slice %345 {offsets = [0, 16], sizes = [9, 16], strides = [1, 1]} : vector<9x64xf32> to vector<9x16xf32>
    %cst_126 = arith.constant dense<0.000000e+00> : vector<9x9xf32>
    %368 = tpu.matmul %366, %367, %cst_126 {dimension_numbers = #tpu.dot_dimension_numbers<[1], [1], [0], [0], [0, 0, 1, 0], [], []>} : vector<9x16xf32>, vector<9x16xf32>, vector<9x9xf32> -> vector<9x9xf32>
    %cst_127 = arith.constant 2.500000e-01 : f32
    %369 = vector.broadcast %cst_127 : f32 to vector<9x9xf32>
    %370 = arith.mulf %368, %369 : vector<9x9xf32>
    %cst_128 = arith.constant -1.000000e+30 : f32
    %371 = vector.broadcast %cst_128 : f32 to vector<9x9xf32>
    %372 = arith.select %2, %371, %370 : vector<9x9xi1>, vector<9x9xf32>
    %cst_129 = arith.constant dense<0xFF800000> : vector<9xf32>
    %373 = vector.multi_reduction <maximumf>, %372, %cst_129 [1] : vector<9x9xf32> to vector<9xf32>
    %374 = vector.shape_cast %373 : vector<9xf32> to vector<9x1xf32>
    %375 = vector.broadcast %374 : vector<9x1xf32> to vector<9x9xf32>
    %376 = arith.subf %372, %375 : vector<9x9xf32>
    %377 = math.exp %376 : vector<9x9xf32>
    %cst_130 = arith.constant dense<0.000000e+00> : vector<9xf32>
    %378 = vector.multi_reduction <add>, %377, %cst_130 [1] : vector<9x9xf32> to vector<9xf32>
    %379 = vector.shape_cast %378 : vector<9xf32> to vector<9x1xf32>
    %380 = tpu.reciprocal %379 {approx = true} : vector<9x1xf32> -> vector<9x1xf32>
    %381 = vector.broadcast %380 : vector<9x1xf32> to vector<9x9xf32>
    %382 = arith.mulf %377, %381 : vector<9x9xf32>
    %383 = vector.extract_strided_slice %346 {offsets = [0, 16], sizes = [9, 16], strides = [1, 1]} : vector<9x64xf32> to vector<9x16xf32>
    %cst_131 = arith.constant dense<0.000000e+00> : vector<9x16xf32>
    %384 = tpu.matmul %382, %383, %cst_131 {dimension_numbers = #tpu.dot_dimension_numbers<[1], [0], [0], [1], [0, 0, 1, 1], [], []>} : vector<9x9xf32>, vector<9x16xf32>, vector<9x16xf32> -> vector<9x16xf32>
    %385 = vector.extract_strided_slice %344 {offsets = [0, 32], sizes = [9, 16], strides = [1, 1]} : vector<9x64xf32> to vector<9x16xf32>
    %386 = vector.extract_strided_slice %345 {offsets = [0, 32], sizes = [9, 16], strides = [1, 1]} : vector<9x64xf32> to vector<9x16xf32>
    %cst_132 = arith.constant dense<0.000000e+00> : vector<9x9xf32>
    %387 = tpu.matmul %385, %386, %cst_132 {dimension_numbers = #tpu.dot_dimension_numbers<[1], [1], [0], [0], [0, 0, 1, 0], [], []>} : vector<9x16xf32>, vector<9x16xf32>, vector<9x9xf32> -> vector<9x9xf32>
    %cst_133 = arith.constant 2.500000e-01 : f32
    %388 = vector.broadcast %cst_133 : f32 to vector<9x9xf32>
    %389 = arith.mulf %387, %388 : vector<9x9xf32>
    %cst_134 = arith.constant -1.000000e+30 : f32
    %390 = vector.broadcast %cst_134 : f32 to vector<9x9xf32>
    %391 = arith.select %2, %390, %389 : vector<9x9xi1>, vector<9x9xf32>
    %cst_135 = arith.constant dense<0xFF800000> : vector<9xf32>
    %392 = vector.multi_reduction <maximumf>, %391, %cst_135 [1] : vector<9x9xf32> to vector<9xf32>
    %393 = vector.shape_cast %392 : vector<9xf32> to vector<9x1xf32>
    %394 = vector.broadcast %393 : vector<9x1xf32> to vector<9x9xf32>
    %395 = arith.subf %391, %394 : vector<9x9xf32>
    %396 = math.exp %395 : vector<9x9xf32>
    %cst_136 = arith.constant dense<0.000000e+00> : vector<9xf32>
    %397 = vector.multi_reduction <add>, %396, %cst_136 [1] : vector<9x9xf32> to vector<9xf32>
    %398 = vector.shape_cast %397 : vector<9xf32> to vector<9x1xf32>
    %399 = tpu.reciprocal %398 {approx = true} : vector<9x1xf32> -> vector<9x1xf32>
    %400 = vector.broadcast %399 : vector<9x1xf32> to vector<9x9xf32>
    %401 = arith.mulf %396, %400 : vector<9x9xf32>
    %402 = vector.extract_strided_slice %346 {offsets = [0, 32], sizes = [9, 16], strides = [1, 1]} : vector<9x64xf32> to vector<9x16xf32>
    %cst_137 = arith.constant dense<0.000000e+00> : vector<9x16xf32>
    %403 = tpu.matmul %401, %402, %cst_137 {dimension_numbers = #tpu.dot_dimension_numbers<[1], [0], [0], [1], [0, 0, 1, 1], [], []>} : vector<9x9xf32>, vector<9x16xf32>, vector<9x16xf32> -> vector<9x16xf32>
    %404 = vector.extract_strided_slice %344 {offsets = [0, 48], sizes = [9, 16], strides = [1, 1]} : vector<9x64xf32> to vector<9x16xf32>
    %405 = vector.extract_strided_slice %345 {offsets = [0, 48], sizes = [9, 16], strides = [1, 1]} : vector<9x64xf32> to vector<9x16xf32>
    %cst_138 = arith.constant dense<0.000000e+00> : vector<9x9xf32>
    %406 = tpu.matmul %404, %405, %cst_138 {dimension_numbers = #tpu.dot_dimension_numbers<[1], [1], [0], [0], [0, 0, 1, 0], [], []>} : vector<9x16xf32>, vector<9x16xf32>, vector<9x9xf32> -> vector<9x9xf32>
    %cst_139 = arith.constant 2.500000e-01 : f32
    %407 = vector.broadcast %cst_139 : f32 to vector<9x9xf32>
    %408 = arith.mulf %406, %407 : vector<9x9xf32>
    %cst_140 = arith.constant -1.000000e+30 : f32
    %409 = vector.broadcast %cst_140 : f32 to vector<9x9xf32>
    %410 = arith.select %2, %409, %408 : vector<9x9xi1>, vector<9x9xf32>
    %cst_141 = arith.constant dense<0xFF800000> : vector<9xf32>
    %411 = vector.multi_reduction <maximumf>, %410, %cst_141 [1] : vector<9x9xf32> to vector<9xf32>
    %412 = vector.shape_cast %411 : vector<9xf32> to vector<9x1xf32>
    %413 = vector.broadcast %412 : vector<9x1xf32> to vector<9x9xf32>
    %414 = arith.subf %410, %413 : vector<9x9xf32>
    %415 = math.exp %414 : vector<9x9xf32>
    %cst_142 = arith.constant dense<0.000000e+00> : vector<9xf32>
    %416 = vector.multi_reduction <add>, %415, %cst_142 [1] : vector<9x9xf32> to vector<9xf32>
    %417 = vector.shape_cast %416 : vector<9xf32> to vector<9x1xf32>
    %418 = tpu.reciprocal %417 {approx = true} : vector<9x1xf32> -> vector<9x1xf32>
    %419 = vector.broadcast %418 : vector<9x1xf32> to vector<9x9xf32>
    %420 = arith.mulf %415, %419 : vector<9x9xf32>
    %421 = vector.extract_strided_slice %346 {offsets = [0, 48], sizes = [9, 16], strides = [1, 1]} : vector<9x64xf32> to vector<9x16xf32>
    %cst_143 = arith.constant dense<0.000000e+00> : vector<9x16xf32>
    %422 = tpu.matmul %420, %421, %cst_143 {dimension_numbers = #tpu.dot_dimension_numbers<[1], [0], [0], [1], [0, 0, 1, 1], [], []>} : vector<9x9xf32>, vector<9x16xf32>, vector<9x16xf32> -> vector<9x16xf32>
    %423 = tpu.concatenate %365, %384, %403, %422 in 1 : vector<9x16xf32>, vector<9x16xf32>, vector<9x16xf32>, vector<9x16xf32> -> vector<9x64xf32>
    %424 = tpu.concatenate %343, %423 in 0 : vector<9x64xf32>, vector<9x64xf32> -> vector<18x64xf32>
    %c1600 = arith.constant 1600 : index
    %c0_144 = arith.constant 0 : index
    %425 = vector.load %arg2[%c1600, %c0_144] : memref<2176x128xf32, #tpu.memory_space<vmem>>, vector<64x64xf32>
    %cst_145 = arith.constant dense<0.000000e+00> : vector<18x64xf32>
    %426 = tpu.matmul %424, %425, %cst_145 {dimension_numbers = #tpu.dot_dimension_numbers<[1], [0], [0], [1], [0, 0, 1, 1], [], []>} : vector<18x64xf32>, vector<64x64xf32>, vector<18x64xf32> -> vector<18x64xf32>
    %c272 = arith.constant 272 : index
    %c0_146 = arith.constant 0 : index
    %427 = vector.load %arg3[%c272, %c0_146] : memref<384x128xf32, #tpu.memory_space<vmem>>, vector<1x64xf32>
    %428 = vector.broadcast %427 : vector<1x64xf32> to vector<18x64xf32>
    %429 = arith.addf %426, %428 : vector<18x64xf32>
    %430 = arith.addf %429, %248 : vector<18x64xf32>
    %cst_147 = arith.constant dense<0.000000e+00> : vector<18xf32>
    %431 = vector.multi_reduction <add>, %430, %cst_147 [1] : vector<18x64xf32> to vector<18xf32>
    %432 = vector.shape_cast %431 : vector<18xf32> to vector<18x1xf32>
    %cst_148 = arith.constant 6.400000e+01 : f32
    %433 = vector.broadcast %cst_148 : f32 to vector<18x1xf32>
    %434 = arith.divf %432, %433 : vector<18x1xf32>
    %435 = vector.broadcast %434 : vector<18x1xf32> to vector<18x64xf32>
    %436 = arith.subf %430, %435 : vector<18x64xf32>
    %437 = arith.mulf %436, %436 : vector<18x64xf32>
    %cst_149 = arith.constant dense<0.000000e+00> : vector<18xf32>
    %438 = vector.multi_reduction <add>, %437, %cst_149 [1] : vector<18x64xf32> to vector<18xf32>
    %439 = vector.shape_cast %438 : vector<18xf32> to vector<18x1xf32>
    %cst_150 = arith.constant 6.400000e+01 : f32
    %440 = vector.broadcast %cst_150 : f32 to vector<18x1xf32>
    %441 = arith.divf %439, %440 : vector<18x1xf32>
    %442 = vector.broadcast %434 : vector<18x1xf32> to vector<18x64xf32>
    %443 = arith.subf %430, %442 : vector<18x64xf32>
    %cst_151 = arith.constant 9.99999974E-6 : f32
    %444 = vector.broadcast %cst_151 : f32 to vector<18x1xf32>
    %445 = arith.addf %441, %444 : vector<18x1xf32>
    %446 = math.rsqrt %445 : vector<18x1xf32>
    %447 = vector.broadcast %446 : vector<18x1xf32> to vector<18x64xf32>
    %448 = arith.mulf %443, %447 : vector<18x64xf32>
    %c280 = arith.constant 280 : index
    %c0_152 = arith.constant 0 : index
    %449 = vector.load %arg3[%c280, %c0_152] : memref<384x128xf32, #tpu.memory_space<vmem>>, vector<1x64xf32>
    %450 = vector.broadcast %449 : vector<1x64xf32> to vector<18x64xf32>
    %451 = arith.mulf %448, %450 : vector<18x64xf32>
    %c288 = arith.constant 288 : index
    %c0_153 = arith.constant 0 : index
    %452 = vector.load %arg3[%c288, %c0_153] : memref<384x128xf32, #tpu.memory_space<vmem>>, vector<1x64xf32>
    %453 = vector.broadcast %452 : vector<1x64xf32> to vector<18x64xf32>
    %454 = arith.addf %451, %453 : vector<18x64xf32>
    %c1664 = arith.constant 1664 : index
    %c0_154 = arith.constant 0 : index
    %455 = vector.load %arg2[%c1664, %c0_154] : memref<2176x128xf32, #tpu.memory_space<vmem>>, vector<64x64xf32>
    %cst_155 = arith.constant dense<0.000000e+00> : vector<18x64xf32>
    %456 = tpu.matmul %454, %455, %cst_155 {dimension_numbers = #tpu.dot_dimension_numbers<[1], [0], [0], [1], [0, 0, 1, 1], [], []>} : vector<18x64xf32>, vector<64x64xf32>, vector<18x64xf32> -> vector<18x64xf32>
    %c296 = arith.constant 296 : index
    %c0_156 = arith.constant 0 : index
    %457 = vector.load %arg3[%c296, %c0_156] : memref<384x128xf32, #tpu.memory_space<vmem>>, vector<1x64xf32>
    %458 = vector.broadcast %457 : vector<1x64xf32> to vector<18x64xf32>
    %459 = arith.addf %456, %458 : vector<18x64xf32>
    %c1728 = arith.constant 1728 : index
    %c0_157 = arith.constant 0 : index
    %460 = vector.load %arg2[%c1728, %c0_157] : memref<2176x128xf32, #tpu.memory_space<vmem>>, vector<64x64xf32>
    %cst_158 = arith.constant dense<0.000000e+00> : vector<16x64xf32>
    %461 = tpu.matmul %239, %460, %cst_158 {dimension_numbers = #tpu.dot_dimension_numbers<[1], [0], [0], [1], [0, 0, 1, 1], [], []>} : vector<16x64xf32>, vector<64x64xf32>, vector<16x64xf32> -> vector<16x64xf32>
    %c304 = arith.constant 304 : index
    %c0_159 = arith.constant 0 : index
    %462 = vector.load %arg3[%c304, %c0_159] : memref<384x128xf32, #tpu.memory_space<vmem>>, vector<1x64xf32>
    %463 = vector.broadcast %462 : vector<1x64xf32> to vector<16x64xf32>
    %464 = arith.addf %461, %463 : vector<16x64xf32>
    %c1792 = arith.constant 1792 : index
    %c0_160 = arith.constant 0 : index
    %465 = vector.load %arg2[%c1792, %c0_160] : memref<2176x128xf32, #tpu.memory_space<vmem>>, vector<64x64xf32>
    %cst_161 = arith.constant dense<0.000000e+00> : vector<16x64xf32>
    %466 = tpu.matmul %239, %465, %cst_161 {dimension_numbers = #tpu.dot_dimension_numbers<[1], [0], [0], [1], [0, 0, 1, 1], [], []>} : vector<16x64xf32>, vector<64x64xf32>, vector<16x64xf32> -> vector<16x64xf32>
    %c312 = arith.constant 312 : index
    %c0_162 = arith.constant 0 : index
    %467 = vector.load %arg3[%c312, %c0_162] : memref<384x128xf32, #tpu.memory_space<vmem>>, vector<1x64xf32>
    %468 = vector.broadcast %467 : vector<1x64xf32> to vector<16x64xf32>
    %469 = arith.addf %466, %468 : vector<16x64xf32>
    %470 = vector.extract_strided_slice %459 {offsets = [0, 0], sizes = [9, 64], strides = [1, 1]} : vector<18x64xf32> to vector<9x64xf32>
    %471 = vector.extract_strided_slice %464 {offsets = [0, 0], sizes = [8, 64], strides = [1, 1]} : vector<16x64xf32> to vector<8x64xf32>
    %472 = vector.extract_strided_slice %469 {offsets = [0, 0], sizes = [8, 64], strides = [1, 1]} : vector<16x64xf32> to vector<8x64xf32>
    %473 = vector.extract_strided_slice %470 {offsets = [0, 0], sizes = [9, 16], strides = [1, 1]} : vector<9x64xf32> to vector<9x16xf32>
    %474 = vector.extract_strided_slice %471 {offsets = [0, 0], sizes = [8, 16], strides = [1, 1]} : vector<8x64xf32> to vector<8x16xf32>
    %cst_163 = arith.constant dense<0.000000e+00> : vector<9x8xf32>
    %475 = tpu.matmul %473, %474, %cst_163 {dimension_numbers = #tpu.dot_dimension_numbers<[1], [1], [0], [0], [0, 0, 1, 0], [], []>} : vector<9x16xf32>, vector<8x16xf32>, vector<9x8xf32> -> vector<9x8xf32>
    %cst_164 = arith.constant 2.500000e-01 : f32
    %476 = vector.broadcast %cst_164 : f32 to vector<9x8xf32>
    %477 = arith.mulf %475, %476 : vector<9x8xf32>
    %cst_165 = arith.constant dense<0xFF800000> : vector<9xf32>
    %478 = vector.multi_reduction <maximumf>, %477, %cst_165 [1] : vector<9x8xf32> to vector<9xf32>
    %479 = vector.shape_cast %478 : vector<9xf32> to vector<9x1xf32>
    %480 = vector.broadcast %479 : vector<9x1xf32> to vector<9x8xf32>
    %481 = arith.subf %477, %480 : vector<9x8xf32>
    %482 = math.exp %481 : vector<9x8xf32>
    %cst_166 = arith.constant dense<0.000000e+00> : vector<9xf32>
    %483 = vector.multi_reduction <add>, %482, %cst_166 [1] : vector<9x8xf32> to vector<9xf32>
    %484 = vector.shape_cast %483 : vector<9xf32> to vector<9x1xf32>
    %485 = tpu.reciprocal %484 {approx = true} : vector<9x1xf32> -> vector<9x1xf32>
    %486 = vector.broadcast %485 : vector<9x1xf32> to vector<9x8xf32>
    %487 = arith.mulf %482, %486 : vector<9x8xf32>
    %488 = tpu.concatenate %487, %3 in 1 : vector<9x8xf32>, vector<9x120xf32> -> vector<9x128xf32>
    %c0_167 = arith.constant 0 : index
    %c0_168 = arith.constant 0 : index
    %c0_169 = arith.constant 0 : index
    %c0_170 = arith.constant 0 : index
    %489 = vector.load %arg5[%c0_167, %c0_168, %c0_169, %c0_170] : memref<2x4x9x128xf32, #tpu.memory_space<vmem>>, vector<1x1x9x128xf32>
    %490 = vector.shape_cast %489 : vector<1x1x9x128xf32> to vector<9x128xf32>
    %491 = vector.shape_cast %488 : vector<9x128xf32> to vector<1x1x9x128xf32>
    tpu.vector_store %arg5[%c0_167, %c0_168, %c0_169, %c0_170], %491 {strides = array<i32>} : memref<2x4x9x128xf32, #tpu.memory_space<vmem>>, vector<1x1x9x128xf32>,
    %492 = vector.extract_strided_slice %472 {offsets = [0, 0], sizes = [8, 16], strides = [1, 1]} : vector<8x64xf32> to vector<8x16xf32>
    %cst_171 = arith.constant dense<0.000000e+00> : vector<9x16xf32>
    %493 = tpu.matmul %487, %492, %cst_171 {dimension_numbers = #tpu.dot_dimension_numbers<[1], [0], [0], [1], [0, 0, 1, 1], [], []>} : vector<9x8xf32>, vector<8x16xf32>, vector<9x16xf32> -> vector<9x16xf32>
    %494 = vector.extract_strided_slice %470 {offsets = [0, 16], sizes = [9, 16], strides = [1, 1]} : vector<9x64xf32> to vector<9x16xf32>
    %495 = vector.extract_strided_slice %471 {offsets = [0, 16], sizes = [8, 16], strides = [1, 1]} : vector<8x64xf32> to vector<8x16xf32>
    %cst_172 = arith.constant dense<0.000000e+00> : vector<9x8xf32>
    %496 = tpu.matmul %494, %495, %cst_172 {dimension_numbers = #tpu.dot_dimension_numbers<[1], [1], [0], [0], [0, 0, 1, 0], [], []>} : vector<9x16xf32>, vector<8x16xf32>, vector<9x8xf32> -> vector<9x8xf32>
    %cst_173 = arith.constant 2.500000e-01 : f32
    %497 = vector.broadcast %cst_173 : f32 to vector<9x8xf32>
    %498 = arith.mulf %496, %497 : vector<9x8xf32>
    %cst_174 = arith.constant dense<0xFF800000> : vector<9xf32>
    %499 = vector.multi_reduction <maximumf>, %498, %cst_174 [1] : vector<9x8xf32> to vector<9xf32>
    %500 = vector.shape_cast %499 : vector<9xf32> to vector<9x1xf32>
    %501 = vector.broadcast %500 : vector<9x1xf32> to vector<9x8xf32>
    %502 = arith.subf %498, %501 : vector<9x8xf32>
    %503 = math.exp %502 : vector<9x8xf32>
    %cst_175 = arith.constant dense<0.000000e+00> : vector<9xf32>
    %504 = vector.multi_reduction <add>, %503, %cst_175 [1] : vector<9x8xf32> to vector<9xf32>
    %505 = vector.shape_cast %504 : vector<9xf32> to vector<9x1xf32>
    %506 = tpu.reciprocal %505 {approx = true} : vector<9x1xf32> -> vector<9x1xf32>
    %507 = vector.broadcast %506 : vector<9x1xf32> to vector<9x8xf32>
    %508 = arith.mulf %503, %507 : vector<9x8xf32>
    %509 = tpu.concatenate %508, %3 in 1 : vector<9x8xf32>, vector<9x120xf32> -> vector<9x128xf32>
    %c0_176 = arith.constant 0 : index
    %c1 = arith.constant 1 : index
    %c0_177 = arith.constant 0 : index
    %c0_178 = arith.constant 0 : index
    %510 = vector.load %arg5[%c0_176, %c1, %c0_177, %c0_178] : memref<2x4x9x128xf32, #tpu.memory_space<vmem>>, vector<1x1x9x128xf32>
    %511 = vector.shape_cast %510 : vector<1x1x9x128xf32> to vector<9x128xf32>
    %512 = vector.shape_cast %509 : vector<9x128xf32> to vector<1x1x9x128xf32>
    tpu.vector_store %arg5[%c0_176, %c1, %c0_177, %c0_178], %512 {strides = array<i32>} : memref<2x4x9x128xf32, #tpu.memory_space<vmem>>, vector<1x1x9x128xf32>,
    %513 = vector.extract_strided_slice %472 {offsets = [0, 16], sizes = [8, 16], strides = [1, 1]} : vector<8x64xf32> to vector<8x16xf32>
    %cst_179 = arith.constant dense<0.000000e+00> : vector<9x16xf32>
    %514 = tpu.matmul %508, %513, %cst_179 {dimension_numbers = #tpu.dot_dimension_numbers<[1], [0], [0], [1], [0, 0, 1, 1], [], []>} : vector<9x8xf32>, vector<8x16xf32>, vector<9x16xf32> -> vector<9x16xf32>
    %515 = vector.extract_strided_slice %470 {offsets = [0, 32], sizes = [9, 16], strides = [1, 1]} : vector<9x64xf32> to vector<9x16xf32>
    %516 = vector.extract_strided_slice %471 {offsets = [0, 32], sizes = [8, 16], strides = [1, 1]} : vector<8x64xf32> to vector<8x16xf32>
    %cst_180 = arith.constant dense<0.000000e+00> : vector<9x8xf32>
    %517 = tpu.matmul %515, %516, %cst_180 {dimension_numbers = #tpu.dot_dimension_numbers<[1], [1], [0], [0], [0, 0, 1, 0], [], []>} : vector<9x16xf32>, vector<8x16xf32>, vector<9x8xf32> -> vector<9x8xf32>
    %cst_181 = arith.constant 2.500000e-01 : f32
    %518 = vector.broadcast %cst_181 : f32 to vector<9x8xf32>
    %519 = arith.mulf %517, %518 : vector<9x8xf32>
    %cst_182 = arith.constant dense<0xFF800000> : vector<9xf32>
    %520 = vector.multi_reduction <maximumf>, %519, %cst_182 [1] : vector<9x8xf32> to vector<9xf32>
    %521 = vector.shape_cast %520 : vector<9xf32> to vector<9x1xf32>
    %522 = vector.broadcast %521 : vector<9x1xf32> to vector<9x8xf32>
    %523 = arith.subf %519, %522 : vector<9x8xf32>
    %524 = math.exp %523 : vector<9x8xf32>
    %cst_183 = arith.constant dense<0.000000e+00> : vector<9xf32>
    %525 = vector.multi_reduction <add>, %524, %cst_183 [1] : vector<9x8xf32> to vector<9xf32>
    %526 = vector.shape_cast %525 : vector<9xf32> to vector<9x1xf32>
    %527 = tpu.reciprocal %526 {approx = true} : vector<9x1xf32> -> vector<9x1xf32>
    %528 = vector.broadcast %527 : vector<9x1xf32> to vector<9x8xf32>
    %529 = arith.mulf %524, %528 : vector<9x8xf32>
    %530 = tpu.concatenate %529, %3 in 1 : vector<9x8xf32>, vector<9x120xf32> -> vector<9x128xf32>
    %c0_184 = arith.constant 0 : index
    %c2 = arith.constant 2 : index
    %c0_185 = arith.constant 0 : index
    %c0_186 = arith.constant 0 : index
    %531 = vector.load %arg5[%c0_184, %c2, %c0_185, %c0_186] : memref<2x4x9x128xf32, #tpu.memory_space<vmem>>, vector<1x1x9x128xf32>
    %532 = vector.shape_cast %531 : vector<1x1x9x128xf32> to vector<9x128xf32>
    %533 = vector.shape_cast %530 : vector<9x128xf32> to vector<1x1x9x128xf32>
    tpu.vector_store %arg5[%c0_184, %c2, %c0_185, %c0_186], %533 {strides = array<i32>} : memref<2x4x9x128xf32, #tpu.memory_space<vmem>>, vector<1x1x9x128xf32>,
    %534 = vector.extract_strided_slice %472 {offsets = [0, 32], sizes = [8, 16], strides = [1, 1]} : vector<8x64xf32> to vector<8x16xf32>
    %cst_187 = arith.constant dense<0.000000e+00> : vector<9x16xf32>
    %535 = tpu.matmul %529, %534, %cst_187 {dimension_numbers = #tpu.dot_dimension_numbers<[1], [0], [0], [1], [0, 0, 1, 1], [], []>} : vector<9x8xf32>, vector<8x16xf32>, vector<9x16xf32> -> vector<9x16xf32>
    %536 = vector.extract_strided_slice %470 {offsets = [0, 48], sizes = [9, 16], strides = [1, 1]} : vector<9x64xf32> to vector<9x16xf32>
    %537 = vector.extract_strided_slice %471 {offsets = [0, 48], sizes = [8, 16], strides = [1, 1]} : vector<8x64xf32> to vector<8x16xf32>
    %cst_188 = arith.constant dense<0.000000e+00> : vector<9x8xf32>
    %538 = tpu.matmul %536, %537, %cst_188 {dimension_numbers = #tpu.dot_dimension_numbers<[1], [1], [0], [0], [0, 0, 1, 0], [], []>} : vector<9x16xf32>, vector<8x16xf32>, vector<9x8xf32> -> vector<9x8xf32>
    %cst_189 = arith.constant 2.500000e-01 : f32
    %539 = vector.broadcast %cst_189 : f32 to vector<9x8xf32>
    %540 = arith.mulf %538, %539 : vector<9x8xf32>
    %cst_190 = arith.constant dense<0xFF800000> : vector<9xf32>
    %541 = vector.multi_reduction <maximumf>, %540, %cst_190 [1] : vector<9x8xf32> to vector<9xf32>
    %542 = vector.shape_cast %541 : vector<9xf32> to vector<9x1xf32>
    %543 = vector.broadcast %542 : vector<9x1xf32> to vector<9x8xf32>
    %544 = arith.subf %540, %543 : vector<9x8xf32>
    %545 = math.exp %544 : vector<9x8xf32>
    %cst_191 = arith.constant dense<0.000000e+00> : vector<9xf32>
    %546 = vector.multi_reduction <add>, %545, %cst_191 [1] : vector<9x8xf32> to vector<9xf32>
    %547 = vector.shape_cast %546 : vector<9xf32> to vector<9x1xf32>
    %548 = tpu.reciprocal %547 {approx = true} : vector<9x1xf32> -> vector<9x1xf32>
    %549 = vector.broadcast %548 : vector<9x1xf32> to vector<9x8xf32>
    %550 = arith.mulf %545, %549 : vector<9x8xf32>
    %551 = tpu.concatenate %550, %3 in 1 : vector<9x8xf32>, vector<9x120xf32> -> vector<9x128xf32>
    %c0_192 = arith.constant 0 : index
    %c3 = arith.constant 3 : index
    %c0_193 = arith.constant 0 : index
    %c0_194 = arith.constant 0 : index
    %552 = vector.load %arg5[%c0_192, %c3, %c0_193, %c0_194] : memref<2x4x9x128xf32, #tpu.memory_space<vmem>>, vector<1x1x9x128xf32>
    %553 = vector.shape_cast %552 : vector<1x1x9x128xf32> to vector<9x128xf32>
    %554 = vector.shape_cast %551 : vector<9x128xf32> to vector<1x1x9x128xf32>
    tpu.vector_store %arg5[%c0_192, %c3, %c0_193, %c0_194], %554 {strides = array<i32>} : memref<2x4x9x128xf32, #tpu.memory_space<vmem>>, vector<1x1x9x128xf32>,
    %555 = vector.extract_strided_slice %472 {offsets = [0, 48], sizes = [8, 16], strides = [1, 1]} : vector<8x64xf32> to vector<8x16xf32>
    %cst_195 = arith.constant dense<0.000000e+00> : vector<9x16xf32>
    %556 = tpu.matmul %550, %555, %cst_195 {dimension_numbers = #tpu.dot_dimension_numbers<[1], [0], [0], [1], [0, 0, 1, 1], [], []>} : vector<9x8xf32>, vector<8x16xf32>, vector<9x16xf32> -> vector<9x16xf32>
    %557 = tpu.concatenate %493, %514, %535, %556 in 1 : vector<9x16xf32>, vector<9x16xf32>, vector<9x16xf32>, vector<9x16xf32> -> vector<9x64xf32>
    %558 = vector.extract_strided_slice %459 {offsets = [9, 0], sizes = [9, 64], strides = [1, 1]} : vector<18x64xf32> to vector<9x64xf32>
    %559 = vector.extract_strided_slice %464 {offsets = [8, 0], sizes = [8, 64], strides = [1, 1]} : vector<16x64xf32> to vector<8x64xf32>
    %560 = vector.extract_strided_slice %469 {offsets = [8, 0], sizes = [8, 64], strides = [1, 1]} : vector<16x64xf32> to vector<8x64xf32>
    %561 = vector.extract_strided_slice %558 {offsets = [0, 0], sizes = [9, 16], strides = [1, 1]} : vector<9x64xf32> to vector<9x16xf32>
    %562 = vector.extract_strided_slice %559 {offsets = [0, 0], sizes = [8, 16], strides = [1, 1]} : vector<8x64xf32> to vector<8x16xf32>
    %cst_196 = arith.constant dense<0.000000e+00> : vector<9x8xf32>
    %563 = tpu.matmul %561, %562, %cst_196 {dimension_numbers = #tpu.dot_dimension_numbers<[1], [1], [0], [0], [0, 0, 1, 0], [], []>} : vector<9x16xf32>, vector<8x16xf32>, vector<9x8xf32> -> vector<9x8xf32>
    %cst_197 = arith.constant 2.500000e-01 : f32
    %564 = vector.broadcast %cst_197 : f32 to vector<9x8xf32>
    %565 = arith.mulf %563, %564 : vector<9x8xf32>
    %cst_198 = arith.constant dense<0xFF800000> : vector<9xf32>
    %566 = vector.multi_reduction <maximumf>, %565, %cst_198 [1] : vector<9x8xf32> to vector<9xf32>
    %567 = vector.shape_cast %566 : vector<9xf32> to vector<9x1xf32>
    %568 = vector.broadcast %567 : vector<9x1xf32> to vector<9x8xf32>
    %569 = arith.subf %565, %568 : vector<9x8xf32>
    %570 = math.exp %569 : vector<9x8xf32>
    %cst_199 = arith.constant dense<0.000000e+00> : vector<9xf32>
    %571 = vector.multi_reduction <add>, %570, %cst_199 [1] : vector<9x8xf32> to vector<9xf32>
    %572 = vector.shape_cast %571 : vector<9xf32> to vector<9x1xf32>
    %573 = tpu.reciprocal %572 {approx = true} : vector<9x1xf32> -> vector<9x1xf32>
    %574 = vector.broadcast %573 : vector<9x1xf32> to vector<9x8xf32>
    %575 = arith.mulf %570, %574 : vector<9x8xf32>
    %576 = tpu.concatenate %575, %3 in 1 : vector<9x8xf32>, vector<9x120xf32> -> vector<9x128xf32>
    %c1_200 = arith.constant 1 : index
    %c0_201 = arith.constant 0 : index
    %c0_202 = arith.constant 0 : index
    %c0_203 = arith.constant 0 : index
    %577 = vector.load %arg5[%c1_200, %c0_201, %c0_202, %c0_203] : memref<2x4x9x128xf32, #tpu.memory_space<vmem>>, vector<1x1x9x128xf32>
    %578 = vector.shape_cast %577 : vector<1x1x9x128xf32> to vector<9x128xf32>
    %579 = vector.shape_cast %576 : vector<9x128xf32> to vector<1x1x9x128xf32>
    tpu.vector_store %arg5[%c1_200, %c0_201, %c0_202, %c0_203], %579 {strides = array<i32>} : memref<2x4x9x128xf32, #tpu.memory_space<vmem>>, vector<1x1x9x128xf32>,
    %580 = vector.extract_strided_slice %560 {offsets = [0, 0], sizes = [8, 16], strides = [1, 1]} : vector<8x64xf32> to vector<8x16xf32>
    %cst_204 = arith.constant dense<0.000000e+00> : vector<9x16xf32>
    %581 = tpu.matmul %575, %580, %cst_204 {dimension_numbers = #tpu.dot_dimension_numbers<[1], [0], [0], [1], [0, 0, 1, 1], [], []>} : vector<9x8xf32>, vector<8x16xf32>, vector<9x16xf32> -> vector<9x16xf32>
    %582 = vector.extract_strided_slice %558 {offsets = [0, 16], sizes = [9, 16], strides = [1, 1]} : vector<9x64xf32> to vector<9x16xf32>
    %583 = vector.extract_strided_slice %559 {offsets = [0, 16], sizes = [8, 16], strides = [1, 1]} : vector<8x64xf32> to vector<8x16xf32>
    %cst_205 = arith.constant dense<0.000000e+00> : vector<9x8xf32>
    %584 = tpu.matmul %582, %583, %cst_205 {dimension_numbers = #tpu.dot_dimension_numbers<[1], [1], [0], [0], [0, 0, 1, 0], [], []>} : vector<9x16xf32>, vector<8x16xf32>, vector<9x8xf32> -> vector<9x8xf32>
    %cst_206 = arith.constant 2.500000e-01 : f32
    %585 = vector.broadcast %cst_206 : f32 to vector<9x8xf32>
    %586 = arith.mulf %584, %585 : vector<9x8xf32>
    %cst_207 = arith.constant dense<0xFF800000> : vector<9xf32>
    %587 = vector.multi_reduction <maximumf>, %586, %cst_207 [1] : vector<9x8xf32> to vector<9xf32>
    %588 = vector.shape_cast %587 : vector<9xf32> to vector<9x1xf32>
    %589 = vector.broadcast %588 : vector<9x1xf32> to vector<9x8xf32>
    %590 = arith.subf %586, %589 : vector<9x8xf32>
    %591 = math.exp %590 : vector<9x8xf32>
    %cst_208 = arith.constant dense<0.000000e+00> : vector<9xf32>
    %592 = vector.multi_reduction <add>, %591, %cst_208 [1] : vector<9x8xf32> to vector<9xf32>
    %593 = vector.shape_cast %592 : vector<9xf32> to vector<9x1xf32>
    %594 = tpu.reciprocal %593 {approx = true} : vector<9x1xf32> -> vector<9x1xf32>
    %595 = vector.broadcast %594 : vector<9x1xf32> to vector<9x8xf32>
    %596 = arith.mulf %591, %595 : vector<9x8xf32>
    %597 = tpu.concatenate %596, %3 in 1 : vector<9x8xf32>, vector<9x120xf32> -> vector<9x128xf32>
    %c1_209 = arith.constant 1 : index
    %c1_210 = arith.constant 1 : index
    %c0_211 = arith.constant 0 : index
    %c0_212 = arith.constant 0 : index
    %598 = vector.load %arg5[%c1_209, %c1_210, %c0_211, %c0_212] : memref<2x4x9x128xf32, #tpu.memory_space<vmem>>, vector<1x1x9x128xf32>
    %599 = vector.shape_cast %598 : vector<1x1x9x128xf32> to vector<9x128xf32>
    %600 = vector.shape_cast %597 : vector<9x128xf32> to vector<1x1x9x128xf32>
    tpu.vector_store %arg5[%c1_209, %c1_210, %c0_211, %c0_212], %600 {strides = array<i32>} : memref<2x4x9x128xf32, #tpu.memory_space<vmem>>, vector<1x1x9x128xf32>,
    %601 = vector.extract_strided_slice %560 {offsets = [0, 16], sizes = [8, 16], strides = [1, 1]} : vector<8x64xf32> to vector<8x16xf32>
    %cst_213 = arith.constant dense<0.000000e+00> : vector<9x16xf32>
    %602 = tpu.matmul %596, %601, %cst_213 {dimension_numbers = #tpu.dot_dimension_numbers<[1], [0], [0], [1], [0, 0, 1, 1], [], []>} : vector<9x8xf32>, vector<8x16xf32>, vector<9x16xf32> -> vector<9x16xf32>
    %603 = vector.extract_strided_slice %558 {offsets = [0, 32], sizes = [9, 16], strides = [1, 1]} : vector<9x64xf32> to vector<9x16xf32>
    %604 = vector.extract_strided_slice %559 {offsets = [0, 32], sizes = [8, 16], strides = [1, 1]} : vector<8x64xf32> to vector<8x16xf32>
    %cst_214 = arith.constant dense<0.000000e+00> : vector<9x8xf32>
    %605 = tpu.matmul %603, %604, %cst_214 {dimension_numbers = #tpu.dot_dimension_numbers<[1], [1], [0], [0], [0, 0, 1, 0], [], []>} : vector<9x16xf32>, vector<8x16xf32>, vector<9x8xf32> -> vector<9x8xf32>
    %cst_215 = arith.constant 2.500000e-01 : f32
    %606 = vector.broadcast %cst_215 : f32 to vector<9x8xf32>
    %607 = arith.mulf %605, %606 : vector<9x8xf32>
    %cst_216 = arith.constant dense<0xFF800000> : vector<9xf32>
    %608 = vector.multi_reduction <maximumf>, %607, %cst_216 [1] : vector<9x8xf32> to vector<9xf32>
    %609 = vector.shape_cast %608 : vector<9xf32> to vector<9x1xf32>
    %610 = vector.broadcast %609 : vector<9x1xf32> to vector<9x8xf32>
    %611 = arith.subf %607, %610 : vector<9x8xf32>
    %612 = math.exp %611 : vector<9x8xf32>
    %cst_217 = arith.constant dense<0.000000e+00> : vector<9xf32>
    %613 = vector.multi_reduction <add>, %612, %cst_217 [1] : vector<9x8xf32> to vector<9xf32>
    %614 = vector.shape_cast %613 : vector<9xf32> to vector<9x1xf32>
    %615 = tpu.reciprocal %614 {approx = true} : vector<9x1xf32> -> vector<9x1xf32>
    %616 = vector.broadcast %615 : vector<9x1xf32> to vector<9x8xf32>
    %617 = arith.mulf %612, %616 : vector<9x8xf32>
    %618 = tpu.concatenate %617, %3 in 1 : vector<9x8xf32>, vector<9x120xf32> -> vector<9x128xf32>
    %c1_218 = arith.constant 1 : index
    %c2_219 = arith.constant 2 : index
    %c0_220 = arith.constant 0 : index
    %c0_221 = arith.constant 0 : index
    %619 = vector.load %arg5[%c1_218, %c2_219, %c0_220, %c0_221] : memref<2x4x9x128xf32, #tpu.memory_space<vmem>>, vector<1x1x9x128xf32>
    %620 = vector.shape_cast %619 : vector<1x1x9x128xf32> to vector<9x128xf32>
    %621 = vector.shape_cast %618 : vector<9x128xf32> to vector<1x1x9x128xf32>
    tpu.vector_store %arg5[%c1_218, %c2_219, %c0_220, %c0_221], %621 {strides = array<i32>} : memref<2x4x9x128xf32, #tpu.memory_space<vmem>>, vector<1x1x9x128xf32>,
    %622 = vector.extract_strided_slice %560 {offsets = [0, 32], sizes = [8, 16], strides = [1, 1]} : vector<8x64xf32> to vector<8x16xf32>
    %cst_222 = arith.constant dense<0.000000e+00> : vector<9x16xf32>
    %623 = tpu.matmul %617, %622, %cst_222 {dimension_numbers = #tpu.dot_dimension_numbers<[1], [0], [0], [1], [0, 0, 1, 1], [], []>} : vector<9x8xf32>, vector<8x16xf32>, vector<9x16xf32> -> vector<9x16xf32>
    %624 = vector.extract_strided_slice %558 {offsets = [0, 48], sizes = [9, 16], strides = [1, 1]} : vector<9x64xf32> to vector<9x16xf32>
    %625 = vector.extract_strided_slice %559 {offsets = [0, 48], sizes = [8, 16], strides = [1, 1]} : vector<8x64xf32> to vector<8x16xf32>
    %cst_223 = arith.constant dense<0.000000e+00> : vector<9x8xf32>
    %626 = tpu.matmul %624, %625, %cst_223 {dimension_numbers = #tpu.dot_dimension_numbers<[1], [1], [0], [0], [0, 0, 1, 0], [], []>} : vector<9x16xf32>, vector<8x16xf32>, vector<9x8xf32> -> vector<9x8xf32>
    %cst_224 = arith.constant 2.500000e-01 : f32
    %627 = vector.broadcast %cst_224 : f32 to vector<9x8xf32>
    %628 = arith.mulf %626, %627 : vector<9x8xf32>
    %cst_225 = arith.constant dense<0xFF800000> : vector<9xf32>
    %629 = vector.multi_reduction <maximumf>, %628, %cst_225 [1] : vector<9x8xf32> to vector<9xf32>
    %630 = vector.shape_cast %629 : vector<9xf32> to vector<9x1xf32>
    %631 = vector.broadcast %630 : vector<9x1xf32> to vector<9x8xf32>
    %632 = arith.subf %628, %631 : vector<9x8xf32>
    %633 = math.exp %632 : vector<9x8xf32>
    %cst_226 = arith.constant dense<0.000000e+00> : vector<9xf32>
    %634 = vector.multi_reduction <add>, %633, %cst_226 [1] : vector<9x8xf32> to vector<9xf32>
    %635 = vector.shape_cast %634 : vector<9xf32> to vector<9x1xf32>
    %636 = tpu.reciprocal %635 {approx = true} : vector<9x1xf32> -> vector<9x1xf32>
    %637 = vector.broadcast %636 : vector<9x1xf32> to vector<9x8xf32>
    %638 = arith.mulf %633, %637 : vector<9x8xf32>
    %639 = tpu.concatenate %638, %3 in 1 : vector<9x8xf32>, vector<9x120xf32> -> vector<9x128xf32>
    %c1_227 = arith.constant 1 : index
    %c3_228 = arith.constant 3 : index
    %c0_229 = arith.constant 0 : index
    %c0_230 = arith.constant 0 : index
    %640 = vector.load %arg5[%c1_227, %c3_228, %c0_229, %c0_230] : memref<2x4x9x128xf32, #tpu.memory_space<vmem>>, vector<1x1x9x128xf32>
    %641 = vector.shape_cast %640 : vector<1x1x9x128xf32> to vector<9x128xf32>
    %642 = vector.shape_cast %639 : vector<9x128xf32> to vector<1x1x9x128xf32>
    tpu.vector_store %arg5[%c1_227, %c3_228, %c0_229, %c0_230], %642 {strides = array<i32>} : memref<2x4x9x128xf32, #tpu.memory_space<vmem>>, vector<1x1x9x128xf32>,
    %643 = vector.extract_strided_slice %560 {offsets = [0, 48], sizes = [8, 16], strides = [1, 1]} : vector<8x64xf32> to vector<8x16xf32>
    %cst_231 = arith.constant dense<0.000000e+00> : vector<9x16xf32>
    %644 = tpu.matmul %638, %643, %cst_231 {dimension_numbers = #tpu.dot_dimension_numbers<[1], [0], [0], [1], [0, 0, 1, 1], [], []>} : vector<9x8xf32>, vector<8x16xf32>, vector<9x16xf32> -> vector<9x16xf32>
    %645 = tpu.concatenate %581, %602, %623, %644 in 1 : vector<9x16xf32>, vector<9x16xf32>, vector<9x16xf32>, vector<9x16xf32> -> vector<9x64xf32>
    %646 = tpu.concatenate %557, %645 in 0 : vector<9x64xf32>, vector<9x64xf32> -> vector<18x64xf32>
    %c1856 = arith.constant 1856 : index
    %c0_232 = arith.constant 0 : index
    %647 = vector.load %arg2[%c1856, %c0_232] : memref<2176x128xf32, #tpu.memory_space<vmem>>, vector<64x64xf32>
    %cst_233 = arith.constant dense<0.000000e+00> : vector<18x64xf32>
    %648 = tpu.matmul %646, %647, %cst_233 {dimension_numbers = #tpu.dot_dimension_numbers<[1], [0], [0], [1], [0, 0, 1, 1], [], []>} : vector<18x64xf32>, vector<64x64xf32>, vector<18x64xf32> -> vector<18x64xf32>
    %c320_234 = arith.constant 320 : index
    %c0_235 = arith.constant 0 : index
    %649 = vector.load %arg3[%c320_234, %c0_235] : memref<384x128xf32, #tpu.memory_space<vmem>>, vector<1x64xf32>
    %650 = vector.broadcast %649 : vector<1x64xf32> to vector<18x64xf32>
    %651 = arith.addf %648, %650 : vector<18x64xf32>
    %652 = arith.addf %651, %454 : vector<18x64xf32>
    %cst_236 = arith.constant dense<0.000000e+00> : vector<18xf32>
    %653 = vector.multi_reduction <add>, %652, %cst_236 [1] : vector<18x64xf32> to vector<18xf32>
    %654 = vector.shape_cast %653 : vector<18xf32> to vector<18x1xf32>
    %cst_237 = arith.constant 6.400000e+01 : f32
    %655 = vector.broadcast %cst_237 : f32 to vector<18x1xf32>
    %656 = arith.divf %654, %655 : vector<18x1xf32>
    %657 = vector.broadcast %656 : vector<18x1xf32> to vector<18x64xf32>
    %658 = arith.subf %652, %657 : vector<18x64xf32>
    %659 = arith.mulf %658, %658 : vector<18x64xf32>
    %cst_238 = arith.constant dense<0.000000e+00> : vector<18xf32>
    %660 = vector.multi_reduction <add>, %659, %cst_238 [1] : vector<18x64xf32> to vector<18xf32>
    %661 = vector.shape_cast %660 : vector<18xf32> to vector<18x1xf32>
    %cst_239 = arith.constant 6.400000e+01 : f32
    %662 = vector.broadcast %cst_239 : f32 to vector<18x1xf32>
    %663 = arith.divf %661, %662 : vector<18x1xf32>
    %664 = vector.broadcast %656 : vector<18x1xf32> to vector<18x64xf32>
    %665 = arith.subf %652, %664 : vector<18x64xf32>
    %cst_240 = arith.constant 9.99999974E-6 : f32
    %666 = vector.broadcast %cst_240 : f32 to vector<18x1xf32>
    %667 = arith.addf %663, %666 : vector<18x1xf32>
    %668 = math.rsqrt %667 : vector<18x1xf32>
    %669 = vector.broadcast %668 : vector<18x1xf32> to vector<18x64xf32>
    %670 = arith.mulf %665, %669 : vector<18x64xf32>
    %c328 = arith.constant 328 : index
    %c0_241 = arith.constant 0 : index
    %671 = vector.load %arg3[%c328, %c0_241] : memref<384x128xf32, #tpu.memory_space<vmem>>, vector<1x64xf32>
    %672 = vector.broadcast %671 : vector<1x64xf32> to vector<18x64xf32>
    %673 = arith.mulf %670, %672 : vector<18x64xf32>
    %c336 = arith.constant 336 : index
    %c0_242 = arith.constant 0 : index
    %674 = vector.load %arg3[%c336, %c0_242] : memref<384x128xf32, #tpu.memory_space<vmem>>, vector<1x64xf32>
    %675 = vector.broadcast %674 : vector<1x64xf32> to vector<18x64xf32>
    %676 = arith.addf %673, %675 : vector<18x64xf32>
    %c1920 = arith.constant 1920 : index
    %c0_243 = arith.constant 0 : index
    %677 = vector.load %arg2[%c1920, %c0_243] : memref<2176x128xf32, #tpu.memory_space<vmem>>, vector<64x128xf32>
    %cst_244 = arith.constant dense<0.000000e+00> : vector<18x128xf32>
    %678 = tpu.matmul %676, %677, %cst_244 {dimension_numbers = #tpu.dot_dimension_numbers<[1], [0], [0], [1], [0, 0, 1, 1], [], []>} : vector<18x64xf32>, vector<64x128xf32>, vector<18x128xf32> -> vector<18x128xf32>
    %c344 = arith.constant 344 : index
    %c0_245 = arith.constant 0 : index
    %679 = vector.load %arg3[%c344, %c0_245] : memref<384x128xf32, #tpu.memory_space<vmem>>, vector<1x128xf32>
    %680 = vector.broadcast %679 : vector<1x128xf32> to vector<18x128xf32>
    %681 = arith.addf %678, %680 : vector<18x128xf32>
    %cst_246 = arith.constant 0.000000e+00 : f32
    %682 = vector.broadcast %cst_246 : f32 to vector<18x128xf32>
    %683 = arith.maximumf %681, %682 : vector<18x128xf32>
    %c1984 = arith.constant 1984 : index
    %c0_247 = arith.constant 0 : index
    %684 = vector.load %arg2[%c1984, %c0_247] : memref<2176x128xf32, #tpu.memory_space<vmem>>, vector<128x64xf32>
    %cst_248 = arith.constant dense<0.000000e+00> : vector<18x64xf32>
    %685 = tpu.matmul %683, %684, %cst_248 {dimension_numbers = #tpu.dot_dimension_numbers<[1], [0], [0], [1], [0, 0, 1, 1], [], []>} : vector<18x128xf32>, vector<128x64xf32>, vector<18x64xf32> -> vector<18x64xf32>
    %c352 = arith.constant 352 : index
    %c0_249 = arith.constant 0 : index
    %686 = vector.load %arg3[%c352, %c0_249] : memref<384x128xf32, #tpu.memory_space<vmem>>, vector<1x64xf32>
    %687 = vector.broadcast %686 : vector<1x64xf32> to vector<18x64xf32>
    %688 = arith.addf %685, %687 : vector<18x64xf32>
    %689 = arith.addf %688, %676 : vector<18x64xf32>
    %cst_250 = arith.constant dense<0.000000e+00> : vector<18xf32>
    %690 = vector.multi_reduction <add>, %689, %cst_250 [1] : vector<18x64xf32> to vector<18xf32>
    %691 = vector.shape_cast %690 : vector<18xf32> to vector<18x1xf32>
    %cst_251 = arith.constant 6.400000e+01 : f32
    %692 = vector.broadcast %cst_251 : f32 to vector<18x1xf32>
    %693 = arith.divf %691, %692 : vector<18x1xf32>
    %694 = vector.broadcast %693 : vector<18x1xf32> to vector<18x64xf32>
    %695 = arith.subf %689, %694 : vector<18x64xf32>
    %696 = arith.mulf %695, %695 : vector<18x64xf32>
    %cst_252 = arith.constant dense<0.000000e+00> : vector<18xf32>
    %697 = vector.multi_reduction <add>, %696, %cst_252 [1] : vector<18x64xf32> to vector<18xf32>
    %698 = vector.shape_cast %697 : vector<18xf32> to vector<18x1xf32>
    %cst_253 = arith.constant 6.400000e+01 : f32
    %699 = vector.broadcast %cst_253 : f32 to vector<18x1xf32>
    %700 = arith.divf %698, %699 : vector<18x1xf32>
    %701 = vector.broadcast %693 : vector<18x1xf32> to vector<18x64xf32>
    %702 = arith.subf %689, %701 : vector<18x64xf32>
    %cst_254 = arith.constant 9.99999974E-6 : f32
    %703 = vector.broadcast %cst_254 : f32 to vector<18x1xf32>
    %704 = arith.addf %700, %703 : vector<18x1xf32>
    %705 = math.rsqrt %704 : vector<18x1xf32>
    %706 = vector.broadcast %705 : vector<18x1xf32> to vector<18x64xf32>
    %707 = arith.mulf %702, %706 : vector<18x64xf32>
    %c360 = arith.constant 360 : index
    %c0_255 = arith.constant 0 : index
    %708 = vector.load %arg3[%c360, %c0_255] : memref<384x128xf32, #tpu.memory_space<vmem>>, vector<1x64xf32>
    %709 = vector.broadcast %708 : vector<1x64xf32> to vector<18x64xf32>
    %710 = arith.mulf %707, %709 : vector<18x64xf32>
    %c368 = arith.constant 368 : index
    %c0_256 = arith.constant 0 : index
    %711 = vector.load %arg3[%c368, %c0_256] : memref<384x128xf32, #tpu.memory_space<vmem>>, vector<1x64xf32>
    %712 = vector.broadcast %711 : vector<1x64xf32> to vector<18x64xf32>
    %713 = arith.addf %710, %712 : vector<18x64xf32>
    %c2112 = arith.constant 2112 : index
    %c0_257 = arith.constant 0 : index
    %714 = vector.load %arg2[%c2112, %c0_257] : memref<2176x128xf32, #tpu.memory_space<vmem>>, vector<64x128xf32>
    %cst_258 = arith.constant dense<0.000000e+00> : vector<18x128xf32>
    %715 = tpu.matmul %713, %714, %cst_258 {dimension_numbers = #tpu.dot_dimension_numbers<[1], [0], [0], [1], [0, 0, 1, 1], [], []>} : vector<18x64xf32>, vector<64x128xf32>, vector<18x128xf32> -> vector<18x128xf32>
    %c376 = arith.constant 376 : index
    %c0_259 = arith.constant 0 : index
    %716 = vector.load %arg3[%c376, %c0_259] : memref<384x128xf32, #tpu.memory_space<vmem>>, vector<1x128xf32>
    %717 = vector.broadcast %716 : vector<1x128xf32> to vector<18x128xf32>
    %718 = arith.addf %715, %717 : vector<18x128xf32>
    %c0_260 = arith.constant 0 : index
    %c0_261 = arith.constant 0 : index
    %719 = vector.load %arg4[%c0_260, %c0_261] : memref<18x128xf32, #tpu.memory_space<vmem>>, vector<18x128xf32>
    tpu.vector_store %arg4[%c0_260, %c0_261], %718 {strides = array<i32>} : memref<18x128xf32, #tpu.memory_space<vmem>>, vector<18x128xf32>,
    return
  }
}

</mosaic_0001>

<bundles_post_ra>
// kernel: forward.1
= control target key start
LH: loop header
LB: loop body
LE: loop exit
PB: predicated region body
PF: predicated region fallthrough
CT: control target
= control target key end

     0   :  { %11 = vsyncpa [#allocation3], 0  ;;  %s5052_s0 = inlined_call_operand.vmem [shape: f32[16,128], index: 0, kind: input, shape index: {}]   ;;  %s5053_s1 = inlined_call_operand.vmem [shape: f32[18,128], index: 1, kind: input, shape index: {}]   ;;  %s5054_s2 = inlined_call_operand.hbm [shape: f32[2176,128], index: 2, kind: input, shape index: {}]   ;;  %s5055_s3 = inlined_call_operand.hbm [shape: f32[384,128], index: 3, kind: input, shape index: {}]   ;;  %s5056_s4 = inlined_call_operand.vmem [shape: f32[18,128], index: 4, kind: output, shape index: {0}]   ;;  %s5057_s5 = inlined_call_operand.vmem [shape: f32[2,4,9,128], index: 5, kind: output, shape index: {1}]  }
   0x1   :  { %s21_s20 = sshll.u32 %s5054_s2, 4  ;;  %s22_s20 = int_to_ptr.hbm [resolvable:$true] %s21_s20 }
   0x2   :  { %12 = vsyncpa [#allocation5], 0  ;;  %s3926_s21 = smov [#allocation2]   ;;  %s34_s25 = sshll.u32 %s5055_s3, 4  ;;  %s35_s25 = int_to_ptr.hbm [resolvable:$true] %s34_s25 }
   0x3   :  { %s23_s22 = sshll.u32 %s3926_s21, 4  ;;  %s3927_s26 = smov 128   ;;  %s24_s22 = int_to_ptr.vmem [resolvable:$true] %s23_s22 }
   0x4   :  { %s3928_s27 = smov 8   ;;  %s3929_s28 = smov [#allocation4]  }
   0x5   :  { %29 = dma.hbm_to_vmem [thread:$0]  %s22_s20, 34816, %s24_s22, [#allocation3], %s3927_s26, %s3927_s26, %s3928_s27  }
   0x6   :  { %s36_s29 = sshll.u32 %s3929_s28, 4  ;;  %s37_s29 = int_to_ptr.vmem [resolvable:$true] %s36_s29 }
   0x7   :  { %42 = dma.hbm_to_vmem [thread:$0]  %s35_s25, 6144, %s37_s29, [#allocation5], %s3927_s26, %s3927_s26, %s3928_s27  }
   0x8   :  { %3922 = dma.done.wait [#allocation3], 34816  }
   0x9   :  { %3923 = vsyncadd [#allocation3], 4294932480 }
   0xa   :  { %3924 = dma.done.wait [#allocation5], 6144  }
   0xb   :  { %3925 = vsyncadd [#allocation5], 4294961152  ;;  %v75_v0 = vld [vmem:[#allocation2 + $0x78] sm:$0xff]  ;;  %v74_v1 = vld [vmem:[#allocation2 + $0x70] sm:$0xff]  ;;  %vm114_vm0 = vcmask 523264   ;;  %vm210_vm1 = vcmask 130048  }
   0xc   :  { %78 = vmatpush.msra.mxu0 %v75_v0  ;;  %v73_v2 = vld [vmem:[#allocation2 + $0x68] sm:$0xff]  ;;  %v72_v3 = vld [vmem:[#allocation2 + $0x60] sm:$0xff]  ;;  %v71_v4 = vld [vmem:[#allocation2 + $0x58] sm:$0xff]  ;;  %s3931_s7 = smov 96   ;;  %vm238_vm2 = vcmask 64512   ;;  %s3932_s8 = smov 80  }
   0xd   :  { %v111_v5 = vld [vmem:[#allocation2 + $0x138] sm:$0xff]  ;;  %v70_v6 = vld [vmem:[#allocation2 + $0x50] sm:$0xff]  ;;  %v109_v12 = vld [vmem:[#allocation2 + $0x128] sm:$0xff]  ;;  %s3933_s9 = smov 16   ;;  %s3934_s10 = smov 32   ;;  %vm485_vm3 = vcmask 261120  }
   0xe   :  { %79 = vmatpush.msra.mxu0 %v74_v1  ;;  %129 = vmatpush.msra.mxu1 %v111_v5  ;;  %v151_v7 = vld [vmem:[#allocation2 + $0x178] sm:$0xff]  ;;  %v110_v9 = vld [vmem:[#allocation2 + $0x130] sm:$0xff]  ;;  %v69_v13 = vld [vmem:[#allocation2 + $0x48] sm:$0xff]  ;;  %s3935_s11 = smov 48   ;;  %vm487_vm4 = vcmask 392192   ;;  %vm1051_vm9 = vcmask 1040384  }
   0xf   :  { %v184_v8 = vld [vmem:[#allocation2 + $0x1b8] sm:$0xff]  ;;  %162 = vmatpush.msra.mxu2 %v151_v7  ;;  %v150_v10 = vld [vmem:[#allocation2 + $0x170] sm:$0xff]  ;;  %v149_v14 = vld [vmem:[#allocation2 + $0x168] sm:$0xff]  ;;  %vm1217_vm14 = vcmask 72704  }
  0x10   :  { %80 = vmatpush.msra.mxu0 %v73_v2  ;;  %v183_v11 = vld [vmem:[#allocation2 + $0x1b0] sm:$0xff]  ;;  %195 = vmatpush.msra.mxu3 %v184_v8  ;;  %v182_v15 = vld [vmem:[#allocation2 + $0x1a8] sm:$0xff]  ;;  %v108_v16 = vld [vmem:[#allocation2 + $0x120] sm:$0xff] }
  0x11   :  { %130 = vmatpush.msra.mxu1 %v110_v9  ;;  %163 = vmatpush.msra.mxu2 %v150_v10  ;;  %v148_v17 = vld [vmem:[#allocation2 + $0x160] sm:$0xff]  ;;  %v107_v20 = vld [vmem:[#allocation2 + $0x118] sm:$0xff]  ;;  %v66_v24 = vld [vmem:[#allocation2 + $0x30] sm:$0xff] }
  0x12   :  { %81 = vmatpush.msra.mxu0 %v72_v3  ;;  %v181_v18 = vld [vmem:[#allocation2 + $0x1a0] sm:$0xff]  ;;  %196 = vmatpush.msra.mxu3 %v183_v11  ;;  %v147_v21 = vld [vmem:[#allocation2 + $0x158] sm:$0xff]  ;;  %v65_v25 = vld [vmem:[#allocation2 + $0x28] sm:$0xff] }
  0x13   :  { %v68_v19 = vld [vmem:[#allocation2 + $0x40] sm:$0xff]  ;;  %131 = vmatpush.msra.mxu1 %v109_v12  ;;  %164 = vmatpush.msra.mxu2 %v149_v14  ;;  %v180_v22 = vld [vmem:[#allocation2 + $0x198] sm:$0xff]  ;;  %v62_v28 = vld [vmem:[#allocation2 + $0x10] sm:$0xff] }
  0x14   :  { %82 = vmatpush.msra.mxu0 %v71_v4  ;;  %v67_v23 = vld [vmem:[#allocation2 + $0x38] sm:$0xff]  ;;  %197 = vmatpush.msra.mxu3 %v182_v15  ;;  %v64_v26 = vld [vmem:[#allocation2 + $0x20] sm:$0xff]  ;;  %v61_v29 = vld [vmem:[#allocation2 + $0x8] sm:$0xff] }
  0x15   :  { %132 = vmatpush.msra.mxu1 %v108_v16  ;;  %165 = vmatpush.msra.mxu2 %v148_v17  ;;  %v63_v27 = vld [vmem:[#allocation2 + $0x18] sm:$0xff]  ;;  %v60_v30 = vld [vmem:[#allocation2] sm:$0xff]  ;;  %v106_v32 = vld [vmem:[#allocation2 + $0x110] sm:$0xff] }
  0x16   :  { %83 = vmatpush.msra.mxu0 %v70_v6  ;;  %198 = vmatpush.msra.mxu3 %v181_v18  ;;  %v58_v31 = vld [vmem:[%s5052_s0] sm:$0xff]  ;;  %v146_v33 = vld [vmem:[#allocation2 + $0x150] sm:$0xff]  ;;  %v105_v35 = vld [vmem:[#allocation2 + $0x108] sm:$0xff] }
  0x17   :  { %133 = vmatpush.msra.mxu1 %v107_v20  ;;  %166 = vmatpush.msra.mxu2 %v147_v21  ;;  %v179_v34 = vld [vmem:[#allocation2 + $0x190] sm:$0xff]  ;;  %v145_v36 = vld [vmem:[#allocation2 + $0x148] sm:$0xff]  ;;  %v104_v39 = vld [vmem:[#allocation2 + $0x100] sm:$0xff] }
  0x18   :  { %84 = vmatpush.msra.mxu0 %v69_v13  ;;  %199 = vmatpush.msra.mxu3 %v180_v22  ;;  %v178_v37 = vld [vmem:[#allocation2 + $0x188] sm:$0xff]  ;;  %v144_v40 = vld [vmem:[#allocation2 + $0x140] sm:$0xff]  ;;  %v3659_v50 = vld [vmem:[#allocation4 + $0x30] ss:$0 sm:$0xff] }
  0x19   :  { %134 = vmatpush.msra.mxu1 %v106_v32  ;;  %167 = vmatpush.msra.mxu2 %v146_v33  ;;  %v59_v38 = vld [vmem:[%s5052_s0 + $0x8] sm:$0xff]  ;;  %v177_v41 = vld [vmem:[#allocation2 + $0x180] sm:$0xff]  ;;  %v3995_v51 = vld [vmem:[#allocation4 + $0x38] ss:$0 sm:$0xff]  ;;  %s3930_s0 = smov 112  }
  0x1a   :  { %85 = vmatpush.msra.mxu0 %v68_v19  ;;  %200 = vmatpush.msra.mxu3 %v179_v34  ;;  %v3657_v42 = vld [vmem:[#allocation4] ss:$0 sm:$0xff]  ;;  %v101_v44 = vld [vmem:[#allocation4 + $0x8] sm:$0xff] }
  0x1b   :  { %135 = vmatpush.msra.mxu1 %v105_v35  ;;  %168 = vmatpush.msra.mxu2 %v145_v36  ;;  %v3658_v53 = vld [vmem:[#allocation4 + $0x28] ss:$0 sm:$0xff] }
  0x1c   :  { %86 = vmatpush.msra.mxu0 %v67_v23  ;;  %201 = vmatpush.msra.mxu3 %v178_v37 }
  0x1d   :  { %136 = vmatpush.msra.mxu1 %v104_v39  ;;  %169 = vmatpush.msra.mxu2 %v144_v40 }
  0x1e   :  { %87 = vmatpush.msra.mxu0 %v66_v24  ;;  %202 = vmatpush.msra.mxu3 %v177_v41 }
  0x20   :  { %88 = vmatpush.msra.mxu0 %v65_v25 }
  0x22   :  { %89 = vmatpush.msra.mxu0 %v64_v26 }
  0x24   :  { %90 = vmatpush.msra.mxu0 %v63_v27 }
  0x26   :  { %91 = vmatpush.msra.mxu0 %v62_v28 }
  0x28   :  { %92 = vmatpush.msra.mxu0 %v61_v29 }
  0x2a   :  { %93 = vmatpush.msra.mxu0 %v60_v30 }
  0x2b   :  { %94 = vmatmul.f32.vlgmr.msra.gmra.mxu0 %v58_v31 }
  0x33   :  { %97 = vmatmul.f32.gmra.mxu0 %v59_v38 }
  0xa8   :  { %v95_v43 = vpop.f32.mrf.mxu0 }
  0xa9   :  { %v96_v45 = vadd.f32 %v3657_v42, %v95_v43 }
  0xab   :  { %v3979_v46 = vadd.f32 %v101_v44, %v96_v45 }
  0xad   :  { %3469 = vmatmul.msk.f32.vlgmr.msra.gmra.mxu1 %vm114_vm0, %v3979_v46  ;;  %3471 = vmatmul.msk.f32.vlgmr.msra.gmra.mxu2 %vm114_vm0, %v3979_v46 }
  0xae   :  { %3473 = vmatmul.msk.f32.vlgmr.msra.gmra.mxu3 %vm114_vm0, %v3979_v46 }
  0xb0   :  { %v98_v47 = vpop.f32.mrf.mxu0 }
  0xb1   :  { %v99_v48 = vadd.f32 %v3657_v42, %v98_v47 }
  0xb3   :  { %v3987_v49 = vadd.f32 %v101_v44, %v99_v48 }
  0xb5   :  { %3470 = vmatmul.msk.f32.gmra.mxu1 %vm114_vm0, %v3987_v49  ;;  %3472 = vmatmul.msk.f32.gmra.mxu2 %vm114_vm0, %v3987_v49 }
  0xb6   :  { %3474 = vmatmul.msk.f32.gmra.mxu3 %vm114_vm0, %v3987_v49 }
 0x12a   :  { %v138_v56 = vpop.f32.mrf.mxu1 }
 0x12b   :  { %v4004_v58 = vadd.f32 %v3658_v53, %v138_v56 }
 0x130   :  { %v171_v52 = vpop.f32.mrf.mxu2 }
 0x131   :  { %v172_v54 = vadd.f32 %v3659_v50, %v171_v52  ;;  %v204_v55 = vpop.f32.mrf.mxu3 }
 0x132   :  { %v3998_v57 = vadd.f32 %v3995_v51, %v204_v55  ;;  %v141_v62 = vpop.f32.mrf.mxu1 }
 0x133   :  { %275 = vrot.lane.b32.xlu2 %v172_v54, %s3930_s0  ;;  %342 = vrot.lane.b32.xlu1 %v172_v54, %s3931_s7  ;;  %v4021_v11 = vadd.f32 %v3658_v53, %v141_v62 }
 0x134   :  { %268 = vmatpush.msrb.mxu2 %v3998_v57  ;;  %3475 = vmatpush.xpose.msk.msrb.mxu1 %vm210_vm1, %v172_v54 }
 0x137   :  { %3476 = vmatmul.msk.f32.vlgmr.msrb.gmra.mxu1 %vm210_vm1, %v4004_v58 }
 0x138   :  { %v174_v13 = vpop.f32.mrf.mxu2 }
 0x139   :  { %v4016_v2 = vpop.f32.mrf.mxu3  ;;  %v175_v16 = vadd.f32 %v3659_v50, %v174_v13 }
 0x13a   :  { %v4053_v48 = vadd.f32 %v3995_v51, %v4016_v2 }
 0x13b   :  { %273 = vrot.lane.b32.xlu2 %v4004_v58, %s3930_s0  ;;  %340 = vrot.lane.b32.xlu1 %v4004_v58, %s3931_s7 }
 0x18d   :  { %v276_v59 = vpop.permute.xlu2 %275 }
 0x18e   :  { %3478 = vmatpush.xpose.msk.msrb.mxu3 %vm210_vm1, %v276_v59 }
 0x195   :  { %v274_v60 = vpop.permute.xlu2 %273 }
 0x196   :  { %3479 = vmatmul.msk.f32.vlgmr.msrb.gmra.mxu3 %vm210_vm1, %v274_v60 }
 0x1a5   :  { %v343_v61 = vpop.permute.xlu1 %342 }
 0x1a6   :  { %3481 = vmatpush.xpose.msk.msra.mxu2 %vm210_vm1, %v343_v61 }
 0x1ad   :  { %v341_v17 = vpop.permute.xlu1 %340 }
 0x1b4   :  { %v234_v63 = vpop.f32.mrf.mxu1 }
 0x1b5   :  { %v237_v0 = vmul.f32 0.25, %v234_v63 }
 0x1b7   :  { %v239_v1 = vsel %vm238_vm2, %v237_v0, -inf }
 0x1b8   :  { %240 = vmax.xlane.f32.xlu0 %v239_v1 }
 0x219   :  { %v298_v3 = vpop.f32.mrf.mxu3 }
 0x21a   :  { %v301_v4 = vmul.f32 0.25, %v298_v3 }
 0x21c   :  { %v302_v5 = vsel %vm238_vm2, %v301_v4, -inf }
 0x21d   :  { %303 = vmax.xlane.f32.xlu1 %v302_v5 }
 0x22b   :  { %v241_v6 = vpop.xlane.xlu0 %240 }
 0x22c   :  { %v242_v7 = vsub.f32 %v237_v0, %v241_v6 }
 0x22e   :  { %v243_v8 = vmul.f32 1.442695, %v242_v7 }
 0x230   :  { %3686 = vpow2.f32 %v243_v8 }
 0x236   :  { %v3687_v9 = vpop.eup %3686  ;;  %408 = vrot.lane.b32.xlu1 %v172_v54, %s3932_s8 }
 0x237   :  { %v245_v10 = vsel %vm238_vm2, %v3687_v9, 0.0 }
 0x238   :  { %246 = vadd.xlane.f32.xlu0 %v245_v10 }
 0x23e   :  { %550 = vrot.lane.b32.xlu1 %v4021_v11, %s3930_s0 }
 0x246   :  { %683 = vrot.lane.b32.xlu1 %v4021_v11, %s3932_s8 }
 0x290   :  { %v304_v18 = vpop.xlane.xlu1 %303 }
 0x291   :  { %v305_v20 = vsub.f32 %v301_v4, %v304_v18 }
 0x293   :  { %v306_v21 = vmul.f32 1.442695, %v305_v20 }
 0x2a8   :  { %v409_v40 = vpop.permute.xlu1 %408 }
 0x2ab   :  { %v247_v12 = vpop.xlane.xlu0 %246 }
 0x2ac   :  { %3688 = vrcp.f32 %v247_v12 }
 0x2ad   :  { %3690 = vpow2.f32 %v306_v21 }
 0x2b0   :  { %v551_v47 = vpop.permute.xlu1 %550 }
 0x2b2   :  { %v3689_v14 = vpop.eup %3688 }
 0x2b3   :  { %v249_v15 = vmul.f32 %v3689_v14, %v3687_v9  ;;  %v3691_v25 = vpop.eup %3690 }
 0x2b4   :  { %v308_v29 = vsel %vm238_vm2, %v3691_v25, 0.0 }
 0x2b5   :  { %3477 = vmatmul.msk.f32.vlgmr.msrb.gmra.mxu2 %vm238_vm2, %v249_v15 }
 0x2b6   :  { %3487 = vmatpush.xpose.msk.msrb.mxu2 %vm210_vm1, %v175_v16 }
 0x2b8   :  { %v684_v53 = vpop.permute.xlu1 %683 }
 0x2bd   :  { %3482 = vmatmul.msk.f32.vlgmr.msra.gmra.mxu2 %vm210_vm1, %v341_v17 }
 0x2c5   :  { %3488 = vmatmul.msk.f32.vlgmr.msrb.gmra.mxu2 %vm210_vm1, %v4021_v11 }
 0x338   :  { %v4032_v19 = vpop.f32.mrf.mxu2 }
 0x340   :  { %v365_v22 = vpop.f32.mrf.mxu2 }
 0x341   :  { %v368_v23 = vmul.f32 0.25, %v365_v22 }
 0x343   :  { %v369_v24 = vsel %vm238_vm2, %v368_v23, -inf }
 0x344   :  { %370 = vmax.xlane.f32.xlu0 %v369_v24 }
 0x348   :  { %v512_v26 = vpop.f32.mrf.mxu2 }
 0x349   :  { %v515_v27 = vmul.f32 0.25, %v512_v26 }
 0x34b   :  { %v516_v28 = vsel %vm238_vm2, %v515_v27, -inf }
 0x34c   :  { %517 = vmax.xlane.f32.xlu2 %v516_v28  ;;  %309 = vadd.xlane.f32.xlu0 %v308_v29 }
 0x360   :  { %380 = vrot.lane.b32.xlu0 %v3998_v57, %s3931_s7 }
 0x364   :  { %314 = vrot.lane.b32.xlu2 %v3998_v57, %s3930_s0 }
 0x368   :  { %552 = vrot.lane.b32.xlu0 %v175_v16, %s3930_s0 }
 0x36c   :  { %619 = vrot.lane.b32.xlu2 %v175_v16, %s3931_s7 }
 0x370   :  { %406 = vrot.lane.b32.xlu0 %v4004_v58, %s3932_s8 }
 0x374   :  { %685 = vrot.lane.b32.xlu2 %v175_v16, %s3932_s8 }
 0x3b7   :  { %v371_v30 = vpop.xlane.xlu0 %370 }
 0x3b8   :  { %v372_v31 = vsub.f32 %v368_v23, %v371_v30 }
 0x3ba   :  { %v373_v32 = vmul.f32 1.442695, %v372_v31 }
 0x3bc   :  { %3692 = vpow2.f32 %v373_v32 }
 0x3bf   :  { %v518_v33 = vpop.xlane.xlu2 %517  ;;  %v310_v34 = vpop.xlane.xlu0 %309 }
 0x3c0   :  { %v519_v35 = vsub.f32 %v515_v27, %v518_v33  ;;  %3694 = vrcp.f32 %v310_v34 }
 0x3c2   :  { %v3693_v36 = vpop.eup %3692  ;;  %v520_v37 = vmul.f32 1.442695, %v519_v35 }
 0x3c3   :  { %v375_v38 = vsel %vm238_vm2, %v3693_v36, 0.0 }
 0x3c4   :  { %3696 = vpow2.f32 %v520_v37  ;;  %376 = vadd.xlane.f32.xlu0 %v375_v38 }
 0x3c6   :  { %v3695_v39 = vpop.eup %3694 }
 0x3c7   :  { %v312_v41 = vmul.f32 %v3695_v39, %v3691_v25  ;;  %v315_v42 = vpop.permute.xlu2 %314  ;;  %v771_v39 = vld [vmem:[#allocation2 + $0x1f8] sm:$0xff] }
 0x3c8   :  { %335 = vmatpush.msra.mxu1 %v315_v42  ;;  %v768_v42 = vld [vmem:[#allocation2 + $0x1e0] sm:$0xff] }
 0x3c9   :  { %3480 = vmatmul.msk.f32.vlgmr.msra.gmra.mxu1 %vm238_vm2, %v312_v41  ;;  %v769_v41 = vld [vmem:[#allocation2 + $0x1e8] sm:$0xff] }
 0x3ca   :  { %v3697_v43 = vpop.eup %3696  ;;  %3484 = vmatpush.xpose.msk.msrb.mxu1 %vm210_vm1, %v409_v40  ;;  %v770_v40 = vld [vmem:[#allocation2 + $0x1f0] sm:$0xff] }
 0x3cb   :  { %v522_v44 = vsel %vm238_vm2, %v3697_v43, 0.0 }
 0x3cc   :  { %523 = vadd.xlane.f32.xlu0 %v522_v44  ;;  %v767_v44 = vld [vmem:[#allocation2 + $0x1d8] sm:$0xff] }
 0x3cf   :  { %v620_v45 = vpop.permute.xlu2 %619 }
 0x3d0   :  { %3493 = vmatpush.xpose.msk.msra.mxu2 %vm210_vm1, %v620_v45 }
 0x3d2   :  { %v381_v50 = vpop.permute.xlu0 %380 }
 0x3d3   :  { %401 = vmatpush.msra.mxu3 %v381_v50  ;;  %v765_v50 = vld [vmem:[#allocation2 + $0x1c8] sm:$0xff] }
 0x3d4   :  { %788 = vmatpush.msrb.mxu2 %v771_v39  ;;  %v864_v39 = vld [vmem:[#allocation2 + $0x200] sm:$0xff] }
 0x3d5   :  { %545 = vmatpush.msrb.mxu3 %v4053_v48 }
 0x3d6   :  { %789 = vmatpush.msrb.mxu2 %v770_v40  ;;  %v1017_v40 = vld [vmem:[#allocation2 + $0xf0] sm:$0xff] }
 0x3d7   :  { %v686_v52 = vpop.permute.xlu2 %685 }
 0x3d8   :  { %3496 = vmatpush.xpose.msk.msrb.mxu0 %vm210_vm1, %v686_v52  ;;  %790 = vmatpush.msrb.mxu2 %v769_v41  ;;  %v1016_v41 = vld [vmem:[#allocation2 + $0xe8] sm:$0xff] }
 0x3da   :  { %v553_v54 = vpop.permute.xlu0 %552  ;;  %791 = vmatpush.msrb.mxu2 %v768_v42 }
 0x3db   :  { %3497 = vmatmul.msk.f32.vlgmr.msrb.gmra.mxu0 %vm210_vm1, %v684_v53 }
 0x3dc   :  { %792 = vmatpush.msrb.mxu2 %v767_v44  ;;  %v1015_v44 = vld [vmem:[#allocation2 + $0xe0] sm:$0xff] }
 0x3e0   :  { %617 = vrot.lane.b32.xlu0 %v4021_v11, %s3931_s7 }
 0x3e2   :  { %v407_v55 = vpop.permute.xlu0 %406 }
 0x3e3   :  { %3485 = vmatmul.msk.f32.vlgmr.msrb.gmra.mxu1 %vm210_vm1, %v407_v55 }
 0x437   :  { %v377_v56 = vpop.xlane.xlu0 %376 }
 0x438   :  { %3698 = vrcp.f32 %v377_v56 }
 0x43e   :  { %v3699_v51 = vpop.eup %3698 }
 0x43f   :  { %v379_v58 = vmul.f32 %v3699_v51, %v3693_v36  ;;  %v524_v59 = vpop.xlane.xlu0 %523 }
 0x440   :  { %3700 = vrcp.f32 %v524_v59 }
 0x441   :  { %3483 = vmatmul.msk.f32.vlgmr.msra.gmra.mxu3 %vm238_vm2, %v379_v58 }
 0x442   :  { %3490 = vmatpush.xpose.msk.msra.mxu3 %vm210_vm1, %v553_v54 }
 0x446   :  { %v3701_v60 = vpop.eup %3700  ;;  %v337_v63 = vpop.f32.mrf.mxu1 }
 0x447   :  { %v526_v61 = vmul.f32 %v3701_v60, %v3697_v43 }
 0x449   :  { %3489 = vmatmul.msk.f32.vlgmr.msrb.gmra.mxu3 %vm238_vm2, %v526_v61  ;;  %v764_v61 = vld [vmem:[#allocation2 + $0x1c0] sm:$0xff] }
 0x451   :  { %3491 = vmatmul.msk.f32.vlgmr.msra.gmra.mxu3 %vm210_vm1, %v551_v47  ;;  %v766_v47 = vld [vmem:[#allocation2 + $0x1d0] sm:$0xff] }
 0x452   :  { %v618_v62 = vpop.permute.xlu0 %617  ;;  %793 = vmatpush.msrb.mxu2 %v766_v47  ;;  %v1014_v47 = vld [vmem:[#allocation2 + $0xd8] sm:$0xff] }
 0x453   :  { %3494 = vmatmul.msk.f32.vlgmr.msra.gmra.mxu2 %vm210_vm1, %v618_v62 }
 0x454   :  { %794 = vmatpush.msrb.mxu2 %v765_v50  ;;  %v1013_v50 = vld [vmem:[#allocation2 + $0xd0] sm:$0xff] }
 0x456   :  { %795 = vmatpush.msrb.mxu2 %v764_v61  ;;  %v1007_v61 = vld [vmem:[#allocation2 + $0xa0] sm:$0xff] }
 0x458   :  { %v708_v3 = vpop.f32.mrf.mxu0 }
 0x459   :  { %v711_v4 = vmul.f32 0.25, %v708_v3 }
 0x45b   :  { %v712_v5 = vsel %vm238_vm2, %v711_v4, -inf }
 0x460   :  { %v431_v0 = vpop.f32.mrf.mxu1 }
 0x461   :  { %v434_v1 = vmul.f32 0.25, %v431_v0 }
 0x463   :  { %v435_v2 = vsel %vm238_vm2, %v434_v1, -inf }
 0x464   :  { %436 = vmax.xlane.f32.xlu0 %v435_v2 }
 0x46c   :  { %713 = vmax.xlane.f32.xlu0 %v712_v5 }
 0x480   :  { %446 = vrot.lane.b32.xlu0 %v3998_v57, %s3932_s8 }
 0x488   :  { %723 = vrot.lane.b32.xlu0 %v4053_v48, %s3932_s8 }
 0x490   :  { %473 = vrot.lane.b32.xlu0 %v337_v63, %s3933_s9 }
 0x4c4   :  { %v403_v6 = vpop.f32.mrf.mxu3 }
 0x4c5   :  { %477 = vrot.lane.b32.xlu0 %v403_v6, %s3934_s10 }
 0x4cc   :  { %v4074_v7 = vpop.f32.mrf.mxu3 }
 0x4d4   :  { %v575_v8 = vpop.f32.mrf.mxu3 }
 0x4d5   :  { %v578_v9 = vmul.f32 0.25, %v575_v8  ;;  %v3661_v8 = vld [vmem:[#allocation4 + $0x40] ss:$0 sm:$0xff] }
 0x4d6   :  { %v642_v10 = vpop.f32.mrf.mxu2 }
 0x4d7   :  { %v645_v11 = vmul.f32 0.25, %v642_v10  ;;  %v437_v12 = vpop.xlane.xlu0 %436  ;;  %v579_v13 = vsel %vm238_vm2, %v578_v9, -inf }
 0x4d8   :  { %v438_v57 = vsub.f32 %v434_v1, %v437_v12  ;;  %580 = vmax.xlane.f32.xlu2 %v579_v13 }
 0x4d9   :  { %v646_v14 = vsel %vm238_vm2, %v645_v11, -inf }
 0x4da   :  { %v439_v15 = vmul.f32 1.442695, %v438_v57  ;;  %647 = vmax.xlane.f32.xlu1 %v646_v14 }
 0x4dc   :  { %3702 = vpow2.f32 %v439_v15 }
 0x4df   :  { %v714_v16 = vpop.xlane.xlu0 %713 }
 0x4e0   :  { %v715_v17 = vsub.f32 %v711_v4, %v714_v16 }
 0x4e2   :  { %v3703_v18 = vpop.eup %3702  ;;  %v716_v20 = vmul.f32 1.442695, %v715_v17  ;;  %v3936_v17 = vmov 64.0  }
 0x4e3   :  { %v441_v21 = vsel %vm238_vm2, %v3703_v18, 0.0 }
 0x4e4   :  { %3704 = vpow2.f32 %v716_v20  ;;  %442 = vadd.xlane.f32.xlu2 %v441_v21 }
 0x4ea   :  { %v3705_v22 = vpop.eup %3704 }
 0x4eb   :  { %v718_v23 = vsel %vm238_vm2, %v3705_v22, 0.0 }
 0x4ec   :  { %719 = vadd.xlane.f32.xlu1 %v718_v23 }
 0x4f2   :  { %v447_v24 = vpop.permute.xlu0 %446 }
 0x4f3   :  { %467 = vmatpush.msra.mxu1 %v447_v24 }
 0x4fa   :  { %v724_v54 = vpop.permute.xlu0 %723 }
 0x502   :  { %v474_v62 = vpop.permute.xlu0 %473 }
 0x503   :  { %v484_v0 = vsel %vm210_vm1, %v4032_v19, %v474_v62  ;;  %v920_v62 = vld [vmem:[#allocation2 + $0x2b8] sm:$0xff] }
 0x504   :  { %923 = vmatpush.msra.mxu0 %v920_v62 }
 0x537   :  { %v478_v63 = vpop.permute.xlu0 %477 }
 0x538   :  { %v486_v1 = vsel %vm485_vm3, %v484_v0, %v478_v63  ;;  %v919_v63 = vld [vmem:[#allocation2 + $0x2b0] sm:$0xff]  ;;  %v4120_v0 = vld [vmem:[#allocation4 + $0x48] ss:$0 sm:$0xff] }
 0x539   :  { %924 = vmatpush.msra.mxu0 %v919_v63 }
 0x54b   :  { %v581_v25 = vpop.xlane.xlu2 %580 }
 0x54c   :  { %v582_v26 = vsub.f32 %v578_v9, %v581_v25 }
 0x54d   :  { %v648_v27 = vpop.xlane.xlu1 %647 }
 0x54e   :  { %v583_v28 = vmul.f32 1.442695, %v582_v26  ;;  %v649_v29 = vsub.f32 %v645_v11, %v648_v27 }
 0x550   :  { %3706 = vpow2.f32 %v583_v28  ;;  %v650_v30 = vmul.f32 1.442695, %v649_v29 }
 0x552   :  { %3708 = vpow2.f32 %v650_v30 }
 0x556   :  { %v3707_v31 = vpop.eup %3706 }
 0x557   :  { %v443_v32 = vpop.xlane.xlu2 %442  ;;  %v585_v33 = vsel %vm238_vm2, %v3707_v31, 0.0 }
 0x558   :  { %v3709_v34 = vpop.eup %3708  ;;  %3710 = vrcp.f32 %v443_v32  ;;  %586 = vadd.xlane.f32.xlu1 %v585_v33  ;;  %v871_v32 = vld [vmem:[#allocation2 + $0x238] sm:$0xff]  ;;  %v870_v33 = vld [vmem:[#allocation2 + $0x230] sm:$0xff] }
 0x559   :  { %v652_v35 = vsel %vm238_vm2, %v3709_v34, 0.0 }
 0x55a   :  { %653 = vadd.xlane.f32.xlu2 %v652_v35  ;;  %v868_v35 = vld [vmem:[#allocation2 + $0x220] sm:$0xff] }
 0x55e   :  { %v3711_v36 = vpop.eup %3710 }
 0x55f   :  { %v445_v37 = vmul.f32 %v3711_v36, %v3703_v18  ;;  %v720_v38 = vpop.xlane.xlu1 %719  ;;  %v867_v36 = vld [vmem:[#allocation2 + $0x218] sm:$0xff] }
 0x561   :  { %3486 = vmatmul.msk.f32.vlgmr.msra.gmra.mxu1 %vm238_vm2, %v445_v37  ;;  %v866_v37 = vld [vmem:[#allocation2 + $0x210] sm:$0xff] }
 0x571   :  { %657 = vrot.lane.b32.xlu1 %v4053_v48, %s3931_s7 }
 0x572   :  { %591 = vrot.lane.b32.xlu2 %v4053_v48, %s3930_s0 }
 0x5cb   :  { %v587_v43 = vpop.xlane.xlu1 %586 }
 0x5cc   :  { %3712 = vrcp.f32 %v587_v43 }
 0x5cd   :  { %v654_v45 = vpop.xlane.xlu2 %653  ;;  %3714 = vrcp.f32 %v720_v38  ;;  %v865_v38 = vld [vmem:[#allocation2 + $0x208] sm:$0xff] }
 0x5ce   :  { %3716 = vrcp.f32 %v654_v45 }
 0x5cf   :  { %3718 = vrcp.f32 %v3936_v17  ;;  %v912_v17 = vld [vmem:[#allocation2 + $0x278] sm:$0xff] }
 0x5d2   :  { %v3713_v52 = vpop.eup %3712 }
 0x5d3   :  { %v589_v48 = vmul.f32 %v3713_v52, %v3707_v31  ;;  %v3715_v55 = vpop.eup %3714 }
 0x5d4   :  { %v722_v56 = vmul.f32 %v3715_v55, %v3705_v22  ;;  %v3717_v58 = vpop.eup %3716  ;;  %v1010_v55 = vld [vmem:[#allocation2 + $0xb8] sm:$0xff] }
 0x5d5   :  { %v592_v53 = vpop.permute.xlu2 %591  ;;  %v656_v59 = vmul.f32 %v3717_v58, %v3709_v34  ;;  %v3719_v18 = vpop.eup %3718  ;;  %v869_v34 = vld [vmem:[#allocation2 + $0x228] sm:$0xff]  ;;  %v1009_v58 = vld [vmem:[#allocation2 + $0xb0] sm:$0xff] }
 0x5d6   :  { %612 = vmatpush.msrb.mxu1 %v592_v53  ;;  %v812_v20 = vmul.f32 64.0, %v3719_v18  ;;  %vm816_vm5 = vweird.f32 %v3719_v18  ;;  %v1011_v53 = vld [vmem:[#allocation2 + $0xc0] sm:$0xff] }
 0x5d7   :  { %3492 = vmatmul.msk.f32.vlgmr.msrb.gmra.mxu1 %vm238_vm2, %v589_v48  ;;  %v1012_v48 = vld [vmem:[#allocation2 + $0xc8] sm:$0xff] }
 0x5d8   :  { %744 = vmatpush.msra.mxu1 %v724_v54 }
 0x5de   :  { %v469_v51 = vpop.f32.mrf.mxu1 }
 0x5df   :  { %481 = vrot.lane.b32.xlu2 %v469_v51, %s3935_s11  ;;  %3498 = vmatmul.msk.f32.vlgmr.msra.gmra.mxu1 %vm238_vm2, %v722_v56 }
 0x5e3   :  { %v658_v60 = vpop.permute.xlu1 %657 }
 0x5e4   :  { %678 = vmatpush.msrb.mxu3 %v658_v60 }
 0x5e5   :  { %3495 = vmatmul.msk.f32.vlgmr.msrb.gmra.mxu3 %vm238_vm2, %v656_v59  ;;  %v1008_v59 = vld [vmem:[#allocation2 + $0xa8] sm:$0xff] }
 0x5e6   :  { %888 = vmatpush.msra.mxu3 %v871_v32  ;;  %v905_v32 = vld [vmem:[#allocation2 + $0x240] sm:$0xff] }
 0x5e8   :  { %889 = vmatpush.msra.mxu3 %v870_v33  ;;  %v1067_v33 = vld [vmem:[#allocation2 + $0x5b0] sm:$0xff] }
 0x5ea   :  { %890 = vmatpush.msra.mxu3 %v869_v34  ;;  %v1066_v34 = vld [vmem:[#allocation2 + $0x5a8] sm:$0xff] }
 0x5ec   :  { %891 = vmatpush.msra.mxu3 %v868_v35  ;;  %v1065_v35 = vld [vmem:[#allocation2 + $0x5a0] sm:$0xff] }
 0x5ee   :  { %892 = vmatpush.msra.mxu3 %v867_v36  ;;  %v1064_v36 = vld [vmem:[#allocation2 + $0x598] sm:$0xff] }
 0x5f0   :  { %893 = vmatpush.msra.mxu3 %v866_v37  ;;  %v1113_v37 = vld [vmem:[#allocation2 + $0x5f8] sm:$0xff] }
 0x5f2   :  { %894 = vmatpush.msra.mxu3 %v865_v38  ;;  %v3665_v38 = vld [vmem:[#allocation4 + $0x10] ss:$0 sm:$0xff] }
 0x5f4   :  { %895 = vmatpush.msra.mxu3 %v864_v39  ;;  %v1063_v39 = vld [vmem:[#allocation2 + $0x590] sm:$0xff] }
 0x5f6   :  { %1124 = vmatpush.msrb.mxu3 %v1113_v37 }
 0x639   :  { %v482_v2 = vpop.permute.xlu2 %481 }
 0x63a   :  { %v488_v3 = vsel %vm487_vm4, %v486_v1, %v482_v2  ;;  %v1006_v2 = vld [vmem:[#allocation2 + $0x98] sm:$0xff] }
 0x63b   :  { %3499 = vmatmul.msk.f32.vlgmr.msrb.gmra.mxu2 %vm114_vm0, %v488_v3  ;;  %v918_v3 = vld [vmem:[#allocation2 + $0x2a8] sm:$0xff] }
 0x63c   :  { %925 = vmatpush.msra.mxu0 %v918_v3 }
 0x654   :  { %v614_v4 = vpop.f32.mrf.mxu1 }
 0x655   :  { %750 = vrot.lane.b32.xlu1 %v614_v4, %s3933_s9 }
 0x65c   :  { %v746_v5 = vpop.f32.mrf.mxu1 }
 0x65d   :  { %758 = vrot.lane.b32.xlu2 %v746_v5, %s3935_s11 }
 0x668   :  { %v680_v6 = vpop.f32.mrf.mxu3 }
 0x669   :  { %754 = vrot.lane.b32.xlu0 %v680_v6, %s3934_s10  ;;  %v4123_v6 = vld [vmem:[#allocation4 + $0x50] ss:$0 sm:$0xff] }
 0x6b7   :  { %v759_v14 = vpop.permute.xlu2 %758 }
 0x6be   :  { %v797_v9 = vpop.f32.mrf.mxu2 }
 0x6bf   :  { %v798_v10 = vadd.f32 %v3661_v8, %v797_v9  ;;  %v917_v9 = vld [vmem:[#allocation2 + $0x2a0] sm:$0xff] }
 0x6c0   :  { %926 = vmatpush.msra.mxu0 %v917_v9 }
 0x6c1   :  { %v803_v19 = vadd.f32 %v798_v10, %v3979_v46  ;;  %v813_v46 = vsub.f32 1.0, %v812_v20  ;;  %v1001_v20 = vld [vmem:[%s5053_s1 + $0x8] sm:$0xff] }
 0x6c3   :  { %v805_v11 = vsel %vm114_vm0, %v803_v19, 0.0  ;;  %v814_v21 = vmul.f32 %v3719_v18, %v813_v46  ;;  %v910_v46 = vld [vmem:[#allocation2 + $0x268] sm:$0xff] }
 0x6c4   :  { %806 = vadd.xlane.f32.xlu1 %v805_v11  ;;  %v916_v11 = vld [vmem:[#allocation2 + $0x298] sm:$0xff] }
 0x6c5   :  { %v815_v22 = vadd.f32 %v3719_v18, %v814_v21  ;;  %927 = vmatpush.msra.mxu0 %v916_v11  ;;  %v909_v21 = vld [vmem:[#allocation2 + $0x260] sm:$0xff] }
 0x6c7   :  { %v751_v12 = vpop.permute.xlu1 %750  ;;  %v4106_v23 = vsel %vm816_vm5, %v3719_v18, %v815_v22  ;;  %v911_v18 = vld [vmem:[#allocation2 + $0x270] sm:$0xff]  ;;  %vm1221_vm5 = vcmask 65536  }
 0x6c8   :  { %v761_v13 = vsel %vm210_vm1, %v4074_v7, %v751_v12 }
 0x6db   :  { %v755_v57 = vpop.permute.xlu0 %754 }
 0x6dc   :  { %v762_v15 = vsel %vm485_vm3, %v761_v13, %v755_v57  ;;  %v1003_v13 = vld [vmem:[#allocation2 + $0x80] sm:$0xff]  ;;  %v915_v57 = vld [vmem:[#allocation2 + $0x290] sm:$0xff] }
 0x6dd   :  { %v763_v16 = vsel %vm487_vm4, %v762_v15, %v759_v14  ;;  %v1000_v14 = vld [vmem:[%s5053_s1] sm:$0xff]  ;;  %v914_v15 = vld [vmem:[#allocation2 + $0x288] sm:$0xff]  ;;  %928 = vmatpush.msra.mxu0 %v915_v57 }
 0x6de   :  { %3500 = vmatmul.msk.f32.gmra.mxu2 %vm114_vm0, %v763_v16  ;;  %v913_v16 = vld [vmem:[#allocation2 + $0x280] sm:$0xff] }
 0x6df   :  { %929 = vmatpush.msra.mxu0 %v914_v15 }
 0x6e1   :  { %930 = vmatpush.msra.mxu0 %v913_v16 }
 0x6e3   :  { %931 = vmatpush.msra.mxu0 %v912_v17 }
 0x6e5   :  { %932 = vmatpush.msra.mxu0 %v911_v18 }
 0x6e7   :  { %933 = vmatpush.msra.mxu0 %v910_v46 }
 0x6e9   :  { %934 = vmatpush.msra.mxu0 %v909_v21  ;;  %v1149_v21 = vld [vmem:[#allocation2 + $0x638] sm:$0xff] }
 0x737   :  { %v807_v24 = vpop.xlane.xlu1 %806 }
 0x738   :  { %v818_v7 = vmul.f32 %v4106_v23, %v807_v24 }
 0x73a   :  { %v4109_v25 = vsub.f32 %v803_v19, %v818_v7  ;;  %v1004_v19 = vld [vmem:[#allocation2 + $0x88] sm:$0xff]  ;;  %v908_v7 = vld [vmem:[#allocation2 + $0x258] sm:$0xff] }
 0x73b   :  { %935 = vmatpush.msra.mxu0 %v908_v7  ;;  %v1146_v7 = vld [vmem:[#allocation2 + $0x620] sm:$0xff] }
 0x73c   :  { %v822_v26 = vmul.f32 %v4109_v25, %v4109_v25 }
 0x73e   :  { %v824_v27 = vsel %vm114_vm0, %v822_v26, 0.0  ;;  %v1002_v26 = vld [vmem:[%s5053_s1 + $0x10] sm:$0x3] }
 0x73f   :  { %825 = vadd.xlane.f32.xlu2 %v824_v27 }
 0x761   :  { %v800_v28 = vpop.f32.mrf.mxu2 }
 0x762   :  { %v801_v29 = vadd.f32 %v3661_v8, %v800_v28  ;;  %v1005_v8 = vld [vmem:[#allocation2 + $0x90] sm:$0xff] }
 0x764   :  { %v4115_v30 = vadd.f32 %v801_v29, %v3987_v49  ;;  %v1018_v49 = vld [vmem:[#allocation2 + $0xf8] sm:$0xff]  ;;  %v907_v29 = vld [vmem:[#allocation2 + $0x250] sm:$0xff] }
 0x765   :  { %1021 = vmatpush.msrb.mxu1 %v1018_v49  ;;  %936 = vmatpush.msra.mxu0 %v907_v29  ;;  %v1112_v49 = vld [vmem:[#allocation2 + $0x5f0] sm:$0xff]  ;;  %v1143_v29 = vld [vmem:[#allocation2 + $0x608] sm:$0xff] }
 0x766   :  { %v808_v31 = vsel %vm114_vm0, %v4115_v30, 0.0  ;;  %1125 = vmatpush.msrb.mxu3 %v1112_v49 }
 0x767   :  { %809 = vadd.xlane.f32.xlu0 %v808_v31  ;;  %1022 = vmatpush.msrb.mxu1 %v1017_v40  ;;  %v906_v31 = vld [vmem:[#allocation2 + $0x248] sm:$0xff] }
 0x768   :  { %937 = vmatpush.msra.mxu0 %v906_v31  ;;  %v1111_v40 = vld [vmem:[#allocation2 + $0x5e8] sm:$0xff]  ;;  %v1142_v31 = vld [vmem:[#allocation2 + $0x600] sm:$0xff] }
 0x769   :  { %1023 = vmatpush.msrb.mxu1 %v1016_v41  ;;  %v1062_v41 = vld [vmem:[#allocation2 + $0x588] sm:$0xff]  ;;  %1126 = vmatpush.msrb.mxu3 %v1111_v40 }
 0x76a   :  { %938 = vmatpush.msra.mxu0 %v905_v32 }
 0x76b   :  { %1024 = vmatpush.msrb.mxu1 %v1015_v44  ;;  %v1047_v44 = vld [vmem:[#allocation4 + $0x18] sm:$0xff] }
 0x76c   :  { %1160 = vmatpush.msrb.mxu0 %v1149_v21 }
 0x76d   :  { %1025 = vmatpush.msrb.mxu1 %v1014_v47 }
 0x76f   :  { %1026 = vmatpush.msrb.mxu1 %v1013_v50  ;;  %v1061_v50 = vld [vmem:[#allocation2 + $0x580] sm:$0xff] }
 0x771   :  { %1027 = vmatpush.msrb.mxu1 %v1012_v48 }
 0x773   :  { %1028 = vmatpush.msrb.mxu1 %v1011_v53  ;;  %v1052_v53 = vrot.slane %v1047_v44, 7 }
 0x775   :  { %1029 = vmatpush.msrb.mxu1 %v1010_v55  ;;  %v1108_v55 = vld [vmem:[#allocation2 + $0x5d0] sm:$0xff] }
 0x777   :  { %1030 = vmatpush.msrb.mxu1 %v1009_v58  ;;  %v1107_v58 = vld [vmem:[#allocation2 + $0x5c8] sm:$0xff] }
 0x779   :  { %1031 = vmatpush.msrb.mxu1 %v1008_v59 }
 0x77b   :  { %1032 = vmatpush.msrb.mxu1 %v1007_v61 }
 0x77d   :  { %1033 = vmatpush.msrb.mxu1 %v1006_v2 }
 0x77f   :  { %1034 = vmatpush.msrb.mxu1 %v1005_v8 }
 0x781   :  { %1035 = vmatpush.msrb.mxu1 %v1004_v19 }
 0x783   :  { %1036 = vmatpush.msrb.mxu1 %v1003_v13 }
 0x784   :  { %1037 = vmatmul.f32.vlgmr.msrb.gmra.mxu1 %v1000_v14 }
 0x78c   :  { %1040 = vmatmul.f32.gmra.mxu1 %v1001_v20 }
 0x794   :  { %1043 = vmatmul.f32.gmra.mxu1 %v1002_v26  ;;  %v1145_v26 = vld [vmem:[#allocation2 + $0x618] sm:$0xff] }
 0x7b2   :  { %v826_v42 = vpop.xlane.xlu2 %825 }
 0x7b3   :  { %v830_v43 = vmul.f32 %v826_v42, %v4106_v23  ;;  %v1110_v42 = vld [vmem:[#allocation2 + $0x5e0] sm:$0xff] }
 0x7b4   :  { %1127 = vmatpush.msrb.mxu3 %v1110_v42 }
 0x7b5   :  { %v832_v45 = vadd.f32 1e-05, %v830_v43 }
 0x7b7   :  { %3720 = vrsqrt.f32 %v832_v45  ;;  %vm840_vm7 = vweird.f32 %v832_v45 }
 0x7bd   :  { %v3721_v52 = vpop.eup %3720 }
 0x7be   :  { %v835_v54 = vmul.f32 %v3721_v52, %v832_v45  ;;  %vm841_vm6 = vweird.f32 %v3721_v52  ;;  %v4147_v45 = vld [vmem:[#allocation4 + $0x58] ss:$0 sm:$0xff] }
 0x7bf   :  { %vm842_vm8 = vmor %vm840_vm7, %vm841_vm6  ;;  %vm1608_vm6 = vcmask 1046528   ;;  %vm2102_vm7 = vcmask 517120  }
 0x7c0   :  { %v836_v56 = vmul.f32 %v3721_v52, %v835_v54  ;;  %v1109_v54 = vld [vmem:[#allocation2 + $0x5d8] sm:$0xff] }
 0x7c1   :  { %1128 = vmatpush.msrb.mxu3 %v1109_v54  ;;  %v4219_v54 = vld [vmem:[#allocation4 + $0x108] ss:$0 sm:$0xff] }
 0x7c2   :  { %v837_v51 = vmul.f32 0.5, %v836_v56 }
 0x7c3   :  { %1129 = vmatpush.msrb.mxu3 %v1108_v55 }
 0x7c4   :  { %v838_v60 = vsub.f32 1.5, %v837_v51  ;;  %v1048_v51 = vld [vmem:[#allocation4 + $0x20] sm:$0x1] }
 0x7c5   :  { %v1057_v63 = vsel %vm1051_vm9, %v1048_v51, %v1052_v53  ;;  %1130 = vmatpush.msrb.mxu3 %v1107_v58  ;;  %v51_v58 = vlaneseq }
 0x7c6   :  { %v839_v1 = vmul.f32 %v3721_v52, %v838_v60 }
 0x7c8   :  { %v843_v4 = vsel %vm842_vm8, %v3721_v52, %v839_v1  ;;  %v1106_v1 = vld [vmem:[#allocation2 + $0x5c0] sm:$0xff] }
 0x7c9   :  { %v854_v5 = vmul.f32 %v843_v4, %v4109_v25  ;;  %1131 = vmatpush.msrb.mxu3 %v1106_v1 }
 0x7cb   :  { %v858_v10 = vmul.f32 %v4120_v0, %v854_v5  ;;  %v1053_v5 = vrot.slane %v1048_v51, 7 }
 0x7cd   :  { %v4127_v12 = vadd.f32 %v4123_v6, %v858_v10  ;;  %v1054_v9 = vsel %vm1051_vm9, %v1052_v53, %v1053_v5 }
 0x7cf   :  { %3501 = vmatmul.msk.f32.vlgmr.msra.gmra.mxu3 %vm114_vm0, %v4127_v12 }
 0x7da   :  { %v810_v22 = vpop.xlane.xlu0 %809 }
 0x7db   :  { %v819_v24 = vmul.f32 %v4106_v23, %v810_v22  ;;  %v1148_v22 = vld [vmem:[#allocation2 + $0x630] sm:$0xff] }
 0x7dc   :  { %1161 = vmatpush.msrb.mxu0 %v1148_v22 }
 0x7dd   :  { %v4139_v25 = vsub.f32 %v4115_v30, %v819_v24  ;;  %v1068_v30 = vld [vmem:[#allocation2 + $0x5b8] sm:$0xff] }
 0x7de   :  { %1088 = vmatpush.msra.mxu2 %v1068_v30  ;;  %v3667_v24 = vld [vmem:[#allocation4 + $0xf8] ss:$0 sm:$0xff] }
 0x7df   :  { %v823_v27 = vmul.f32 %v4139_v25, %v4139_v25 }
 0x7e0   :  { %1089 = vmatpush.msra.mxu2 %v1067_v33 }
 0x7e1   :  { %v827_v28 = vsel %vm114_vm0, %v823_v27, 0.0  ;;  %v1144_v27 = vld [vmem:[#allocation2 + $0x610] sm:$0xff] }
 0x7e2   :  { %828 = vadd.xlane.f32.xlu1 %v827_v28  ;;  %1090 = vmatpush.msra.mxu2 %v1066_v34 }
 0x7e4   :  { %1091 = vmatpush.msra.mxu2 %v1065_v35 }
 0x7e6   :  { %1092 = vmatpush.msra.mxu2 %v1064_v36  ;;  %v3668_v36 = vld [vmem:[#allocation4 + $0x100] ss:$0 sm:$0xff] }
 0x7e8   :  { %1093 = vmatpush.msra.mxu2 %v1063_v39 }
 0x7ea   :  { %1094 = vmatpush.msra.mxu2 %v1062_v41 }
 0x7ec   :  { %1095 = vmatpush.msra.mxu2 %v1061_v50 }
 0x801   :  { %v1038_v43 = vpop.f32.mrf.mxu1 }
 0x802   :  { %v1039_v47 = vadd.f32 %v3665_v38, %v1038_v43 }
 0x804   :  { %v4149_v52 = vadd.f32 %v1047_v44, %v1039_v47 }
 0x806   :  { %3503 = vmatmul.msk.f32.vlgmr.msra.gmra.mxu2 %vm114_vm0, %v4149_v52 }
 0x809   :  { %v1041_v62 = vpop.f32.mrf.mxu1 }
 0x80a   :  { %v1042_v2 = vadd.f32 %v3665_v38, %v1041_v62 }
 0x80c   :  { %v4156_v4 = vadd.f32 %v1057_v63, %v1042_v2 }
 0x80e   :  { %3504 = vmatmul.msk.f32.gmra.mxu2 %vm114_vm0, %v4156_v4 }
 0x811   :  { %v1044_v8 = vpop.f32.mrf.mxu1 }
 0x812   :  { %v1045_v10 = vadd.f32 %v3665_v38, %v1044_v8 }
 0x814   :  { %v4161_v13 = vadd.f32 %v1054_v9, %v1045_v10 }
 0x816   :  { %3505 = vmatmul.msk.f32.gmra.mxu2 %vm114_vm0, %v4161_v13 }
 0x852   :  { %v897_v48 = vpop.f32.mrf.mxu3 }
 0x853   :  { %v898_v56 = vadd.f32 %v4147_v45, %v897_v48 }
 0x855   :  { %v903_v59 = vmax.f32 %v898_v56, 0.0  ;;  %v829_v60 = vpop.xlane.xlu1 %828 }
 0x856   :  { %v831_v61 = vmul.f32 %v829_v60, %v4106_v23  ;;  %v55_v60 = vand.u32 127, %v51_v58 }
 0x857   :  { %939 = vmatmul.f32.vlgmr.msra.gmra.mxu0 %v903_v59  ;;  %v52_v59 = vshrl.u32 %v51_v58, 7 }
 0x858   :  { %v833_v3 = vadd.f32 1e-05, %v831_v61 }
 0x859   :  { %vm4231_vm13 = vcmp.gt.s32.totalorder %v55_v60, %v52_v59 }
 0x85a   :  { %3722 = vrsqrt.f32 %v833_v3  ;;  %vm850_vm11 = vweird.f32 %v833_v3 }
 0x860   :  { %v3723_v19 = vpop.eup %3722 }
 0x861   :  { %v845_v11 = vmul.f32 %v3723_v19, %v833_v3  ;;  %vm851_vm10 = vweird.f32 %v3723_v19  ;;  %v53_v3 = vadd.s32 8, %v52_v59 }
 0x862   :  { %vm852_vm12 = vmor %vm850_vm11, %vm851_vm10 }
 0x863   :  { %v846_v57 = vmul.f32 %v3723_v19, %v845_v11  ;;  %vm4238_vm15 = vcmp.gt.s32.totalorder %v55_v60, %v53_v3 }
 0x865   :  { %v847_v14 = vmul.f32 0.5, %v846_v57 }
 0x867   :  { %v848_v15 = vsub.f32 1.5, %v847_v14 }
 0x869   :  { %v849_v16 = vmul.f32 %v3723_v19, %v848_v15 }
 0x86b   :  { %v853_v17 = vsel %vm852_vm12, %v3723_v19, %v849_v16 }
 0x86c   :  { %v855_v18 = vmul.f32 %v853_v17, %v4139_v25 }
 0x86e   :  { %v859_v20 = vmul.f32 %v4120_v0, %v855_v18 }
 0x870   :  { %v4168_v46 = vadd.f32 %v4123_v6, %v859_v20  ;;  %v1147_v6 = vld [vmem:[#allocation2 + $0x628] sm:$0xff] }
 0x871   :  { %1162 = vmatpush.msrb.mxu0 %v1147_v6 }
 0x872   :  { %3502 = vmatmul.msk.f32.gmra.mxu3 %vm114_vm0, %v4168_v46 }
 0x873   :  { %1163 = vmatpush.msrb.mxu0 %v1146_v7 }
 0x875   :  { %1164 = vmatpush.msrb.mxu0 %v1145_v26 }
 0x877   :  { %1165 = vmatpush.msrb.mxu0 %v1144_v27 }
 0x879   :  { %1166 = vmatpush.msrb.mxu0 %v1143_v29 }
 0x87a   :  { %3506 = vmatmul.msk.f32.vlgmr.msrb.gmra.mxu3 %vm114_vm0, %v4149_v52 }
 0x87b   :  { %1167 = vmatpush.msrb.mxu0 %v1142_v31 }
 0x882   :  { %3507 = vmatmul.msk.f32.gmra.mxu3 %vm114_vm0, %v4156_v4 }
 0x889   :  { %v1097_v0 = vpop.f32.mrf.mxu2 }
 0x88a   :  { %3508 = vmatmul.msk.f32.gmra.mxu3 %vm114_vm0, %v4161_v13  ;;  %v4178_v25 = vadd.f32 %v3667_v24, %v1097_v0 }
 0x88c   :  { %1273 = vrot.lane.b32.xlu0 %v4178_v25, %s3930_s0 }
 0x891   :  { %v1100_v28 = vpop.f32.mrf.mxu2 }
 0x892   :  { %v1101_v40 = vadd.f32 %v3667_v24, %v1100_v28 }
 0x894   :  { %v1609_v18 = vrot.slane %v1101_v40, 1 }
 0x899   :  { %v1103_v32 = vpop.f32.mrf.mxu2 }
 0x89a   :  { %v4182_v30 = vadd.f32 %v3667_v24, %v1103_v32 }
 0x89c   :  { %v4261_v17 = vrot.slane %v4182_v30, 1 }
 0x89e   :  { %v4269_v20 = vsel %vm1608_vm6, %v1609_v18, %v4261_v17 }
 0x8d4   :  { %v4211_v42 = vpop.f32.mrf.mxu0 }
 0x8f5   :  { %v900_v33 = vpop.f32.mrf.mxu3 }
 0x8f6   :  { %v901_v34 = vadd.f32 %v4147_v45, %v900_v33 }
 0x8f8   :  { %v904_v35 = vmax.f32 %v901_v34, 0.0 }
 0x8fa   :  { %942 = vmatmul.f32.gmra.mxu0 %v904_v35 }
 0x8fd   :  { %v1133_v37 = vpop.f32.mrf.mxu3 }
 0x8fe   :  { %v4185_v38 = vadd.f32 %v3668_v36, %v1133_v37  ;;  %v1274_v43 = vpop.permute.xlu0 %1273 }
 0x900   :  { %1277 = vrot.lane.b32.xlu1 %v4185_v38, %s3930_s0 }
 0x902   :  { %3509 = vmatmul.msk.f32.vlgmr.msrb.gmra.mxu0 %vm114_vm0, %v4149_v52 }
 0x905   :  { %v1136_v39 = vpop.f32.mrf.mxu3 }
 0x906   :  { %v1137_v49 = vadd.f32 %v3668_v36, %v1136_v39 }
 0x908   :  { %1381 = vrot.lane.b32.xlu0 %v1137_v49, %s3931_s7  ;;  %1279 = vrot.lane.b32.xlu2 %v1137_v49, %s3930_s0  ;;  %v1613_v15 = vrot.slane %v1137_v49, 1 }
 0x909   :  { %3512 = vmatpush.xpose.msk.msrb.mxu2 %vm210_vm1, %v1137_v49  ;;  %1482 = vrot.lane.b32.xlu1 %v1137_v49, %s3932_s8 }
 0x90a   :  { %3510 = vmatmul.msk.f32.gmra.mxu0 %vm114_vm0, %v4156_v4 }
 0x90d   :  { %3513 = vmatpush.xpose.msk.msrb.mxu2 %vm210_vm1, %v4185_v38  ;;  %v1139_v11 = vpop.f32.mrf.mxu3 }
 0x90e   :  { %v1140_v57 = vadd.f32 %v3668_v36, %v1139_v11 }
 0x910   :  { %3514 = vmatmul.msk.f32.vlgmr.msrb.gmra.mxu2 %vm210_vm1, %v4178_v25  ;;  %1480 = vrot.lane.b32.xlu0 %v4185_v38, %s3932_s8  ;;  %v4245_v14 = vrot.slane %v1140_v57, 1 }
 0x911   :  { %1375 = vrot.lane.b32.xlu1 %v4178_v25, %s3931_s7 }
 0x912   :  { %3511 = vmatmul.msk.f32.gmra.mxu0 %vm114_vm0, %v4161_v13  ;;  %v4250_v16 = vsel %vm1608_vm6, %v1613_v15, %v4245_v14 }
 0x918   :  { %3515 = vmatmul.msk.f32.gmra.mxu2 %vm210_vm1, %v1101_v40  ;;  %1377 = vrot.lane.b32.xlu0 %v1101_v40, %s3931_s7 }
 0x919   :  { %1478 = vrot.lane.b32.xlu1 %v1101_v40, %s3932_s8 }
 0x962   :  { %v1280_v41 = vpop.permute.xlu2 %1279 }
 0x963   :  { %3519 = vmatpush.xpose.msk.msra.mxu1 %vm210_vm1, %v1280_v41 }
 0x972   :  { %v1278_v44 = vpop.permute.xlu1 %1277 }
 0x973   :  { %3520 = vmatpush.xpose.msk.msra.mxu1 %vm210_vm1, %v1278_v44 }
 0x976   :  { %3521 = vmatmul.msk.f32.vlgmr.msra.gmra.mxu1 %vm210_vm1, %v1274_v43 }
 0x977   :  { %v4215_v45 = vpop.f32.mrf.mxu0 }
 0x97a   :  { %v1382_v47 = vpop.permute.xlu0 %1381 }
 0x97b   :  { %v1483_v50 = vpop.permute.xlu1 %1482 }
 0x97c   :  { %3533 = vmatpush.xpose.msk.msrb.mxu1 %vm210_vm1, %v1483_v50 }
 0x97f   :  { %v1169_v48 = vpop.f32.mrf.mxu0 }
 0x980   :  { %v4225_v51 = vadd.f32 %v4219_v54, %v1169_v48 }
 0x982   :  { %v1481_v53 = vpop.permute.xlu0 %1480 }
 0x983   :  { %3534 = vmatpush.xpose.msk.msrb.mxu1 %vm210_vm1, %v1481_v53  ;;  %v1376_v36 = vpop.permute.xlu1 %1375 }
 0x987   :  { %v1172_v55 = vpop.f32.mrf.mxu0 }
 0x988   :  { %v4222_v56 = vadd.f32 %v4219_v54, %v1172_v55 }
 0x98a   :  { %3516 = vmatpush.msk.msra.mxu3 %vm1051_vm9, %v4222_v56  ;;  %v4279_v6 = vpop.permute.xlu0 %1377 }
 0x98c   :  { %1265 = vmatpush.msra.mxu3 %v4225_v51 }
 0x98e   :  { %3526 = vmatpush.xpose.msk.msrb.mxu3 %vm210_vm1, %v1382_v47 }
 0x993   :  { %v1207_v61 = vpop.f32.mrf.mxu2 }
 0x994   :  { %v1213_v63 = vmul.f32 0.25, %v1207_v61 }
 0x996   :  { %v1215_v1 = vsel %vm4231_vm13, -1e+30, %v1213_v63 }
 0x997   :  { %v1218_v2 = vsel %vm1217_vm14, %v1215_v1, -inf }
 0x998   :  { %1219 = vmax.xlane.f32.xlu2 %v1218_v2 }
 0x99b   :  { %v1210_v5 = vpop.f32.mrf.mxu2 }
 0x99c   :  { %v1214_v9 = vmul.f32 0.25, %v1210_v5 }
 0x99e   :  { %v1216_v10 = vsel %vm4238_vm15, -1e+30, %v1214_v9 }
 0x99f   :  { %v1222_v19 = vsel %vm1221_vm5, %v1216_v10, -inf }
 0x9a0   :  { %1223 = vmax.xlane.f32.xlu0 %v1222_v19 }
 0x9b0   :  { %1275 = vrot.lane.b32.xlu2 %v1101_v40, %s3930_s0 }
 0x9b4   :  { %1713 = vrot.lane.b32.xlu0 %v4250_v16, %s3930_s0 }
 0x9b8   :  { %1379 = vrot.lane.b32.xlu2 %v4185_v38, %s3931_s7  ;;  %v1479_v38 = vpop.permute.xlu1 %1478 }
 0x9c0   :  { %1476 = vrot.lane.b32.xlu2 %v4178_v25, %s3932_s8 }
 0x9c8   :  { %1715 = vrot.lane.b32.xlu2 %v4245_v14, %s3930_s0 }
 0x9d0   :  { %1711 = vrot.lane.b32.xlu2 %v4261_v17, %s3930_s0 }
 0x9d8   :  { %1814 = vrot.lane.b32.xlu2 %v4250_v16, %s3931_s7 }
 0x9e0   :  { %1911 = vrot.lane.b32.xlu2 %v4269_v20, %s3932_s8 }
 0x9f3   :  { %v1306_v21 = vpop.f32.mrf.mxu1 }
 0x9f4   :  { %v1312_v22 = vmul.f32 0.25, %v1306_v21 }
 0x9f6   :  { %v4275_v24 = vsel %vm4231_vm13, -1e+30, %v1312_v22 }
 0x9f7   :  { %v1316_v0 = vsel %vm1217_vm14, %v4275_v24, -inf }
 0xa09   :  { %1317 = vmax.xlane.f32.xlu2 %v1316_v0 }
 0xa0b   :  { %v1220_v7 = vpop.xlane.xlu2 %1219 }
 0xa0c   :  { %v1225_v25 = vsub.f32 %v1215_v1, %v1220_v7 }
 0xa0e   :  { %v1227_v26 = vmul.f32 1.442695, %v1225_v25 }
 0xa10   :  { %3724 = vpow2.f32 %v1227_v26 }
 0xa13   :  { %v1276_v27 = vpop.permute.xlu2 %1275  ;;  %v1224_v28 = vpop.xlane.xlu0 %1223 }
 0xa14   :  { %v1226_v29 = vsub.f32 %v1216_v10, %v1224_v28  ;;  %3522 = vmatmul.msk.f32.gmra.mxu1 %vm210_vm1, %v1276_v27 }
 0xa16   :  { %v3725_v31 = vpop.eup %3724  ;;  %v1229_v32 = vmul.f32 1.442695, %v1226_v29 }
 0xa17   :  { %v1231_v30 = vsel %vm1217_vm14, %v3725_v31, 0.0 }
 0xa18   :  { %3726 = vpow2.f32 %v1229_v32  ;;  %1232 = vadd.xlane.f32.xlu1 %v1231_v30 }
 0xa1b   :  { %v1380_v33 = vpop.permute.xlu2 %1379 }
 0xa1c   :  { %3527 = vmatpush.xpose.msk.msrb.mxu3 %vm210_vm1, %v1380_v33 }
 0xa1e   :  { %v3727_v34 = vpop.eup %3726 }
 0xa1f   :  { %v1234_v35 = vsel %vm1221_vm5, %v3727_v34, 0.0 }
 0xa20   :  { %1235 = vadd.xlane.f32.xlu0 %v1234_v35 }
 0xa21   :  { %1339 = vrot.lane.b32.xlu2 %v4225_v51, %s3930_s0 }
 0xa23   :  { %v1477_v37 = vpop.permute.xlu2 %1476 }
 0xa24   :  { %3535 = vmatmul.msk.f32.vlgmr.msrb.gmra.mxu1 %vm210_vm1, %v1477_v37 }
 0xa26   :  { %v1714_v49 = vpop.permute.xlu0 %1713 }
 0xa29   :  { %1543 = vrot.lane.b32.xlu2 %v4222_v56, %s3932_s8 }
 0xa2b   :  { %v1716_v39 = vpop.permute.xlu2 %1715 }
 0xa2c   :  { %3536 = vmatmul.msk.f32.gmra.mxu1 %vm210_vm1, %v1479_v38 }
 0xa2d   :  { %3547 = vmatpush.xpose.msk.msra.mxu1 %vm210_vm1, %v1716_v39 }
 0xa31   :  { %3548 = vmatpush.xpose.msk.msra.mxu1 %vm210_vm1, %v1714_v49  ;;  %1709 = vrot.lane.b32.xlu1 %v4269_v20, %s3930_s0 }
 0xa32   :  { %1541 = vrot.lane.b32.xlu2 %v4225_v51, %s3932_s8 }
 0xa33   :  { %v1712_v59 = vpop.permute.xlu2 %1711 }
 0xa34   :  { %1816 = vrot.lane.b32.xlu0 %v4245_v14, %s3931_s7 }
 0xa39   :  { %1917 = vrot.lane.b32.xlu1 %v4245_v14, %s3932_s8 }
 0xa3b   :  { %v1815_v5 = vpop.permute.xlu2 %1814 }
 0xa3c   :  { %1915 = vrot.lane.b32.xlu0 %v4250_v16, %s3932_s8 }
 0xa41   :  { %1810 = vrot.lane.b32.xlu1 %v4269_v20, %s3931_s7 }
 0xa43   :  { %v1912_v15 = vpop.permute.xlu2 %1911 }
 0xa44   :  { %1812 = vrot.lane.b32.xlu0 %v4261_v17, %s3931_s7 }
 0xa49   :  { %1913 = vrot.lane.b32.xlu1 %v4261_v17, %s3932_s8 }
 0xa7c   :  { %v1318_v22 = vpop.xlane.xlu2 %1317 }
 0xa84   :  { %v1340_v26 = vpop.permute.xlu2 %1339 }
 0xa8b   :  { %v1233_v40 = vpop.xlane.xlu1 %1232 }
 0xa8c   :  { %3728 = vrcp.f32 %v1233_v40  ;;  %v1544_v37 = vpop.permute.xlu2 %1543 }
 0xa91   :  { %v1309_v41 = vpop.f32.mrf.mxu1 }
 0xa92   :  { %v3729_v43 = vpop.eup %3728  ;;  %v1313_v44 = vmul.f32 0.25, %v1309_v41  ;;  %v1175_v41 = vpop.f32.mrf.mxu0 }
 0xa93   :  { %v1239_v47 = vmul.f32 %v3729_v43, %v3725_v31  ;;  %v1236_v50 = vpop.xlane.xlu0 %1235  ;;  %v1322_v43 = vsub.f32 %v4275_v24, %v1318_v22 }
 0xa94   :  { %3730 = vrcp.f32 %v1236_v50  ;;  %v4311_v48 = vsel %vm4238_vm15, -1e+30, %v1313_v44 }
 0xa95   :  { %3517 = vmatmul.msk.f32.vlgmr.msra.gmra.mxu3 %vm1217_vm14, %v1239_v47  ;;  %v1319_v53 = vsel %vm1221_vm5, %v4311_v48, -inf }
 0xa96   :  { %3540 = vmatpush.xpose.msk.msra.mxu3 %vm210_vm1, %v4245_v14  ;;  %1320 = vmax.xlane.f32.xlu0 %v1319_v53  ;;  %v1176_v53 = vadd.f32 %v4219_v54, %v1175_v41 }
 0xa9a   :  { %v3731_v55 = vpop.eup %3730  ;;  %3541 = vmatpush.xpose.msk.msra.mxu3 %vm210_vm1, %v4250_v16 }
 0xa9b   :  { %v1240_v58 = vmul.f32 %v3731_v55, %v3727_v34  ;;  %v1324_v55 = vmul.f32 1.442695, %v1322_v43 }
 0xa9d   :  { %3518 = vmatmul.msk.f32.gmra.mxu3 %vm1217_vm14, %v1240_v58  ;;  %3732 = vpow2.f32 %v1324_v55 }
 0xaa1   :  { %v1509_v60 = vpop.f32.mrf.mxu1 }
 0xaa2   :  { %v1515_v61 = vmul.f32 0.25, %v1509_v60 }
 0xaa3   :  { %v1710_v63 = vpop.permute.xlu1 %1709 }
 0xaa4   :  { %3549 = vmatmul.msk.f32.vlgmr.msra.gmra.mxu1 %vm210_vm1, %v1710_v63  ;;  %v4324_v1 = vsel %vm4231_vm13, -1e+30, %v1515_v61  ;;  %v4389_v63 = vrot.slane %v1176_v53, 1 }
 0xaa5   :  { %3528 = vmatmul.msk.f32.vlgmr.msrb.gmra.mxu3 %vm210_vm1, %v1376_v36  ;;  %v1519_v2 = vsel %vm1217_vm14, %v4324_v1, -inf }
 0xaa6   :  { %1520 = vmax.xlane.f32.xlu1 %v1519_v2  ;;  %v1817_v3 = vpop.permute.xlu0 %1816 }
 0xaa7   :  { %3554 = vmatpush.xpose.msk.msrb.mxu3 %vm210_vm1, %v1817_v3 }
 0xaa9   :  { %v1512_v9 = vpop.f32.mrf.mxu1 }
 0xaaa   :  { %v1516_v10 = vmul.f32 0.25, %v1512_v9 }
 0xaab   :  { %v1918_v19 = vpop.permute.xlu1 %1917  ;;  %3555 = vmatpush.xpose.msk.msrb.mxu3 %vm210_vm1, %v1815_v5 }
 0xaac   :  { %3550 = vmatmul.msk.f32.gmra.mxu1 %vm210_vm1, %v1712_v59  ;;  %v4334_v11 = vsel %vm4238_vm15, -1e+30, %v1516_v10  ;;  %v1542_v59 = vpop.permute.xlu2 %1541 }
 0xaad   :  { %3561 = vmatpush.xpose.msk.msrb.mxu1 %vm210_vm1, %v1918_v19  ;;  %3529 = vmatmul.msk.f32.gmra.mxu3 %vm210_vm1, %v4279_v6  ;;  %v1522_v57 = vsel %vm1221_vm5, %v4334_v11, -inf  ;;  %v1674_v19 = vrot.slane %v4222_v56, 1 }
 0xaae   :  { %1523 = vmax.xlane.f32.xlu0 %v1522_v57  ;;  %v1916_v14 = vpop.permute.xlu0 %1915 }
 0xaaf   :  { %v4409_v57 = vsel %vm1608_vm6, %v1674_v19, %v4389_v63 }
 0xab1   :  { %3562 = vmatpush.xpose.msk.msrb.mxu1 %vm210_vm1, %v1916_v14  ;;  %v4412_v14 = vpop.eup %3732 }
 0xab3   :  { %v1811_v16 = vpop.permute.xlu1 %1810 }
 0xab4   :  { %3563 = vmatmul.msk.f32.vlgmr.msrb.gmra.mxu1 %vm210_vm1, %v1912_v15 }
 0xab5   :  { %3542 = vmatmul.msk.f32.vlgmr.msra.gmra.mxu3 %vm210_vm1, %v4269_v20 }
 0xab6   :  { %v1813_v21 = vpop.permute.xlu0 %1812 }
 0xabb   :  { %v1914_v18 = vpop.permute.xlu1 %1913 }
 0xabc   :  { %3564 = vmatmul.msk.f32.gmra.mxu1 %vm210_vm1, %v1914_v18 }
 0xabd   :  { %3543 = vmatmul.msk.f32.gmra.mxu3 %vm210_vm1, %v4261_v17 }
 0xabf   :  { %1442 = vrot.lane.b32.xlu1 %v4222_v56, %s3931_s7 }
 0xac2   :  { %1341 = vrot.lane.b32.xlu0 %v4222_v56, %s3930_s0 }
 0xac5   :  { %3556 = vmatmul.msk.f32.vlgmr.msrb.gmra.mxu3 %vm210_vm1, %v1811_v16  ;;  %v1328_v16 = vsel %vm1217_vm14, %v4412_v14, 0.0 }
 0xaca   :  { %1440 = vrot.lane.b32.xlu0 %v4225_v51, %s3931_s7 }
 0xacd   :  { %3557 = vmatmul.msk.f32.gmra.mxu3 %vm210_vm1, %v1813_v21 }
 0xb09   :  { %v1321_v7 = vpop.xlane.xlu0 %1320 }
 0xb0a   :  { %v1323_v3 = vsub.f32 %v4311_v48, %v1321_v7 }
 0xb0c   :  { %v1326_v48 = vmul.f32 1.442695, %v1323_v3 }
 0xb0e   :  { %3734 = vpow2.f32 %v1326_v48 }
 0xb14   :  { %v4419_v18 = vpop.eup %3734 }
 0xb15   :  { %v1331_v22 = vsel %vm1221_vm5, %v4419_v18, 0.0 }
 0xb18   :  { %v4356_v20 = vpop.f32.mrf.mxu3 }
 0xb19   :  { %v1521_v28 = vpop.xlane.xlu1 %1520 }
 0xb1a   :  { %v1525_v15 = vsub.f32 %v4324_v1, %v1521_v28 }
 0xb1c   :  { %v1527_v56 = vmul.f32 1.442695, %v1525_v15 }
 0xb1e   :  { %3736 = vpow2.f32 %v1527_v56 }
 0xb20   :  { %v4358_v0 = vpop.f32.mrf.mxu3 }
 0xb21   :  { %v1742_v17 = vpop.f32.mrf.mxu1  ;;  %v1524_v33 = vpop.xlane.xlu0 %1523 }
 0xb22   :  { %v1748_v6 = vmul.f32 0.25, %v1742_v17  ;;  %v1526_v21 = vsub.f32 %v4334_v11, %v1524_v33 }
 0xb24   :  { %v4362_v25 = vsel %vm4231_vm13, -1e+30, %v1748_v6  ;;  %v1529_v17 = vmul.f32 1.442695, %v1526_v21  ;;  %v4424_v6 = vpop.eup %3736 }
 0xb25   :  { %v1752_v27 = vsel %vm1217_vm14, %v4362_v25, -inf  ;;  %v1531_v1 = vsel %vm1217_vm14, %v4424_v6, 0.0 }
 0xb26   :  { %1753 = vmax.xlane.f32.xlu2 %v1752_v27  ;;  %3738 = vpow2.f32 %v1529_v17 }
 0xb28   :  { %v1408_v51 = vpop.f32.mrf.mxu3 }
 0xb29   :  { %v1414_v29 = vmul.f32 0.25, %v1408_v51  ;;  %v1745_v31 = vpop.f32.mrf.mxu1 }
 0xb2a   :  { %v1749_v32 = vmul.f32 0.25, %v1745_v31 }
 0xb2b   :  { %v4368_v30 = vsel %vm4231_vm13, -1e+30, %v1414_v29 }
 0xb2c   :  { %v4372_v34 = vsel %vm4238_vm15, -1e+30, %v1749_v32  ;;  %v1418_v35 = vsel %vm1217_vm14, %v4368_v30, -inf  ;;  %v4428_v7 = vpop.eup %3738 }
 0xb2d   :  { %v1755_v36 = vsel %vm1221_vm5, %v4372_v34, -inf }
 0xb2e   :  { %1756 = vmax.xlane.f32.xlu1 %v1755_v36  ;;  %1419 = vmax.xlane.f32.xlu2 %v1418_v35 }
 0xb30   :  { %v1411_v38 = vpop.f32.mrf.mxu3 }
 0xb31   :  { %v1443_v39 = vpop.permute.xlu1 %1442  ;;  %v1944_v49 = vpop.f32.mrf.mxu1  ;;  %v1415_v27 = vmul.f32 0.25, %v1411_v38 }
 0xb32   :  { %v1950_v40 = vmul.f32 0.25, %v1944_v49  ;;  %3530 = vmatpush.msk.msra.mxu0 %vm1051_vm9, %v1443_v39 }
 0xb33   :  { %v4434_v11 = vsel %vm4238_vm15, -1e+30, %v1415_v27 }
 0xb34   :  { %v1342_v44 = vpop.permute.xlu0 %1341  ;;  %v4382_v47 = vsel %vm4231_vm13, -1e+30, %v1950_v40  ;;  %v1421_v51 = vsel %vm1221_vm5, %v4434_v11, -inf }
 0xb35   :  { %3523 = vmatpush.msk.msra.mxu2 %vm1051_vm9, %v1342_v44  ;;  %v1954_v50 = vsel %vm1217_vm14, %v4382_v47, -inf }
 0xb36   :  { %1955 = vmax.xlane.f32.xlu0 %v1954_v50 }
 0xb37   :  { %1367 = vmatpush.msra.mxu2 %v1340_v26  ;;  %v1534_v26 = vsel %vm1221_vm5, %v4428_v7, 0.0 }
 0xb38   :  { %v1641_v58 = vpop.f32.mrf.mxu3 }
 0xb39   :  { %3537 = vmatpush.msk.msrb.mxu2 %vm1051_vm9, %v1544_v37  ;;  %v1647_v24 = vmul.f32 0.25, %v1641_v58  ;;  %v1947_v60 = vpop.f32.mrf.mxu1 }
 0xb3a   :  { %v1951_v61 = vmul.f32 0.25, %v1947_v60 }
 0xb3b   :  { %1569 = vmatpush.msrb.mxu2 %v1542_v59  ;;  %v4393_v2 = vsel %vm4231_vm13, -1e+30, %v1647_v24 }
 0xb3c   :  { %v1441_v54 = vpop.permute.xlu0 %1440  ;;  %v1651_v5 = vsel %vm1217_vm14, %v4393_v2, -inf  ;;  %v4400_v9 = vsel %vm4238_vm15, -1e+30, %v1951_v61 }
 0xb3d   :  { %1468 = vmatpush.msra.mxu0 %v1441_v54  ;;  %v1957_v10 = vsel %vm1221_vm5, %v4400_v9, -inf }
 0xb3e   :  { %1652 = vmax.xlane.f32.xlu0 %v1651_v5  ;;  %1958 = vmax.xlane.f32.xlu1 %v1957_v10 }
 0xb3f   :  { %3544 = vmatpush.msk.msrb.mxu0 %vm1051_vm9, %v4389_v63 }
 0xb40   :  { %v1644_v28 = vpop.f32.mrf.mxu3 }
 0xb41   :  { %1701 = vmatpush.msrb.mxu0 %v4409_v57  ;;  %v1648_v59 = vmul.f32 0.25, %v1644_v28 }
 0xb43   :  { %v1650_v61 = vsel %vm4238_vm15, -1e+30, %v1648_v59 }
 0xb44   :  { %v1654_v54 = vsel %vm1221_vm5, %v1650_v61, -inf }
 0xb46   :  { %1776 = vrot.lane.b32.xlu2 %v4389_v63, %s3930_s0  ;;  %1329 = vadd.xlane.f32.xlu1 %v1328_v16 }
 0xb48   :  { %v1843_v29 = vpop.f32.mrf.mxu3 }
 0xb49   :  { %v1849_v10 = vmul.f32 0.25, %v1843_v29 }
 0xb4b   :  { %v1851_v8 = vsel %vm4231_vm13, -1e+30, %v1849_v10 }
 0xb4c   :  { %v1853_v16 = vsel %vm1217_vm14, %v1851_v8, -inf }
 0xb4e   :  { %1332 = vadd.xlane.f32.xlu1 %v1331_v22 }
 0xb50   :  { %v1846_v37 = vpop.f32.mrf.mxu3 }
 0xb51   :  { %v1850_v40 = vmul.f32 0.25, %v1846_v37 }
 0xb56   :  { %1532 = vadd.xlane.f32.xlu1 %v1531_v1 }
 0xb5e   :  { %1535 = vadd.xlane.f32.xlu1 %v1534_v26 }
 0xb66   :  { %1422 = vmax.xlane.f32.xlu1 %v1421_v51 }
 0xb99   :  { %v1754_v31 = vpop.xlane.xlu2 %1753 }
 0xb9a   :  { %v1758_v32 = vsub.f32 %v4362_v25, %v1754_v31  ;;  %v4447_v25 = vsel %vm4238_vm15, -1e+30, %v1850_v40 }
 0xb9b   :  { %v1856_v58 = vsel %vm1221_vm5, %v4447_v25, -inf }
 0xb9c   :  { %v1760_v33 = vmul.f32 1.442695, %v1758_v32 }
 0xb9e   :  { %3740 = vpow2.f32 %v1760_v33 }
 0xba1   :  { %v1757_v35 = vpop.xlane.xlu1 %1756  ;;  %v1420_v41 = vpop.xlane.xlu2 %1419 }
 0xba2   :  { %v1759_v36 = vsub.f32 %v4372_v34, %v1757_v35  ;;  %v1424_v34 = vsub.f32 %v4368_v30, %v1420_v41 }
 0xba4   :  { %v4440_v38 = vpop.eup %3740  ;;  %v1762_v39 = vmul.f32 1.442695, %v1759_v36 }
 0xba5   :  { %v1764_v49 = vsel %vm1217_vm14, %v4440_v38, 0.0 }
 0xba6   :  { %3742 = vpow2.f32 %v1762_v39  ;;  %1765 = vadd.xlane.f32.xlu1 %v1764_v49 }
 0xba9   :  { %v1956_v43 = vpop.xlane.xlu0 %1955  ;;  %v1777_v1 = vpop.permute.xlu2 %1776 }
 0xbaa   :  { %v1960_v44 = vsub.f32 %v4382_v47, %v1956_v43  ;;  %v1426_v47 = vmul.f32 1.442695, %v1424_v34 }
 0xbac   :  { %v4449_v50 = vpop.eup %3742  ;;  %v1962_v53 = vmul.f32 1.442695, %v1960_v44 }
 0xbad   :  { %v1767_v55 = vsel %vm1221_vm5, %v4449_v50, 0.0 }
 0xbae   :  { %3744 = vpow2.f32 %v1962_v53  ;;  %1768 = vadd.xlane.f32.xlu2 %v1767_v55  ;;  %1857 = vmax.xlane.f32.xlu1 %v1856_v58 }
 0xbaf   :  { %3746 = vpow2.f32 %v1426_v47 }
 0xbb1   :  { %v1959_v24 = vpop.xlane.xlu1 %1958  ;;  %v1653_v60 = vpop.xlane.xlu0 %1652 }
 0xbb2   :  { %v1657_v30 = vsub.f32 %v4393_v2, %v1653_v60 }
 0xbb4   :  { %v4458_v3 = vpop.eup %3744  ;;  %v1659_v19 = vmul.f32 1.442695, %v1657_v30 }
 0xbb5   :  { %v1966_v5 = vsel %vm1217_vm14, %v4458_v3, 0.0  ;;  %v4464_v15 = vpop.eup %3746 }
 0xbb6   :  { %1655 = vmax.xlane.f32.xlu2 %v1654_v54  ;;  %1967 = vadd.xlane.f32.xlu0 %v1966_v5  ;;  %v1430_v2 = vsel %vm1217_vm14, %v4464_v15, 0.0 }
 0xbb9   :  { %v1330_v48 = vpop.xlane.xlu1 %1329 }
 0xbba   :  { %3748 = vrcp.f32 %v1330_v48 }
 0xbbb   :  { %3750 = vpow2.f32 %v1659_v19 }
 0xbbe   :  { %1854 = vmax.xlane.f32.xlu2 %v1853_v16  ;;  %1431 = vadd.xlane.f32.xlu0 %v1430_v2 }
 0xbc0   :  { %v3749_v56 = vpop.eup %3748 }
 0xbc1   :  { %v1336_v21 = vmul.f32 %v3749_v56, %v4412_v14  ;;  %v1333_v22 = vpop.xlane.xlu1 %1332  ;;  %v4472_v17 = vpop.eup %3750 }
 0xbc2   :  { %3752 = vrcp.f32 %v1333_v22  ;;  %v1663_v62 = vsel %vm1217_vm14, %v4472_v17, 0.0 }
 0xbc3   :  { %3524 = vmatmul.msk.f32.vlgmr.msra.gmra.mxu2 %vm1217_vm14, %v1336_v21 }
 0xbc4   :  { %3551 = vmatpush.msk.msra.mxu2 %vm1051_vm9, %v1777_v1 }
 0xbc6   :  { %1664 = vadd.xlane.f32.xlu0 %v1663_v62 }
 0xbc7   :  { %1774 = vrot.lane.b32.xlu1 %v4409_v57, %s3930_s0 }
 0xbc8   :  { %v3753_v26 = vpop.eup %3752 }
 0xbc9   :  { %v1533_v27 = vpop.xlane.xlu1 %1532  ;;  %v1337_v14 = vmul.f32 %v3753_v26, %v4419_v18 }
 0xbca   :  { %3754 = vrcp.f32 %v1533_v27 }
 0xbcb   :  { %3525 = vmatmul.msk.f32.gmra.mxu2 %vm1217_vm14, %v1337_v14 }
 0xbd0   :  { %v3755_v51 = vpop.eup %3754 }
 0xbd1   :  { %v1539_v28 = vmul.f32 %v3755_v51, %v4424_v6  ;;  %v1536_v29 = vpop.xlane.xlu1 %1535  ;;  %v1961_v6 = vsub.f32 %v4400_v9, %v1959_v24 }
 0xbd2   :  { %3756 = vrcp.f32 %v1536_v29 }
 0xbd3   :  { %3538 = vmatmul.msk.f32.vlgmr.msrb.gmra.mxu2 %vm1217_vm14, %v1539_v28  ;;  %v1964_v39 = vmul.f32 1.442695, %v1961_v6 }
 0xbd8   :  { %v3757_v31 = vpop.eup %3756 }
 0xbd9   :  { %v1423_v32 = vpop.xlane.xlu1 %1422  ;;  %v1540_v33 = vmul.f32 %v3757_v31, %v4428_v7 }
 0xbda   :  { %v1425_v35 = vsub.f32 %v4434_v11, %v1423_v32 }
 0xbdb   :  { %3539 = vmatmul.msk.f32.gmra.mxu2 %vm1217_vm14, %v1540_v33 }
 0xbdc   :  { %v1428_v36 = vmul.f32 1.442695, %v1425_v35 }
 0xbde   :  { %3758 = vpow2.f32 %v1428_v36 }
 0xbdf   :  { %3760 = vpow2.f32 %v1964_v39 }
 0xbe4   :  { %v3759_v18 = vpop.eup %3758 }
 0xbe5   :  { %v1433_v37 = vsel %vm1221_vm5, %v3759_v18, 0.0  ;;  %v4491_v40 = vpop.eup %3760 }
 0xbe6   :  { %1434 = vadd.xlane.f32.xlu2 %v1433_v37  ;;  %v1969_v11 = vsel %vm1221_vm5, %v4491_v40, 0.0 }
 0xbfe   :  { %1976 = vrot.lane.b32.xlu2 %v4409_v57, %s3932_s8 }
 0xc19   :  { %v1766_v7 = vpop.xlane.xlu1 %1765 }
 0xc21   :  { %v1769_v49 = vpop.xlane.xlu2 %1768  ;;  %v1858_v53 = vpop.xlane.xlu1 %1857 }
 0xc22   :  { %v1860_v47 = vsub.f32 %v4447_v25, %v1858_v53 }
 0xc27   :  { %1970 = vadd.xlane.f32.xlu2 %v1969_v11  ;;  %v2054_v11 = vld [vmem:[#allocation2 + $0x668] sm:$0xff] }
 0xc29   :  { %v1656_v41 = vpop.xlane.xlu2 %1655  ;;  %v1968_v43 = vpop.xlane.xlu0 %1967 }
 0xc2a   :  { %v1658_v44 = vsub.f32 %v1650_v61, %v1656_v41  ;;  %v1863_v61 = vmul.f32 1.442695, %v1860_v47 }
 0xc2c   :  { %v1661_v34 = vmul.f32 1.442695, %v1658_v44  ;;  %v2053_v44 = vld [vmem:[#allocation2 + $0x660] sm:$0xff] }
 0xc2e   :  { %3762 = vpow2.f32 %v1661_v34  ;;  %v2051_v34 = vld [vmem:[#allocation2 + $0x650] sm:$0xff] }
 0xc2f   :  { %3764 = vrcp.f32 %v1766_v7 }
 0xc31   :  { %v1855_v55 = vpop.xlane.xlu2 %1854  ;;  %v1432_v58 = vpop.xlane.xlu0 %1431 }
 0xc32   :  { %v1859_v9 = vsub.f32 %v1851_v8, %v1855_v55  ;;  %3766 = vrcp.f32 %v1432_v58  ;;  %v2050_v55 = vld [vmem:[#allocation2 + $0x648] sm:$0xff] }
 0xc34   :  { %v3763_v59 = vpop.eup %3762  ;;  %v1861_v24 = vmul.f32 1.442695, %v1859_v9 }
 0xc35   :  { %v1666_v60 = vsel %vm1221_vm5, %v3763_v59, 0.0  ;;  %v3765_v30 = vpop.eup %3764 }
 0xc36   :  { %3768 = vpow2.f32 %v1861_v24  ;;  %1667 = vadd.xlane.f32.xlu0 %v1666_v60  ;;  %v1772_v5 = vmul.f32 %v3765_v30, %v4440_v38 }
 0xc37   :  { %3770 = vrcp.f32 %v1769_v49  ;;  %v2055_v49 = vld [vmem:[#allocation2 + $0x670] sm:$0xff] }
 0xc38   :  { %v3767_v54 = vpop.eup %3766  ;;  %3772 = vpow2.f32 %v1863_v61 }
 0xc39   :  { %v1438_v10 = vmul.f32 %v3767_v54, %v4464_v15  ;;  %v1775_v19 = vpop.permute.xlu1 %1774 }
 0xc3a   :  { %1802 = vmatpush.msra.mxu2 %v1775_v19 }
 0xc3b   :  { %3531 = vmatmul.msk.f32.vlgmr.msra.gmra.mxu0 %vm1217_vm14, %v1438_v10  ;;  %3552 = vmatmul.msk.f32.vlgmr.msra.gmra.mxu2 %vm1217_vm14, %v1772_v5 }
 0xc3c   :  { %v4501_v25 = vpop.eup %3768 }
 0xc3d   :  { %v1865_v48 = vsel %vm1217_vm14, %v4501_v25, 0.0  ;;  %v3771_v8 = vpop.eup %3770 }
 0xc3e   :  { %1866 = vadd.xlane.f32.xlu1 %v1865_v48  ;;  %v1773_v16 = vmul.f32 %v3771_v8, %v4449_v50  ;;  %v4506_v2 = vpop.eup %3772  ;;  %v1665_v50 = vpop.xlane.xlu0 %1664 }
 0xc3f   :  { %v1868_v38 = vsel %vm1221_vm5, %v4506_v2, 0.0 }
 0xc43   :  { %3553 = vmatmul.msk.f32.gmra.mxu2 %vm1217_vm14, %v1773_v16  ;;  %v3666_v16 = vld [vmem:[#allocation4 + $0x60] ss:$0 sm:$0xff] }
 0xc46   :  { %1869 = vadd.xlane.f32.xlu1 %v1868_v38  ;;  %v1369_v15 = vpop.f32.mrf.mxu2 }
 0xc4a   :  { %1978 = vrot.lane.b32.xlu0 %v4389_v63, %s3932_s8 }
 0xc4e   :  { %v1372_v21 = vpop.f32.mrf.mxu2 }
 0xc52   :  { %1877 = vrot.lane.b32.xlu0 %v4389_v63, %s3931_s7 }
 0xc56   :  { %v1571_v27 = vpop.f32.mrf.mxu2 }
 0xc59   :  { %v1435_v56 = vpop.xlane.xlu2 %1434 }
 0xc5a   :  { %3774 = vrcp.f32 %v1435_v56  ;;  %1875 = vrot.lane.b32.xlu0 %v4409_v57, %s3931_s7 }
 0xc5b   :  { %3776 = vrcp.f32 %v1665_v50 }
 0xc5e   :  { %v4523_v28 = vpop.f32.mrf.mxu2 }
 0xc60   :  { %v3775_v22 = vpop.eup %3774 }
 0xc61   :  { %v1439_v1 = vmul.f32 %v3775_v22, %v3759_v18  ;;  %v3777_v62 = vpop.eup %3776  ;;  %v1977_v51 = vpop.permute.xlu2 %1976 }
 0xc62   :  { %1579 = vrot.lane.b32.xlu0 %v1369_v15, %s3933_s9  ;;  %v1671_v26 = vmul.f32 %v3777_v62, %v4472_v17  ;;  %v944_v15 = vadd.f32 %v3666_v16, %v4215_v45 }
 0xc63   :  { %3532 = vmatmul.msk.f32.gmra.mxu0 %vm1217_vm14, %v1439_v1  ;;  %v3670_v1 = vld [vmem:[#allocation4 + $0x110] ss:$0 sm:$0xff] }
 0xc64   :  { %v947_v50 = vadd.f32 %v944_v15, %v4168_v46 }
 0xc6a   :  { %1595 = vrot.lane.b32.xlu0 %v1571_v27, %s3935_s11 }
 0xc6b   :  { %3545 = vmatmul.msk.f32.vlgmr.msrb.gmra.mxu0 %vm1217_vm14, %v1671_v26 }
 0xc9a   :  { %v1971_v31 = vpop.xlane.xlu2 %1970 }
 0xca9   :  { %v1668_v63 = vpop.xlane.xlu0 %1667 }
 0xcaa   :  { %3778 = vrcp.f32 %v1668_v63 }
 0xcab   :  { %3780 = vrcp.f32 %v1968_v43 }
 0xcac   :  { %3782 = vrcp.f32 %v1971_v31 }
 0xcb0   :  { %v3779_v57 = vpop.eup %3778 }
 0xcb1   :  { %v1672_v14 = vmul.f32 %v3779_v57, %v3763_v59  ;;  %v3781_v17 = vpop.eup %3780  ;;  %v1867_v35 = vpop.xlane.xlu1 %1866  ;;  %v2049_v59 = vld [vmem:[#allocation2 + $0x640] sm:$0xff] }
 0xcb2   :  { %v1974_v33 = vmul.f32 %v3781_v17, %v4458_v3  ;;  %v3783_v18 = vpop.eup %3782  ;;  %3784 = vrcp.f32 %v1867_v35  ;;  %v2056_v3 = vld [vmem:[#allocation2 + $0x678] sm:$0xff] }
 0xcb3   :  { %3546 = vmatmul.msk.f32.gmra.mxu0 %vm1217_vm14, %v1672_v14  ;;  %v1975_v6 = vmul.f32 %v3783_v18, %v4491_v40  ;;  %2075 = vmatpush.msra.mxu3 %v2056_v3  ;;  %v2052_v40 = vld [vmem:[#allocation2 + $0x658] sm:$0xff] }
 0xcb5   :  { %2076 = vmatpush.msra.mxu3 %v2055_v49 }
 0xcb7   :  { %2077 = vmatpush.msra.mxu3 %v2054_v11 }
 0xcb8   :  { %v1470_v29 = vpop.f32.mrf.mxu0  ;;  %v3785_v7 = vpop.eup %3784 }
 0xcb9   :  { %1587 = vrot.lane.b32.xlu1 %v1470_v29, %s3934_s10  ;;  %v1870_v39 = vpop.xlane.xlu1 %1869  ;;  %v1873_v41 = vmul.f32 %v3785_v7, %v4501_v25  ;;  %2078 = vmatpush.msra.mxu3 %v2053_v44 }
 0xcba   :  { %3786 = vrcp.f32 %v1870_v39 }
 0xcbb   :  { %2079 = vmatpush.msra.mxu3 %v2052_v40 }
 0xcbc   :  { %v1979_v32 = vpop.permute.xlu0 %1978 }
 0xcbd   :  { %3565 = vmatpush.msk.msrb.mxu2 %vm1051_vm9, %v1979_v32  ;;  %2080 = vmatpush.msra.mxu3 %v2051_v34 }
 0xcbe   :  { %v1804_v36 = vpop.f32.mrf.mxu2 }
 0xcbf   :  { %2014 = vrot.lane.b32.xlu0 %v1804_v36, %s3933_s9  ;;  %2004 = vmatpush.msrb.mxu2 %v1977_v51 }
 0xcc0   :  { %3566 = vmatmul.msk.f32.vlgmr.msrb.gmra.mxu2 %vm1217_vm14, %v1974_v33  ;;  %v3787_v53 = vpop.eup %3786  ;;  %2081 = vmatpush.msra.mxu3 %v2050_v55 }
 0xcc1   :  { %v1874_v58 = vmul.f32 %v3787_v53, %v4506_v2  ;;  %v941_v2 = vadd.f32 %v3666_v16, %v4211_v42  ;;  %v2174_v16 = vld [vmem:[#allocation2 + $0x688] sm:$0xff] }
 0xcc2   :  { %2082 = vmatpush.msra.mxu3 %v2049_v59 }
 0xcc3   :  { %v946_v38 = vadd.f32 %v941_v2, %v4127_v12  ;;  %v2173_v2 = vld [vmem:[#allocation2 + $0x680] sm:$0xff] }
 0xcc4   :  { %v1878_v37 = vpop.permute.xlu0 %1877 }
 0xcc5   :  { %3558 = vmatpush.msk.msra.mxu0 %vm1051_vm9, %v1878_v37  ;;  %v948_v56 = vsel %vm114_vm0, %v946_v38, 0.0 }
 0xcc6   :  { %v1807_v5 = vpop.f32.mrf.mxu2 }
 0xcc7   :  { %1581 = vrot.lane.b32.xlu0 %v1372_v21, %s3933_s9  ;;  %v951_v21 = vsel %vm114_vm0, %v947_v50, 0.0 }
 0xcc8   :  { %3567 = vmatmul.msk.f32.gmra.mxu2 %vm1217_vm14, %v1975_v6 }
 0xccc   :  { %v1876_v43 = vpop.permute.xlu0 %1875 }
 0xccd   :  { %1903 = vmatpush.msra.mxu0 %v1876_v43 }
 0xcce   :  { %3559 = vmatmul.msk.f32.vlgmr.msra.gmra.mxu0 %vm1217_vm14, %v1873_v41 }
 0xcd4   :  { %v1580_v47 = vpop.permute.xlu0 %1579 }
 0xcd5   :  { %v1601_v24 = vsel %vm210_vm1, %v4356_v20, %v1580_v47 }
 0xcd6   :  { %3560 = vmatmul.msk.f32.gmra.mxu0 %vm1217_vm14, %v1874_v58 }
 0xcdc   :  { %v1596_v30 = vpop.permute.xlu0 %1595 }
 0xce0   :  { %v1473_v9 = vpop.f32.mrf.mxu0 }
 0xce1   :  { %1589 = vrot.lane.b32.xlu2 %v1473_v9, %s3934_s10 }
 0xce8   :  { %v1703_v10 = vpop.f32.mrf.mxu0 }
 0xd2b   :  { %v1588_v60 = vpop.permute.xlu1 %1587 }
 0xd2c   :  { %v1603_v54 = vsel %vm485_vm3, %v1601_v24, %v1588_v60 }
 0xd2d   :  { %v1605_v61 = vsel %vm487_vm4, %v1603_v54, %v1596_v30 }
 0xd2e   :  { %3568 = vmatmul.msk.f32.vlgmr.msra.gmra.mxu3 %vm114_vm0, %v1605_v61 }
 0xd30   :  { %v1706_v19 = vpop.f32.mrf.mxu0 }
 0xd31   :  { %v2015_v22 = vpop.permute.xlu0 %2014 }
 0xd32   :  { %v2036_v57 = vsel %vm210_vm1, %v1703_v10, %v2015_v22 }
 0xd39   :  { %v1582_v63 = vpop.permute.xlu0 %1581 }
 0xd3a   :  { %v1602_v46 = vsel %vm210_vm1, %v4358_v0, %v1582_v63 }
 0xd3b   :  { %v1590_v51 = vpop.permute.xlu2 %1589 }
 0xd3c   :  { %v1604_v31 = vsel %vm485_vm3, %v1602_v46, %v1590_v51  ;;  %v2263_v46 = vld [vmem:[#allocation2 + $0x730] sm:$0xff] }
 0xd43   :  { %v2006_v25 = vpop.f32.mrf.mxu2 }
 0xd44   :  { %2030 = vrot.lane.b32.xlu1 %v2006_v25, %s3935_s11  ;;  %v2179_v25 = vld [vmem:[#allocation2 + $0x6b0] sm:$0xff] }
 0xd4b   :  { %v1905_v48 = vpop.f32.mrf.mxu0  ;;  %v2009_v20 = vpop.f32.mrf.mxu2 }
 0xd4c   :  { %2016 = vrot.lane.b32.xlu1 %v1807_v5, %s3933_s9  ;;  %2022 = vrot.lane.b32.xlu0 %v1905_v48, %s3934_s10  ;;  %v2178_v48 = vld [vmem:[#allocation2 + $0x6a8] sm:$0xff] }
 0xd53   :  { %v1908_v8 = vpop.f32.mrf.mxu0 }
 0xd54   :  { %2032 = vrot.lane.b32.xlu1 %v2009_v20, %s3935_s11  ;;  %1597 = vrot.lane.b32.xlu0 %v4523_v28, %s3935_s11  ;;  %v2177_v20 = vld [vmem:[#allocation2 + $0x6a0] sm:$0xff] }
 0xd5c   :  { %2024 = vrot.lane.b32.xlu0 %v1908_v8, %s3934_s10  ;;  %v2175_v8 = vld [vmem:[#allocation2 + $0x690] sm:$0xff] }
 0xd86   :  { %949 = vadd.xlane.f32.xlu0 %v948_v56 }
 0xd8e   :  { %952 = vadd.xlane.f32.xlu0 %v951_v21 }
 0xdb1   :  { %v2084_v62 = vpop.f32.mrf.mxu3 }
 0xdb2   :  { %v2085_v26 = vadd.f32 %v3670_v1, %v2084_v62 }
 0xdb4   :  { %v2093_v27 = vadd.f32 %v2085_v26, %v4149_v52 }
 0xdb6   :  { %v2096_v42 = vsel %vm114_vm0, %v2093_v27, 0.0  ;;  %v2031_v12 = vpop.permute.xlu1 %2030 }
 0xdb7   :  { %2097 = vadd.xlane.f32.xlu1 %v2096_v42  ;;  %v2225_v42 = vld [vmem:[#allocation2 + $0x6f8] sm:$0xff] }
 0xdb8   :  { %2242 = vmatpush.msra.mxu1 %v2225_v42 }
 0xdbe   :  { %v2023_v45 = vpop.permute.xlu0 %2022  ;;  %v2017_v29 = vpop.permute.xlu1 %2016 }
 0xdbf   :  { %v2038_v14 = vsel %vm485_vm3, %v2036_v57, %v2023_v45  ;;  %v2037_v35 = vsel %vm210_vm1, %v1706_v19, %v2017_v29  ;;  %v2180_v19 = vld [vmem:[#allocation2 + $0x6b8] sm:$0xff]  ;;  %v4600_v57 = vld [vmem:[#allocation4 + $0x120] ss:$0 sm:$0xff]  ;;  %v2262_v29 = vld [vmem:[#allocation2 + $0x728] sm:$0xff] }
 0xdc0   :  { %v2040_v28 = vsel %vm487_vm4, %v2038_v14, %v2031_v12  ;;  %2200 = vmatpush.msrb.mxu0 %v2180_v19  ;;  %v2264_v12 = vld [vmem:[#allocation2 + $0x738] sm:$0xff]  ;;  %v2224_v14 = vld [vmem:[#allocation2 + $0x6f0] sm:$0xff] }
 0xdc1   :  { %v2044_v52 = vrot.slane %v2040_v28, 7  ;;  %2275 = vmatpush.msra.mxu2 %v2264_v12  ;;  %2243 = vmatpush.msra.mxu1 %v2224_v14  ;;  %v2223_v28 = vld [vmem:[#allocation2 + $0x6e8] sm:$0xff] }
 0xdc2   :  { %2201 = vmatpush.msrb.mxu0 %v2179_v25 }
 0xdc3   :  { %2276 = vmatpush.msra.mxu2 %v2263_v46  ;;  %2244 = vmatpush.msra.mxu1 %v2223_v28 }
 0xdc4   :  { %2202 = vmatpush.msrb.mxu0 %v2178_v48  ;;  %v3673_v48 = vld [vmem:[#allocation4 + $0x68] ss:$0 sm:$0xff] }
 0xdc5   :  { %2277 = vmatpush.msra.mxu2 %v2262_v29 }
 0xdc6   :  { %v1598_v17 = vpop.permute.xlu0 %1597  ;;  %v2033_v18 = vpop.permute.xlu1 %2032  ;;  %2203 = vmatpush.msrb.mxu0 %v2177_v20 }
 0xdc7   :  { %v1606_v32 = vsel %vm487_vm4, %v1604_v31, %v1598_v17  ;;  %v2261_v17 = vld [vmem:[#allocation2 + $0x720] sm:$0xff] }
 0xdc8   :  { %v2048_v33 = vsel %vm1051_vm9, %v1606_v32, %v2044_v52  ;;  %2278 = vmatpush.msra.mxu2 %v2261_v17  ;;  %v2221_v32 = vld [vmem:[#allocation2 + $0x6d8] sm:$0xff] }
 0xdc9   :  { %3569 = vmatmul.msk.f32.gmra.mxu3 %vm114_vm0, %v2048_v33  ;;  %v2260_v33 = vld [vmem:[#allocation2 + $0x718] sm:$0xff] }
 0xdca   :  { %2279 = vmatpush.msra.mxu2 %v2260_v33 }
 0xdce   :  { %v2025_v36 = vpop.permute.xlu0 %2024 }
 0xdcf   :  { %v2039_v0 = vsel %vm485_vm3, %v2037_v35, %v2025_v36  ;;  %v2220_v36 = vld [vmem:[#allocation2 + $0x6d0] sm:$0xff] }
 0xdd0   :  { %v2041_v37 = vsel %vm487_vm4, %v2039_v0, %v2033_v18  ;;  %v2259_v18 = vld [vmem:[#allocation2 + $0x710] sm:$0xff] }
 0xdd1   :  { %v2045_v6 = vrot.slane %v2041_v37, 7  ;;  %2280 = vmatpush.msra.mxu2 %v2259_v18  ;;  %v2219_v37 = vld [vmem:[#allocation2 + $0x6c8] sm:$0xff] }
 0xdd3   :  { %v2046_v39 = vsel %vm1051_vm9, %v2044_v52, %v2045_v6  ;;  %v2222_v52 = vld [vmem:[#allocation2 + $0x6e0] sm:$0xff]  ;;  %v2258_v6 = vld [vmem:[#allocation2 + $0x708] sm:$0xff] }
 0xdd4   :  { %3570 = vmatmul.msk.f32.gmra.mxu3 %vm114_vm0, %v2046_v39  ;;  %2245 = vmatpush.msra.mxu1 %v2222_v52 }
 0xdd5   :  { %2281 = vmatpush.msra.mxu2 %v2258_v6 }
 0xdd6   :  { %2246 = vmatpush.msra.mxu1 %v2221_v32 }
 0xdd8   :  { %2247 = vmatpush.msra.mxu1 %v2220_v36 }
 0xdda   :  { %2248 = vmatpush.msra.mxu1 %v2219_v37 }
 0xdf9   :  { %v950_v43 = vpop.xlane.xlu0 %949 }
 0xdfa   :  { %v954_v40 = vmul.f32 %v950_v43, %v4106_v23 }
 0xdfc   :  { %v4579_v55 = vsub.f32 %v946_v38, %v954_v40 }
 0xdfe   :  { %v958_v47 = vmul.f32 %v4579_v55, %v4579_v55 }
 0xe00   :  { %v960_v54 = vsel %vm114_vm0, %v958_v47, 0.0 }
 0xe01   :  { %v953_v9 = vpop.xlane.xlu0 %952 }
 0xe02   :  { %v955_v59 = vmul.f32 %v953_v9, %v4106_v23 }
 0xe04   :  { %v4586_v30 = vsub.f32 %v947_v50, %v955_v59 }
 0xe06   :  { %v959_v5 = vmul.f32 %v4586_v30, %v4586_v30 }
 0xe08   :  { %v963_v10 = vsel %vm114_vm0, %v959_v5, 0.0 }
 0xe2a   :  { %v2098_v3 = vpop.xlane.xlu1 %2097 }
 0xe2b   :  { %v2106_v49 = vmul.f32 %v2098_v3, %v4106_v23  ;;  %v2218_v3 = vld [vmem:[#allocation2 + $0x6c0] sm:$0xff] }
 0xe2c   :  { %2249 = vmatpush.msra.mxu1 %v2218_v3 }
 0xe2d   :  { %v2109_v7 = vsub.f32 %v2093_v27, %v2106_v49  ;;  %v4598_v27 = vld [vmem:[#allocation4 + $0x118] ss:$0 sm:$0xff]  ;;  %v2257_v49 = vld [vmem:[#allocation2 + $0x700] sm:$0xff] }
 0xe2e   :  { %2282 = vmatpush.msra.mxu2 %v2257_v49 }
 0xe2f   :  { %v2112_v11 = vmul.f32 %v2109_v7, %v2109_v7 }
 0xe31   :  { %v2115_v41 = vsel %vm114_vm0, %v2112_v11, 0.0 }
 0xe32   :  { %2116 = vadd.xlane.f32.xlu0 %v2115_v41 }
 0xe4c   :  { %v2087_v44 = vpop.f32.mrf.mxu3 }
 0xe4d   :  { %v2088_v34 = vadd.f32 %v3670_v1, %v2087_v44 }
 0xe4f   :  { %v4577_v53 = vadd.f32 %v2088_v34, %v4156_v4 }
 0xe51   :  { %v2099_v58 = vsel %vm114_vm0, %v4577_v53, 0.0 }
 0xe52   :  { %2100 = vadd.xlane.f32.xlu2 %v2099_v58 }
 0xe57   :  { %v2090_v24 = vpop.f32.mrf.mxu3 }
 0xe58   :  { %v2091_v60 = vadd.f32 %v3670_v1, %v2090_v24 }
 0xe5a   :  { %961 = vadd.xlane.f32.xlu2 %v960_v54  ;;  %v4590_v4 = vadd.f32 %v2091_v60, %v4161_v13  ;;  %v2176_v13 = vld [vmem:[#allocation2 + $0x698] sm:$0xff] }
 0xe5b   :  { %2204 = vmatpush.msrb.mxu0 %v2176_v13 }
 0xe5c   :  { %v2103_v61 = vsel %vm2102_vm7, %v4590_v4, 0.0 }
 0xe5d   :  { %2104 = vadd.xlane.f32.xlu1 %v2103_v61  ;;  %2205 = vmatpush.msrb.mxu0 %v2175_v8 }
 0xe5f   :  { %2206 = vmatpush.msrb.mxu0 %v2174_v16  ;;  %v3674_v16 = vld [vmem:[#allocation4 + $0x70] ss:$0 sm:$0xff] }
 0xe61   :  { %2207 = vmatpush.msrb.mxu0 %v2173_v2 }
 0xe62   :  { %964 = vadd.xlane.f32.xlu2 %v963_v10 }
 0xea5   :  { %v2117_v38 = vpop.xlane.xlu0 %2116 }
 0xea6   :  { %v2124_v15 = vmul.f32 %v2117_v38, %v4106_v23 }
 0xea8   :  { %v2127_v56 = vadd.f32 1e-05, %v2124_v15 }
 0xeaa   :  { %3788 = vrsqrt.f32 %v2127_v56  ;;  %vm2136_vm10 = vweird.f32 %v2127_v56 }
 0xeb0   :  { %v3789_v50 = vpop.eup %3788 }
 0xeb1   :  { %v2131_v21 = vmul.f32 %v3789_v50, %v2127_v56  ;;  %vm2137_vm8 = vweird.f32 %v3789_v50 }
 0xeb2   :  { %vm2138_vm11 = vmor %vm2136_vm10, %vm2137_vm8 }
 0xeb3   :  { %v2132_v22 = vmul.f32 %v3789_v50, %v2131_v21 }
 0xeb5   :  { %v2133_v1 = vmul.f32 0.5, %v2132_v22 }
 0xeb7   :  { %v2134_v62 = vsub.f32 1.5, %v2133_v1 }
 0xeb9   :  { %v2135_v26 = vmul.f32 %v3789_v50, %v2134_v62 }
 0xebb   :  { %v2139_v63 = vsel %vm2138_vm11, %v3789_v50, %v2135_v26 }
 0xebc   :  { %v2160_v45 = vmul.f32 %v2139_v63, %v2109_v7 }
 0xebe   :  { %v2165_v51 = vmul.f32 %v4598_v27, %v2160_v45 }
 0xec0   :  { %v4604_v31 = vadd.f32 %v4600_v57, %v2165_v51 }
 0xec2   :  { %3571 = vmatmul.msk.f32.vlgmr.msrb.gmra.mxu0 %vm114_vm0, %v4604_v31 }
 0xec5   :  { %v2101_v35 = vpop.xlane.xlu2 %2100 }
 0xec6   :  { %v2107_v0 = vmul.f32 %v2101_v35, %v4106_v23 }
 0xec8   :  { %v4610_v39 = vsub.f32 %v4577_v53, %v2107_v0 }
 0xeca   :  { %v2113_v7 = vmul.f32 %v4610_v39, %v4610_v39 }
 0xecc   :  { %v2118_v11 = vsel %vm114_vm0, %v2113_v7, 0.0 }
 0xecd   :  { %2119 = vadd.xlane.f32.xlu1 %v2118_v11  ;;  %v962_v41 = vpop.xlane.xlu2 %961 }
 0xece   :  { %v966_v43 = vmul.f32 %v962_v41, %v4106_v23 }
 0xed0   :  { %v968_v44 = vadd.f32 1e-05, %v966_v43  ;;  %v2105_v40 = vpop.xlane.xlu1 %2104  ;;  %v3676_v43 = vld [vmem:[#allocation4 + $0x130] ss:$0 sm:$0xff] }
 0xed1   :  { %v2108_v34 = vmul.f32 %v2105_v40, %v4106_v23 }
 0xed2   :  { %3790 = vrsqrt.f32 %v968_v44  ;;  %vm976_vm13 = vweird.f32 %v968_v44 }
 0xed3   :  { %v4618_v53 = vsub.f32 %v4590_v4, %v2108_v34 }
 0xed5   :  { %v965_v58 = vpop.xlane.xlu2 %964  ;;  %v2114_v9 = vmul.f32 %v4618_v53, %v4618_v53 }
 0xed6   :  { %v967_v59 = vmul.f32 %v965_v58, %v4106_v23  ;;  %v3677_v58 = vld [vmem:[#allocation4 + $0x138] ss:$0 sm:$0xff] }
 0xed7   :  { %v2121_v47 = vsel %vm2102_vm7, %v2114_v9, 0.0 }
 0xed8   :  { %v3791_v24 = vpop.eup %3790  ;;  %v969_v60 = vadd.f32 1e-05, %v967_v59  ;;  %2122 = vadd.xlane.f32.xlu0 %v2121_v47 }
 0xed9   :  { %v971_v54 = vmul.f32 %v3791_v24, %v968_v44  ;;  %vm977_vm12 = vweird.f32 %v3791_v24 }
 0xeda   :  { %3792 = vrsqrt.f32 %v969_v60  ;;  %vm978_vm14 = vmor %vm976_vm13, %vm977_vm12  ;;  %vm986_vm5 = vweird.f32 %v969_v60 }
 0xedb   :  { %v972_v61 = vmul.f32 %v3791_v24, %v971_v54 }
 0xedd   :  { %v973_v5 = vmul.f32 0.5, %v972_v61 }
 0xedf   :  { %v974_v10 = vsub.f32 1.5, %v973_v5 }
 0xee0   :  { %v3793_v19 = vpop.eup %3792 }
 0xee1   :  { %v975_v4 = vmul.f32 %v3791_v24, %v974_v10  ;;  %v981_v25 = vmul.f32 %v3793_v19, %v969_v60  ;;  %vm987_vm15 = vweird.f32 %v3793_v19 }
 0xee2   :  { %vm988_vm8 = vmor %vm986_vm5, %vm987_vm15 }
 0xee3   :  { %v979_v20 = vsel %vm978_vm14, %v3791_v24, %v975_v4  ;;  %v982_v13 = vmul.f32 %v3793_v19, %v981_v25 }
 0xee4   :  { %v990_v8 = vmul.f32 %v979_v20, %v4579_v55  ;;  %v4630_v55 = vld [vmem:[#allocation4 + $0x128] ss:$0 sm:$0xff] }
 0xee5   :  { %v983_v2 = vmul.f32 0.5, %v982_v13 }
 0xee6   :  { %v994_v38 = vmul.f32 %v3673_v48, %v990_v8 }
 0xee7   :  { %v984_v15 = vsub.f32 1.5, %v983_v2 }
 0xee8   :  { %v998_v56 = vadd.f32 %v3674_v16, %v994_v38 }
 0xee9   :  { %v985_v50 = vmul.f32 %v3793_v19, %v984_v15 }
 0xeea   :  { %3574 = vmatmul.msk.f32.vlgmr.msra.gmra.mxu1 %vm114_vm0, %v998_v56  ;;  %3576 = vmatmul.msk.f32.vlgmr.msra.gmra.mxu2 %vm114_vm0, %v998_v56 }
 0xeeb   :  { %v989_v21 = vsel %vm988_vm8, %v3793_v19, %v985_v50 }
 0xeec   :  { %v991_v22 = vmul.f32 %v989_v21, %v4586_v30 }
 0xeee   :  { %v995_v1 = vmul.f32 %v3673_v48, %v991_v22 }
 0xef0   :  { %v999_v62 = vadd.f32 %v3674_v16, %v995_v1 }
 0xef2   :  { %3575 = vmatmul.msk.f32.gmra.mxu1 %vm114_vm0, %v999_v62  ;;  %3577 = vmatmul.msk.f32.gmra.mxu2 %vm114_vm0, %v999_v62 }
 0xf3f   :  { %v2209_v26 = vpop.f32.mrf.mxu0 }
 0xf40   :  { %v2210_v63 = vadd.f32 %v4630_v55, %v2209_v26  ;;  %v2120_v42 = vpop.xlane.xlu1 %2119 }
 0xf41   :  { %v2125_v12 = vmul.f32 %v2120_v42, %v4106_v23 }
 0xf42   :  { %2380 = vrot.lane.b32.xlu2 %v2210_v63, %s3930_s0 }
 0xf43   :  { %v2128_v45 = vadd.f32 1e-05, %v2125_v12 }
 0xf45   :  { %3794 = vrsqrt.f32 %v2128_v45  ;;  %vm2146_vm11 = vweird.f32 %v2128_v45 }
 0xf4a   :  { %2477 = vrot.lane.b32.xlu2 %v2210_v63, %s3931_s7 }
 0xf4b   :  { %v3795_v30 = vpop.eup %3794  ;;  %v2123_v14 = vpop.xlane.xlu0 %2122 }
 0xf4c   :  { %v2141_v46 = vmul.f32 %v3795_v30, %v2128_v45  ;;  %v2126_v51 = vmul.f32 %v2123_v14, %v4106_v23  ;;  %vm2147_vm10 = vweird.f32 %v3795_v30 }
 0xf4d   :  { %vm2148_vm12 = vmor %vm2146_vm11, %vm2147_vm10 }
 0xf4e   :  { %v2142_v28 = vmul.f32 %v3795_v30, %v2141_v46  ;;  %v2129_v29 = vadd.f32 1e-05, %v2126_v51 }
 0xf50   :  { %v2143_v52 = vmul.f32 0.5, %v2142_v28  ;;  %3796 = vrsqrt.f32 %v2129_v29  ;;  %vm2156_vm14 = vweird.f32 %v2129_v29 }
 0xf52   :  { %v2144_v17 = vsub.f32 1.5, %v2143_v52 }
 0xf54   :  { %v2145_v32 = vmul.f32 %v3795_v30, %v2144_v17 }
 0xf56   :  { %v3797_v33 = vpop.eup %3796  ;;  %v2149_v35 = vsel %vm2148_vm12, %v3795_v30, %v2145_v32 }
 0xf57   :  { %v2151_v36 = vmul.f32 %v3797_v33, %v2129_v29  ;;  %v2161_v18 = vmul.f32 %v2149_v35, %v4610_v39  ;;  %vm2157_vm13 = vweird.f32 %v3797_v33 }
 0xf58   :  { %vm2158_vm15 = vmor %vm2156_vm14, %vm2157_vm13 }
 0xf59   :  { %v2152_v0 = vmul.f32 %v3797_v33, %v2151_v36  ;;  %v2166_v37 = vmul.f32 %v4598_v27, %v2161_v18 }
 0xf5b   :  { %v2153_v6 = vmul.f32 0.5, %v2152_v0  ;;  %v4640_v3 = vadd.f32 %v4600_v57, %v2166_v37 }
 0xf5d   :  { %v2154_v49 = vsub.f32 1.5, %v2153_v6  ;;  %3572 = vmatmul.msk.f32.gmra.mxu0 %vm114_vm0, %v4640_v3 }
 0xf5f   :  { %v2155_v7 = vmul.f32 %v3797_v33, %v2154_v49 }
 0xf61   :  { %v2159_v11 = vsel %vm2158_vm15, %v3797_v33, %v2155_v7 }
 0xf62   :  { %v2162_v41 = vmul.f32 %v2159_v11, %v4618_v53 }
 0xf64   :  { %v2167_v39 = vmul.f32 %v4598_v27, %v2162_v41 }
 0xf66   :  { %v4647_v44 = vadd.f32 %v4600_v57, %v2167_v39 }
 0xf67   :  { %v2251_v40 = vpop.f32.mrf.mxu1 }
 0xf68   :  { %v2252_v34 = vadd.f32 %v3676_v43, %v2251_v40  ;;  %3573 = vmatmul.msk.f32.gmra.mxu0 %vm114_vm0, %v4647_v44 }
 0xf6a   :  { %2384 = vrot.lane.b32.xlu1 %v2252_v34, %s3930_s0  ;;  %3578 = vmatpush.xpose.msk.msrb.mxu1 %vm210_vm1, %v2252_v34 }
 0xf6d   :  { %v2284_v9 = vpop.f32.mrf.mxu2  ;;  %3579 = vmatmul.msk.f32.vlgmr.msrb.gmra.mxu1 %vm210_vm1, %v2210_v63 }
 0xf6e   :  { %v4654_v53 = vadd.f32 %v3677_v58, %v2284_v9 }
 0xf6f   :  { %v2254_v27 = vpop.f32.mrf.mxu1 }
 0xf70   :  { %2372 = vmatpush.msrb.mxu3 %v4654_v53  ;;  %v2255_v57 = vadd.f32 %v3676_v43, %v2254_v27 }
 0xf72   :  { %2481 = vrot.lane.b32.xlu1 %v2252_v34, %s3931_s7 }
 0xf75   :  { %v2287_v8 = vpop.f32.mrf.mxu2 }
 0xf76   :  { %v4682_v16 = vadd.f32 %v3677_v58, %v2287_v8 }
 0xf78   :  { %v3652_v2 = vpack.i.bf16 %v4682_v16, %v4654_v53 }
 0xf7a   :  { %2573 = vrot.lane.b32.xlu1 %v2210_v63, %s3932_s8 }
 0xf82   :  { %2795 = vrot.lane.b32.xlu1 %v2255_v57, %s3930_s0 }
 0xf8a   :  { %2892 = vrot.lane.b32.xlu1 %v2255_v57, %s3931_s7 }
 0xf9c   :  { %v2381_v60 = vpop.permute.xlu2 %2380 }
 0xfa4   :  { %v2478_v10 = vpop.permute.xlu2 %2477 }
 0xfda   :  { %v2212_v59 = vpop.f32.mrf.mxu0 }
 0xfdb   :  { %v2213_v47 = vadd.f32 %v4630_v55, %v2212_v59 }
 0xfdc   :  { %v2385_v24 = vpop.permute.xlu1 %2384 }
 0xfdd   :  { %3583 = vmatpush.xpose.msk.msra.mxu0 %vm210_vm1, %v2385_v24  ;;  %2382 = vrot.lane.b32.xlu0 %v2213_v47, %s3930_s0  ;;  %v2700_v4 = vrot.slane %v2213_v47, 1 }
 0xfde   :  { %2575 = vrot.lane.b32.xlu2 %v2213_v47, %s3932_s8  ;;  %3580 = vmatmul.msk.f32.gmra.mxu1 %vm210_vm1, %v2213_v47 }
 0xfe0   :  { %3584 = vmatmul.msk.f32.vlgmr.msra.gmra.mxu0 %vm210_vm1, %v2381_v60 }
 0xfe4   :  { %v2482_v54 = vpop.permute.xlu1 %2481 }
 0xfe5   :  { %3590 = vmatpush.xpose.msk.msra.mxu1 %vm210_vm1, %v2482_v54  ;;  %2577 = vrot.lane.b32.xlu0 %v2252_v34, %s3932_s8  ;;  %v2215_v61 = vpop.f32.mrf.mxu0 }
 0xfe6   :  { %v2216_v5 = vadd.f32 %v4630_v55, %v2215_v61 }
 0xfe8   :  { %v2701_v19 = vrot.slane %v2216_v5, 1  ;;  %3591 = vmatmul.msk.f32.vlgmr.msra.gmra.mxu1 %vm210_vm1, %v2478_v10 }
 0xfe9   :  { %3604 = vmatpush.xpose.msk.msrb.mxu1 %vm210_vm1, %v2255_v57 }
 0xfea   :  { %2793 = vrot.lane.b32.xlu2 %v2701_v19, %s3930_s0  ;;  %v2702_v25 = vsel %vm1608_vm6, %v2700_v4, %v2701_v19  ;;  %v2316_v38 = vpop.f32.mrf.mxu1  ;;  %vm2327_vm6 = vcmask 57344  }
 0xfeb   :  { %2984 = vrot.lane.b32.xlu1 %v2702_v25, %s3932_s8  ;;  %v2322_v15 = vmul.f32 0.25, %v2316_v38 }
 0xfec   :  { %v2574_v48 = vpop.permute.xlu1 %2573 }
 0xfed   :  { %2479 = vrot.lane.b32.xlu0 %v2213_v47, %s3931_s7  ;;  %v2324_v56 = vsel %vm238_vm2, %v2322_v15, -inf }
 0xff2   :  { %2888 = vrot.lane.b32.xlu2 %v2702_v25, %s3931_s7 }
 0xff4   :  { %v2796_v20 = vpop.permute.xlu1 %2795 }
 0xff5   :  { %2791 = vrot.lane.b32.xlu0 %v2702_v25, %s3930_s0 }
 0xffa   :  { %2986 = vrot.lane.b32.xlu2 %v2701_v19, %s3932_s8 }
 0xffc   :  { %v2893_v13 = vpop.permute.xlu1 %2892 }
 0xffd   :  { %3618 = vmatpush.xpose.msk.msra.mxu1 %vm210_vm1, %v2893_v13  ;;  %2988 = vrot.lane.b32.xlu0 %v2255_v57, %s3932_s8 }
0x1005   :  { %2890 = vrot.lane.b32.xlu0 %v2701_v19, %s3931_s7 }
0x100d   :  { %3653 = vrot.lane.b32.xlu0 %v3652_v2, %s3930_s0 }
0x1015   :  { %2325 = vmax.xlane.f32.xlu1 %v2324_v56 }
0x1038   :  { %v2576_v12 = vpop.permute.xlu2 %2575 }
0x1044   :  { %v2794_v51 = vpop.permute.xlu2 %2793 }
0x104c   :  { %v2889_v29 = vpop.permute.xlu2 %2888 }
0x104f   :  { %v2383_v50 = vpop.permute.xlu0 %2382 }
0x1050   :  { %3585 = vmatmul.msk.f32.gmra.mxu0 %vm210_vm1, %v2383_v50 }
0x1054   :  { %v2987_v35 = vpop.permute.xlu2 %2986 }
0x1057   :  { %v2578_v21 = vpop.permute.xlu0 %2577 }
0x1058   :  { %3597 = vmatpush.xpose.msk.msrb.mxu0 %vm210_vm1, %v2578_v21 }
0x105b   :  { %v2319_v22 = vpop.f32.mrf.mxu1  ;;  %3598 = vmatmul.msk.f32.vlgmr.msrb.gmra.mxu0 %vm210_vm1, %v2574_v48 }
0x105c   :  { %3611 = vmatpush.xpose.msk.msra.mxu0 %vm210_vm1, %v2796_v20  ;;  %v2323_v1 = vmul.f32 0.25, %v2319_v22 }
0x105d   :  { %v2409_v62 = vpop.f32.mrf.mxu0  ;;  %v2985_v17 = vpop.permute.xlu1 %2984 }
0x105e   :  { %v4692_v55 = vmul.f32 0.25, %v2409_v62  ;;  %v2328_v26 = vsel %vm2327_vm6, %v2323_v1, -inf }
0x105f   :  { %2329 = vmax.xlane.f32.xlu2 %v2328_v26  ;;  %v2480_v63 = vpop.permute.xlu0 %2479 }
0x1060   :  { %3592 = vmatmul.msk.f32.gmra.mxu1 %vm210_vm1, %v2480_v63  ;;  %v2417_v42 = vsel %vm238_vm2, %v4692_v55, -inf }
0x1061   :  { %2418 = vmax.xlane.f32.xlu0 %v2417_v42 }
0x1063   :  { %3599 = vmatmul.msk.f32.gmra.mxu0 %vm210_vm1, %v2576_v12 }
0x1065   :  { %v2506_v45 = vpop.f32.mrf.mxu1 }
0x1066   :  { %v4699_v30 = vmul.f32 0.25, %v2506_v45 }
0x1067   :  { %v2792_v14 = vpop.permute.xlu0 %2791 }
0x1068   :  { %3605 = vmatmul.msk.f32.vlgmr.msrb.gmra.mxu1 %vm210_vm1, %v2702_v25  ;;  %v2514_v46 = vsel %vm238_vm2, %v4699_v30, -inf }
0x1069   :  { %2515 = vmax.xlane.f32.xlu2 %v2514_v46 }
0x106b   :  { %3612 = vmatmul.msk.f32.vlgmr.msra.gmra.mxu0 %vm210_vm1, %v2792_v14 }
0x106f   :  { %v2989_v28 = vpop.permute.xlu0 %2988 }
0x1070   :  { %3606 = vmatmul.msk.f32.gmra.mxu1 %vm210_vm1, %v2701_v19  ;;  %3625 = vmatpush.xpose.msk.msrb.mxu0 %vm210_vm1, %v2989_v28 }
0x1073   :  { %3613 = vmatmul.msk.f32.gmra.mxu0 %vm210_vm1, %v2794_v51 }
0x1077   :  { %v2891_v52 = vpop.permute.xlu0 %2890 }
0x1078   :  { %3619 = vmatmul.msk.f32.vlgmr.msra.gmra.mxu1 %vm210_vm1, %v2889_v29 }
0x107b   :  { %3626 = vmatmul.msk.f32.vlgmr.msrb.gmra.mxu0 %vm210_vm1, %v2985_v17 }
0x107f   :  { %v4710_v32 = vpop.permute.xlu0 %3653 }
0x1080   :  { %v3655_v33 = vunpack.i.l.bf16 %v4710_v32  ;;  %3620 = vmatmul.msk.f32.gmra.mxu1 %vm210_vm1, %v2891_v52 }
0x1082   :  { %2469 = vmatpush.msrb.mxu2 %v3655_v33 }
0x1083   :  { %3627 = vmatmul.msk.f32.gmra.mxu0 %vm210_vm1, %v2987_v35 }
0x1088   :  { %v2326_v36 = vpop.xlane.xlu1 %2325 }
0x1089   :  { %v2331_v18 = vsub.f32 %v2322_v15, %v2326_v36 }
0x108b   :  { %v2333_v0 = vmul.f32 1.442695, %v2331_v18 }
0x108d   :  { %3798 = vpow2.f32 %v2333_v0 }
0x1093   :  { %v4715_v37 = vpop.eup %3798 }
0x1094   :  { %v2337_v6 = vsel %vm238_vm2, %v4715_v37, 0.0 }
0x1095   :  { %2338 = vadd.xlane.f32.xlu0 %v2337_v6 }
0x10cd   :  { %v2412_v49 = vpop.f32.mrf.mxu0 }
0x10ce   :  { %v4719_v7 = vmul.f32 0.25, %v2412_v49 }
0x10d0   :  { %v2420_v11 = vsel %vm2327_vm6, %v4719_v7, -inf }
0x10d1   :  { %2421 = vmax.xlane.f32.xlu1 %v2420_v11 }
0x10d2   :  { %v2330_v41 = vpop.xlane.xlu2 %2329 }
0x10d3   :  { %v2332_v43 = vsub.f32 %v2323_v1, %v2330_v41 }
0x10d4   :  { %v2419_v4 = vpop.xlane.xlu0 %2418 }
0x10d5   :  { %v2335_v34 = vmul.f32 1.442695, %v2332_v43  ;;  %v2423_v13 = vsub.f32 %v4692_v55, %v2419_v4 }
0x10d7   :  { %3800 = vpow2.f32 %v2335_v34  ;;  %v2425_v56 = vmul.f32 1.442695, %v2423_v13 }
0x10d8   :  { %v2602_v39 = vpop.f32.mrf.mxu0 }
0x10d9   :  { %v4723_v40 = vmul.f32 0.25, %v2602_v39  ;;  %3802 = vpow2.f32 %v2425_v56 }
0x10db   :  { %v2610_v58 = vsel %vm238_vm2, %v4723_v40, -inf }
0x10dc   :  { %2611 = vmax.xlane.f32.xlu0 %v2610_v58  ;;  %v2516_v21 = vpop.xlane.xlu2 %2515 }
0x10dd   :  { %v2509_v9 = vpop.f32.mrf.mxu1  ;;  %v4735_v60 = vpop.eup %3800  ;;  %v2520_v62 = vsub.f32 %v4699_v30, %v2516_v21 }
0x10de   :  { %v4727_v27 = vmul.f32 0.25, %v2509_v9  ;;  %v2340_v19 = vsel %vm2327_vm6, %v4735_v60, 0.0 }
0x10df   :  { %v2522_v63 = vmul.f32 1.442695, %v2520_v62  ;;  %v4761_v42 = vpop.eup %3802 }
0x10e0   :  { %v2605_v57 = vpop.f32.mrf.mxu0  ;;  %v2517_v59 = vsel %vm2327_vm6, %v4727_v27, -inf  ;;  %v2429_v51 = vsel %vm238_vm2, %v4761_v42, 0.0 }
0x10e1   :  { %v4731_v47 = vmul.f32 0.25, %v2605_v57  ;;  %2518 = vmax.xlane.f32.xlu1 %v2517_v59  ;;  %3804 = vpow2.f32 %v2522_v63 }
0x10e3   :  { %v2613_v24 = vsel %vm2327_vm6, %v4731_v47, -inf }
0x10e4   :  { %2614 = vmax.xlane.f32.xlu2 %v2613_v24 }
0x10e5   :  { %v2727_v54 = vpop.f32.mrf.mxu1 }
0x10e6   :  { %v4737_v61 = vmul.f32 0.25, %v2727_v54 }
0x10e7   :  { %v4775_v52 = vpop.eup %3804 }
0x10e8   :  { %v2820_v5 = vpop.f32.mrf.mxu0  ;;  %v2735_v10 = vsel %vm238_vm2, %v4737_v61, -inf  ;;  %v2526_v35 = vsel %vm238_vm2, %v4775_v52, 0.0 }
0x10e9   :  { %2736 = vmax.xlane.f32.xlu0 %v2735_v10  ;;  %2341 = vadd.xlane.f32.xlu1 %v2340_v19  ;;  %v4743_v25 = vmul.f32 0.25, %v2820_v5 }
0x10eb   :  { %v2828_v38 = vsel %vm238_vm2, %v4743_v25, -inf }
0x10ed   :  { %v2730_v48 = vpop.f32.mrf.mxu1 }
0x10ee   :  { %v4745_v20 = vmul.f32 0.25, %v2730_v48 }
0x10f0   :  { %v2823_v8 = vpop.f32.mrf.mxu0  ;;  %v2738_v2 = vsel %vm2327_vm6, %v4745_v20, -inf }
0x10f1   :  { %v4752_v15 = vmul.f32 0.25, %v2823_v8  ;;  %2739 = vmax.xlane.f32.xlu2 %v2738_v2  ;;  %2829 = vmax.xlane.f32.xlu1 %v2828_v38 }
0x10f3   :  { %v2831_v50 = vsel %vm2327_vm6, %v4752_v15, -inf }
0x10f4   :  { %2832 = vmax.xlane.f32.xlu0 %v2831_v50 }
0x10f5   :  { %v2917_v22 = vpop.f32.mrf.mxu1 }
0x10f6   :  { %v4756_v1 = vmul.f32 0.25, %v2917_v22 }
0x10f8   :  { %v3013_v55 = vpop.f32.mrf.mxu0  ;;  %v2925_v26 = vsel %vm238_vm2, %v4756_v1, -inf }
0x10f9   :  { %2926 = vmax.xlane.f32.xlu1 %v2925_v26  ;;  %v4773_v29 = vmul.f32 0.25, %v3013_v55 }
0x10fb   :  { %v3021_v33 = vsel %vm238_vm2, %v4773_v29, -inf }
0x10fd   :  { %v2920_v12 = vpop.f32.mrf.mxu1 }
0x10fe   :  { %v4763_v45 = vmul.f32 0.25, %v2920_v12 }
0x1100   :  { %v3016_v14 = vpop.f32.mrf.mxu0  ;;  %v2928_v46 = vsel %vm2327_vm6, %v4763_v45, -inf }
0x1101   :  { %v4769_v30 = vmul.f32 0.25, %v3016_v14  ;;  %2929 = vmax.xlane.f32.xlu2 %v2928_v46  ;;  %2430 = vadd.xlane.f32.xlu1 %v2429_v51 }
0x1103   :  { %v3024_v28 = vsel %vm2327_vm6, %v4769_v30, -inf }
0x1104   :  { %3025 = vmax.xlane.f32.xlu0 %v3024_v28 }
0x1108   :  { %v2339_v17 = vpop.xlane.xlu0 %2338 }
0x1109   :  { %3806 = vrcp.f32 %v2339_v17  ;;  %3022 = vmax.xlane.f32.xlu2 %v3021_v33  ;;  %2527 = vadd.xlane.f32.xlu1 %v2526_v35 }
0x110f   :  { %v3807_v36 = vpop.eup %3806 }
0x1110   :  { %v2345_v18 = vmul.f32 %v3807_v36, %v4715_v37 }
0x1112   :  { %v2347_v0 = vsel %vm238_vm2, %v2345_v18, 0.0  ;;  %3581 = vmatmul.msk.f32.vlgmr.msrb.gmra.mxu3 %vm238_vm2, %v2345_v18 }
0x1113   :  { %2349 = vst [vmem:[%s5057_s5] sm:$0xff] %v2347_v0 }
0x1144   :  { %v2422_v6 = vpop.xlane.xlu1 %2421 }
0x1145   :  { %v2424_v49 = vsub.f32 %v4719_v7, %v2422_v6 }
0x1147   :  { %v2427_v11 = vmul.f32 1.442695, %v2424_v49 }
0x1149   :  { %3808 = vpow2.f32 %v2427_v11 }
0x114f   :  { %v4788_v41 = vpop.eup %3808  ;;  %v2612_v43 = vpop.xlane.xlu0 %2611 }
0x1150   :  { %v2616_v39 = vsub.f32 %v4723_v40, %v2612_v43  ;;  %v2432_v37 = vsel %vm2327_vm6, %v4788_v41, 0.0 }
0x1151   :  { %2433 = vadd.xlane.f32.xlu2 %v2432_v37 }
0x1152   :  { %v2618_v34 = vmul.f32 1.442695, %v2616_v39 }
0x1154   :  { %3810 = vpow2.f32 %v2618_v34  ;;  %v2519_v58 = vpop.xlane.xlu1 %2518 }
0x1155   :  { %v2521_v9 = vsub.f32 %v4727_v27, %v2519_v58 }
0x1157   :  { %v2524_v57 = vmul.f32 1.442695, %v2521_v9  ;;  %v2615_v59 = vpop.xlane.xlu2 %2614 }
0x1158   :  { %v2617_v7 = vsub.f32 %v4731_v47, %v2615_v59 }
0x1159   :  { %3812 = vpow2.f32 %v2524_v57 }
0x115a   :  { %v4795_v24 = vpop.eup %3810  ;;  %v2620_v54 = vmul.f32 1.442695, %v2617_v7 }
0x115b   :  { %v2622_v40 = vsel %vm238_vm2, %v4795_v24, 0.0 }
0x115c   :  { %3814 = vpow2.f32 %v2620_v54  ;;  %v2342_v5 = vpop.xlane.xlu1 %2341  ;;  %2623 = vadd.xlane.f32.xlu2 %v2622_v40  ;;  %v2737_v4 = vpop.xlane.xlu0 %2736 }
0x115d   :  { %3816 = vrcp.f32 %v2342_v5  ;;  %v2741_v49 = vsub.f32 %v4737_v61, %v2737_v4 }
0x115f   :  { %v4799_v10 = vpop.eup %3812  ;;  %v2743_v11 = vmul.f32 1.442695, %v2741_v49 }
0x1160   :  { %v2529_v27 = vsel %vm2327_vm6, %v4799_v10, 0.0 }
0x1161   :  { %2530 = vadd.xlane.f32.xlu1 %v2529_v27 }
0x1162   :  { %v4803_v19 = vpop.eup %3814 }
0x1163   :  { %v3817_v47 = vpop.eup %3816  ;;  %v2625_v48 = vsel %vm2327_vm6, %v4803_v19, 0.0 }
0x1164   :  { %v2740_v13 = vpop.xlane.xlu2 %2739  ;;  %v2830_v8 = vpop.xlane.xlu1 %2829  ;;  %2626 = vadd.xlane.f32.xlu0 %v2625_v48  ;;  %v2346_v2 = vmul.f32 %v3817_v47, %v4735_v60 }
0x1165   :  { %v2742_v38 = vsub.f32 %v4745_v20, %v2740_v13  ;;  %v2834_v39 = vsub.f32 %v4743_v25, %v2830_v8 }
0x1166   :  { %v2348_v56 = vsel %vm238_vm2, %v2346_v2, 0.0  ;;  %3582 = vmatmul.msk.f32.gmra.mxu3 %vm238_vm2, %v2346_v2 }
0x1167   :  { %v2745_v50 = vmul.f32 1.442695, %v2742_v38  ;;  %2350 = vst [vmem:[%s5057_s5 + $0x8] sm:$0x1] %v2348_v56  ;;  %v2833_v21 = vpop.xlane.xlu0 %2832  ;;  %v2836_v37 = vmul.f32 1.442695, %v2834_v39 }
0x1168   :  { %v2835_v60 = vsub.f32 %v4752_v15, %v2833_v21 }
0x1169   :  { %3818 = vpow2.f32 %v2745_v50 }
0x116a   :  { %v2838_v63 = vmul.f32 1.442695, %v2835_v60 }
0x116c   :  { %v2927_v22 = vpop.xlane.xlu1 %2926 }
0x116d   :  { %v2931_v62 = vsub.f32 %v4756_v1, %v2927_v22 }
0x116f   :  { %v4815_v55 = vpop.eup %3818  ;;  %v2933_v26 = vmul.f32 1.442695, %v2931_v62 }
0x1170   :  { %v2750_v20 = vsel %vm2327_vm6, %v4815_v55, 0.0 }
0x1171   :  { %3820 = vpow2.f32 %v2933_v26  ;;  %2751 = vadd.xlane.f32.xlu0 %v2750_v20 }
0x1174   :  { %v2930_v12 = vpop.xlane.xlu2 %2929  ;;  %v2431_v14 = vpop.xlane.xlu1 %2430  ;;  %2541 = vrot.lane.b32.xlu2 %v4654_v53, %s3931_s7 }
0x1175   :  { %3822 = vrcp.f32 %v2431_v14  ;;  %v2932_v1 = vsub.f32 %v4763_v45, %v2930_v12  ;;  %v3656_v12 = vunpack.i.h.bf16 %v4710_v32 }
0x1176   :  { %3824 = vpow2.f32 %v2838_v63 }
0x1177   :  { %v4822_v46 = vpop.eup %3820  ;;  %v2935_v28 = vmul.f32 1.442695, %v2932_v1  ;;  %v3026_v58 = vpop.xlane.xlu0 %3025 }
0x1178   :  { %v2937_v15 = vsel %vm238_vm2, %v4822_v46, 0.0  ;;  %v3028_v57 = vsub.f32 %v4769_v30, %v3026_v58 }
0x1179   :  { %2938 = vadd.xlane.f32.xlu0 %v2937_v15 }
0x117a   :  { %2637 = vrot.lane.b32.xlu1 %v4654_v53, %s3932_s8  ;;  %v3031_v61 = vmul.f32 1.442695, %v3028_v57 }
0x117b   :  { %v3823_v51 = vpop.eup %3822 }
0x117c   :  { %v2437_v17 = vmul.f32 %v3823_v51, %v4761_v42  ;;  %v2528_v33 = vpop.xlane.xlu1 %2527  ;;  %v4830_v35 = vpop.eup %3824 }
0x117d   :  { %3826 = vrcp.f32 %v2528_v33  ;;  %v2843_v53 = vsel %vm2327_vm6, %v4830_v35, 0.0  ;;  %v3023_v43 = vpop.xlane.xlu2 %3022 }
0x117e   :  { %v2439_v36 = vsel %vm238_vm2, %v2437_v17, 0.0  ;;  %3588 = vmatmul.msk.f32.vlgmr.msrb.gmra.mxu2 %vm238_vm2, %v2437_v17  ;;  %3828 = vpow2.f32 %v2935_v28 }
0x117f   :  { %3586 = vst [vmem:[%s5057_s5 + $0x10] sm:$0xff] %v2439_v36  ;;  %3830 = vpow2.f32 %v2743_v11 }
0x1180   :  { %3832 = vpow2.f32 %v2836_v37 }
0x1181   :  { %2844 = vadd.xlane.f32.xlu0 %v2843_v53 }
0x1183   :  { %v3827_v45 = vpop.eup %3826 }
0x1184   :  { %v2534_v42 = vmul.f32 %v3827_v45, %v4775_v52  ;;  %v4840_v18 = vpop.eup %3828  ;;  %v3027_v52 = vsub.f32 %v4773_v29, %v3023_v43 }
0x1185   :  { %v2940_v6 = vsel %vm2327_vm6, %v4840_v18, 0.0  ;;  %v4851_v9 = vpop.eup %3830 }
0x1186   :  { %v2536_v0 = vsel %vm238_vm2, %v2534_v42, 0.0  ;;  %v3029_v34 = vmul.f32 1.442695, %v3027_v52  ;;  %v2747_v59 = vsel %vm238_vm2, %v4851_v9, 0.0  ;;  %v4858_v25 = vpop.eup %3832 }
0x1187   :  { %3593 = vst [vmem:[%s5057_s5 + $0x20] sm:$0xff] %v2536_v0  ;;  %v2840_v7 = vsel %vm238_vm2, %v4858_v25, 0.0 }
0x1188   :  { %3834 = vpow2.f32 %v3029_v34 }
0x1189   :  { %2941 = vadd.xlane.f32.xlu0 %v2940_v6  ;;  %3836 = vpow2.f32 %v3031_v61 }
0x118e   :  { %v4860_v29 = vpop.eup %3834 }
0x118f   :  { %v3033_v30 = vsel %vm238_vm2, %v4860_v29, 0.0  ;;  %v4866_v54 = vpop.eup %3836 }
0x1190   :  { %v3036_v40 = vsel %vm2327_vm6, %v4866_v54, 0.0 }
0x119d   :  { %2748 = vadd.xlane.f32.xlu2 %v2747_v59  ;;  %3048 = vrot.lane.b32.xlu0 %v4682_v16, %s3932_s8 }
0x11a4   :  { %2841 = vadd.xlane.f32.xlu1 %v2840_v7 }
0x11a5   :  { %3034 = vadd.xlane.f32.xlu2 %v3033_v30 }
0x11ad   :  { %3037 = vadd.xlane.f32.xlu2 %v3036_v40 }
0x11bd   :  { %2952 = vrot.lane.b32.xlu1 %v4682_v16, %s3931_s7 }
0x11c4   :  { %v2434_v5 = vpop.xlane.xlu2 %2433 }
0x11c5   :  { %3838 = vrcp.f32 %v2434_v5 }
0x11cb   :  { %v3839_v27 = vpop.eup %3838 }
0x11cc   :  { %v2438_v47 = vmul.f32 %v3839_v27, %v4788_v41 }
0x11ce   :  { %v2440_v4 = vsel %vm238_vm2, %v2438_v47, 0.0  ;;  %3589 = vmatmul.msk.f32.gmra.mxu2 %vm238_vm2, %v2438_v47 }
0x11cf   :  { %3587 = vst [vmem:[%s5057_s5 + $0x18] sm:$0x1] %v2440_v4  ;;  %v2624_v48 = vpop.xlane.xlu2 %2623 }
0x11d0   :  { %3840 = vrcp.f32 %v2624_v48 }
0x11d4   :  { %v2531_v13 = vpop.xlane.xlu1 %2530 }
0x11d5   :  { %3842 = vrcp.f32 %v2531_v13  ;;  %v3124_v13 = vld [vmem:[#allocation2 + $0x778] sm:$0xff] }
0x11d6   :  { %v3841_v8 = vpop.eup %3840  ;;  %3143 = vmatpush.msrb.mxu1 %v3124_v13 }
0x11d7   :  { %v2630_v2 = vmul.f32 %v3841_v8, %v4795_v24  ;;  %v2542_v38 = vpop.permute.xlu2 %2541  ;;  %v2627_v56 = vpop.xlane.xlu0 %2626 }
0x11d8   :  { %3844 = vrcp.f32 %v2627_v56  ;;  %2565 = vmatpush.msra.mxu3 %v2542_v38  ;;  %v3123_v38 = vld [vmem:[#allocation2 + $0x770] sm:$0xff]  ;;  %v3122_v56 = vld [vmem:[#allocation2 + $0x768] sm:$0xff] }
0x11d9   :  { %v2632_v41 = vsel %vm238_vm2, %v2630_v2, 0.0  ;;  %3595 = vmatmul.msk.f32.vlgmr.msra.gmra.mxu3 %vm238_vm2, %v2534_v42  ;;  %3144 = vmatpush.msrb.mxu1 %v3123_v38 }
0x11da   :  { %3600 = vst [vmem:[%s5057_s5 + $0x30] sm:$0xff] %v2632_v41  ;;  %2783 = vmatpush.msrb.mxu3 %v4682_v16  ;;  %v3121_v41 = vld [vmem:[#allocation2 + $0x760] sm:$0xff] }
0x11db   :  { %v3843_v50 = vpop.eup %3842  ;;  %3145 = vmatpush.msrb.mxu1 %v3122_v56 }
0x11dc   :  { %v2535_v21 = vmul.f32 %v3843_v50, %v4799_v10 }
0x11dd   :  { %3146 = vmatpush.msrb.mxu1 %v3121_v41  ;;  %v3247_v41 = vld [vmem:[#allocation2 + $0x7b8] sm:$0xff] }
0x11de   :  { %v3845_v22 = vpop.eup %3844  ;;  %v2537_v24 = vsel %vm238_vm2, %v2535_v21, 0.0 }
0x11df   :  { %3594 = vst [vmem:[%s5057_s5 + $0x28] sm:$0x1] %v2537_v24  ;;  %v2631_v62 = vmul.f32 %v3845_v22, %v4803_v19  ;;  %v3120_v22 = vld [vmem:[#allocation2 + $0x758] sm:$0xff]  ;;  %v3119_v24 = vld [vmem:[#allocation2 + $0x750] sm:$0xff] }
0x11e0   :  { %3147 = vmatpush.msrb.mxu1 %v3120_v22  ;;  %v3244_v22 = vld [vmem:[#allocation2 + $0x7a0] sm:$0xff] }
0x11e1   :  { %3596 = vmatmul.msk.f32.gmra.mxu3 %vm238_vm2, %v2535_v21  ;;  %v2633_v60 = vsel %vm238_vm2, %v2631_v62, 0.0 }
0x11e2   :  { %3601 = vst [vmem:[%s5057_s5 + $0x38] sm:$0x1] %v2633_v60  ;;  %3148 = vmatpush.msrb.mxu1 %v3119_v24  ;;  %v3117_v60 = vld [vmem:[#allocation2 + $0x740] sm:$0xff]  ;;  %v3243_v24 = vld [vmem:[#allocation2 + $0x798] sm:$0xff] }
0x11e4   :  { %v2752_v16 = vpop.xlane.xlu0 %2751 }
0x11e5   :  { %3846 = vrcp.f32 %v2752_v16 }
0x11eb   :  { %v3847_v10 = vpop.eup %3846 }
0x11ec   :  { %v2638_v26 = vpop.permute.xlu1 %2637  ;;  %v2939_v20 = vpop.xlane.xlu0 %2938  ;;  %v2756_v63 = vmul.f32 %v3847_v10, %v4815_v55 }
0x11ed   :  { %3848 = vrcp.f32 %v2939_v20  ;;  %2661 = vmatpush.msra.mxu2 %v2638_v26 }
0x11ee   :  { %3602 = vmatmul.msk.f32.vlgmr.msra.gmra.mxu2 %vm238_vm2, %v2630_v2  ;;  %v2758_v19 = vsel %vm238_vm2, %v2756_v63, 0.0 }
0x11ef   :  { %2880 = vmatpush.msrb.mxu2 %v3656_v12  ;;  %3608 = vst [vmem:[%s5057_s5 + $0x48] sm:$0x1] %v2758_v19 }
0x11f3   :  { %v3849_v14 = vpop.eup %3848 }
0x11f4   :  { %v2945_v1 = vmul.f32 %v3849_v14, %v4822_v46  ;;  %v2845_v15 = vpop.xlane.xlu0 %2844 }
0x11f5   :  { %3850 = vrcp.f32 %v2845_v15 }
0x11f6   :  { %v2947_v55 = vsel %vm238_vm2, %v2945_v1, 0.0  ;;  %3603 = vmatmul.msk.f32.gmra.mxu2 %vm238_vm2, %v2631_v62  ;;  %v3118_v62 = vld [vmem:[#allocation2 + $0x748] sm:$0xff] }
0x11f7   :  { %3621 = vst [vmem:[%s5057_s5 + $0x60] sm:$0xff] %v2947_v55  ;;  %3149 = vmatpush.msrb.mxu1 %v3118_v62  ;;  %v3242_v62 = vld [vmem:[#allocation2 + $0x790] sm:$0xff] }
0x11f9   :  { %3150 = vmatpush.msrb.mxu1 %v3117_v60  ;;  %v3241_v60 = vld [vmem:[#allocation2 + $0x788] sm:$0xff] }
0x11fb   :  { %v3851_v32 = vpop.eup %3850 }
0x11fc   :  { %v2942_v51 = vpop.xlane.xlu0 %2941  ;;  %v2849_v28 = vmul.f32 %v3851_v32, %v4830_v35 }
0x11fd   :  { %3852 = vrcp.f32 %v2942_v51 }
0x11fe   :  { %v2851_v17 = vsel %vm238_vm2, %v2849_v28, 0.0 }
0x11ff   :  { %3615 = vst [vmem:[%s5057_s5 + $0x58] sm:$0x1] %v2851_v17 }
0x1201   :  { %v2471_v46 = vpop.f32.mrf.mxu2 }
0x1202   :  { %2671 = vrot.lane.b32.xlu2 %v2471_v46, %s3933_s9 }
0x1203   :  { %v3853_v33 = vpop.eup %3852 }
0x1204   :  { %v2946_v36 = vmul.f32 %v3853_v33, %v4840_v18 }
0x1206   :  { %v2948_v53 = vsel %vm238_vm2, %v2946_v36, 0.0 }
0x1207   :  { %3622 = vst [vmem:[%s5057_s5 + $0x68] sm:$0x1] %v2948_v53 }
0x120f   :  { %v3049_v35 = vpop.permute.xlu0 %3048 }
0x1210   :  { %v2749_v45 = vpop.xlane.xlu2 %2748  ;;  %3072 = vmatpush.msra.mxu2 %v3049_v35 }
0x1211   :  { %3854 = vrcp.f32 %v2749_v45 }
0x1217   :  { %v3855_v42 = vpop.eup %3854  ;;  %v2842_v0 = vpop.xlane.xlu1 %2841 }
0x1218   :  { %v2755_v6 = vmul.f32 %v3855_v42, %v4851_v9  ;;  %3856 = vrcp.f32 %v2842_v0  ;;  %v3035_v49 = vpop.xlane.xlu2 %3034 }
0x1219   :  { %3858 = vrcp.f32 %v3035_v49 }
0x121a   :  { %v2757_v11 = vsel %vm238_vm2, %v2755_v6, 0.0  ;;  %3609 = vmatmul.msk.f32.vlgmr.msrb.gmra.mxu3 %vm238_vm2, %v2755_v6 }
0x121b   :  { %3607 = vst [vmem:[%s5057_s5 + $0x40] sm:$0xff] %v2757_v11 }
0x121e   :  { %v3857_v18 = vpop.eup %3856 }
0x121f   :  { %v3859_v43 = vpop.eup %3858  ;;  %v2848_v39 = vmul.f32 %v3857_v18, %v4858_v25  ;;  %v2374_v25 = vpop.f32.mrf.mxu3 }
0x1220   :  { %v3041_v52 = vmul.f32 %v3859_v43, %v4860_v29  ;;  %v3038_v37 = vpop.xlane.xlu2 %3037 }
0x1221   :  { %v2850_v34 = vsel %vm238_vm2, %v2848_v39, 0.0  ;;  %3860 = vrcp.f32 %v3038_v37  ;;  %3616 = vmatmul.msk.f32.vlgmr.msrb.gmra.mxu2 %vm238_vm2, %v2848_v39  ;;  %v3678_v39 = vld [vmem:[#allocation4 + $0x140] ss:$0 sm:$0xff] }
0x1222   :  { %3614 = vst [vmem:[%s5057_s5 + $0x50] sm:$0xff] %v2850_v34  ;;  %v3043_v58 = vsel %vm238_vm2, %v3041_v52, 0.0  ;;  %3610 = vmatmul.msk.f32.gmra.mxu3 %vm238_vm2, %v2756_v63 }
0x1223   :  { %3628 = vst [vmem:[%s5057_s5 + $0x70] sm:$0xff] %v3043_v58 }
0x1227   :  { %v3861_v9 = vpop.eup %3860  ;;  %v2377_v7 = vpop.f32.mrf.mxu3 }
0x1228   :  { %v3042_v57 = vmul.f32 %v3861_v9, %v4866_v54 }
0x1229   :  { %3617 = vmatmul.msk.f32.gmra.mxu2 %vm238_vm2, %v2849_v28 }
0x122a   :  { %v3044_v59 = vsel %vm238_vm2, %v3042_v57, 0.0 }
0x122b   :  { %3629 = vst [vmem:[%s5057_s5 + $0x78] sm:$0x1] %v3044_v59 }
0x122f   :  { %v2953_v61 = vpop.permute.xlu1 %2952 }
0x1230   :  { %2976 = vmatpush.msra.mxu3 %v2953_v61 }
0x1231   :  { %3623 = vmatmul.msk.f32.vlgmr.msra.gmra.mxu3 %vm238_vm2, %v2945_v1  ;;  %3630 = vmatmul.msk.f32.vlgmr.msra.gmra.mxu2 %vm238_vm2, %v3041_v52 }
0x1232   :  { %3267 = vmatpush.msrb.mxu3 %v3247_v41  ;;  %v3290_v41 = vld [vmem:[#allocation2 + $0x7d0] sm:$0xff] }
0x1239   :  { %3624 = vmatmul.msk.f32.gmra.mxu3 %vm238_vm2, %v2946_v36  ;;  %3631 = vmatmul.msk.f32.gmra.mxu2 %vm238_vm2, %v3042_v57 }
0x1251   :  { %v2474_v29 = vpop.f32.mrf.mxu2 }
0x1252   :  { %2673 = vrot.lane.b32.xlu0 %v2474_v29, %s3933_s9 }
0x125c   :  { %v2567_v30 = vpop.f32.mrf.mxu3  ;;  %v2672_v10 = vpop.permute.xlu2 %2671 }
0x125d   :  { %2679 = vrot.lane.b32.xlu1 %v2567_v30, %s3934_s10  ;;  %v2693_v20 = vsel %vm210_vm1, %v2374_v25, %v2672_v10 }
0x1264   :  { %v2570_v54 = vpop.f32.mrf.mxu3 }
0x1265   :  { %2681 = vrot.lane.b32.xlu1 %v2570_v54, %s3934_s10 }
0x1271   :  { %v2663_v40 = vpop.f32.mrf.mxu2 }
0x1272   :  { %2687 = vrot.lane.b32.xlu0 %v2663_v40, %s3935_s11 }
0x1279   :  { %v2666_v5 = vpop.f32.mrf.mxu2 }
0x127a   :  { %2689 = vrot.lane.b32.xlu0 %v2666_v5, %s3935_s11 }
0x129d   :  { %v2785_v27 = vpop.f32.mrf.mxu3 }
0x12a4   :  { %v2882_v47 = vpop.f32.mrf.mxu2 }
0x12a5   :  { %3082 = vrot.lane.b32.xlu2 %v2882_v47, %s3933_s9  ;;  %v2788_v4 = vpop.f32.mrf.mxu3 }
0x12ac   :  { %v2885_v48 = vpop.f32.mrf.mxu2 }
0x12b4   :  { %v2978_v8 = vpop.f32.mrf.mxu3  ;;  %v3074_v2 = vpop.f32.mrf.mxu2 }
0x12b5   :  { %3090 = vrot.lane.b32.xlu1 %v2978_v8, %s3934_s10  ;;  %3098 = vrot.lane.b32.xlu2 %v3074_v2, %s3935_s11 }
0x12bc   :  { %v2981_v50 = vpop.f32.mrf.mxu3  ;;  %v3077_v21 = vpop.f32.mrf.mxu2 }
0x12bd   :  { %3092 = vrot.lane.b32.xlu1 %v2981_v50, %s3934_s10  ;;  %3084 = vrot.lane.b32.xlu2 %v2885_v48, %s3933_s9  ;;  %v3246_v50 = vld [vmem:[#allocation2 + $0x7b0] sm:$0xff] }
0x12be   :  { %3100 = vrot.lane.b32.xlu0 %v3077_v21, %s3935_s11  ;;  %3268 = vmatpush.msrb.mxu3 %v3246_v50  ;;  %v3245_v21 = vld [vmem:[#allocation2 + $0x7a8] sm:$0xff] }
0x12bf   :  { %v3289_v50 = vld [vmem:[#allocation2 + $0x7c8] sm:$0xff] }
0x12c0   :  { %3269 = vmatpush.msrb.mxu3 %v3245_v21  ;;  %v3288_v21 = vld [vmem:[#allocation2 + $0x7c0] sm:$0xff] }
0x12c2   :  { %3270 = vmatpush.msrb.mxu3 %v3244_v22  ;;  %v3681_v22 = vld [vmem:[#allocation4 + $0x158] ss:$0 sm:$0xff] }
0x12c4   :  { %v2674_v16 = vpop.permute.xlu0 %2673  ;;  %3271 = vmatpush.msrb.mxu3 %v3243_v24 }
0x12c5   :  { %v2694_v17 = vsel %vm210_vm1, %v2377_v7, %v2674_v16  ;;  %v3240_v16 = vld [vmem:[#allocation2 + $0x780] sm:$0xff] }
0x12c6   :  { %3272 = vmatpush.msrb.mxu3 %v3242_v62 }
0x12c8   :  { %3273 = vmatpush.msrb.mxu3 %v3241_v60 }
0x12ca   :  { %3274 = vmatpush.msrb.mxu3 %v3240_v16 }
0x12cf   :  { %v2680_v26 = vpop.permute.xlu1 %2679 }
0x12d0   :  { %v2695_v63 = vsel %vm485_vm3, %v2693_v20, %v2680_v26 }
0x12d7   :  { %v2682_v1 = vpop.permute.xlu1 %2681 }
0x12d8   :  { %v2696_v33 = vsel %vm485_vm3, %v2694_v17, %v2682_v1 }
0x12e4   :  { %v2688_v12 = vpop.permute.xlu0 %2687 }
0x12e5   :  { %v2697_v19 = vsel %vm487_vm4, %v2695_v63, %v2688_v12 }
0x12e6   :  { %3632 = vmatmul.msk.f32.vlgmr.msrb.gmra.mxu1 %vm114_vm0, %v2697_v19 }
0x12ec   :  { %v2690_v51 = vpop.permute.xlu0 %2689 }
0x12ed   :  { %v2698_v53 = vsel %vm487_vm4, %v2696_v33, %v2690_v51  ;;  %v4999_v51 = vld [vmem:[#allocation4 + $0x150] ss:$0 sm:$0xff] }
0x12ff   :  { %v3083_v14 = vpop.permute.xlu2 %3082 }
0x1300   :  { %v3104_v55 = vsel %vm210_vm1, %v2785_v27, %v3083_v14 }
0x130f   :  { %v3099_v15 = vpop.permute.xlu2 %3098 }
0x1317   :  { %v3085_v35 = vpop.permute.xlu2 %3084 }
0x1318   :  { %v3105_v42 = vsel %vm210_vm1, %v2788_v4, %v3085_v35  ;;  %v3303_v35 = vld [vmem:[#allocation2 + $0x838] sm:$0xff] }
0x1319   :  { %3306 = vmatpush.msra.mxu0 %v3303_v35 }
0x1327   :  { %v3091_v32 = vpop.permute.xlu1 %3090 }
0x1328   :  { %v3106_v28 = vsel %vm485_vm3, %v3104_v55, %v3091_v32  ;;  %v4997_v55 = vld [vmem:[#allocation4 + $0x148] ss:$0 sm:$0xff] }
0x1329   :  { %v3108_v46 = vsel %vm487_vm4, %v3106_v28, %v3099_v15 }
0x132a   :  { %v3112_v36 = vrot.slane %v3108_v46, 7 }
0x132c   :  { %v3116_v45 = vsel %vm1051_vm9, %v2698_v53, %v3112_v36 }
0x132d   :  { %3633 = vmatmul.msk.f32.gmra.mxu1 %vm114_vm0, %v3116_v45  ;;  %v3302_v45 = vld [vmem:[#allocation2 + $0x830] sm:$0xff] }
0x132e   :  { %3307 = vmatpush.msra.mxu0 %v3302_v45 }
0x132f   :  { %v3093_v0 = vpop.permute.xlu1 %3092 }
0x1330   :  { %v3107_v6 = vsel %vm485_vm3, %v3105_v42, %v3093_v0  ;;  %v3101_v49 = vpop.permute.xlu0 %3100  ;;  %v3301_v42 = vld [vmem:[#allocation2 + $0x828] sm:$0xff] }
0x1331   :  { %v3109_v11 = vsel %vm487_vm4, %v3107_v6, %v3101_v49  ;;  %v3300_v49 = vld [vmem:[#allocation2 + $0x820] sm:$0xff]  ;;  %3308 = vmatpush.msra.mxu0 %v3301_v42 }
0x1332   :  { %v3113_v18 = vrot.slane %v3109_v11, 7 }
0x1333   :  { %3309 = vmatpush.msra.mxu0 %v3300_v49 }
0x1334   :  { %v3114_v43 = vsel %vm1051_vm9, %v3112_v36, %v3113_v18 }
0x1335   :  { %3634 = vmatmul.msk.f32.gmra.mxu1 %vm114_vm0, %v3114_v43  ;;  %v3299_v43 = vld [vmem:[#allocation2 + $0x818] sm:$0xff] }
0x1336   :  { %3310 = vmatpush.msra.mxu0 %v3299_v43 }
0x1363   :  { %v3152_v52 = vpop.f32.mrf.mxu1 }
0x1364   :  { %v3153_v37 = vadd.f32 %v3678_v39, %v3152_v52  ;;  %v3298_v52 = vld [vmem:[#allocation2 + $0x810] sm:$0xff] }
0x1365   :  { %3311 = vmatpush.msra.mxu0 %v3298_v52 }
0x1366   :  { %v3161_v34 = vadd.f32 %v3153_v37, %v4604_v31 }
0x1368   :  { %v3164_v58 = vsel %vm114_vm0, %v3161_v34, 0.0 }
0x1369   :  { %3165 = vadd.xlane.f32.xlu2 %v3164_v58 }
0x13aa   :  { %v3155_v9 = vpop.f32.mrf.mxu1 }
0x13ab   :  { %v3156_v57 = vadd.f32 %v3678_v39, %v3155_v9  ;;  %v3296_v9 = vld [vmem:[#allocation2 + $0x800] sm:$0xff] }
0x13ad   :  { %v3162_v59 = vadd.f32 %v3156_v57, %v4640_v3 }
0x13af   :  { %v3167_v61 = vsel %vm114_vm0, %v3162_v59, 0.0 }
0x13b0   :  { %3168 = vadd.xlane.f32.xlu1 %v3167_v61  ;;  %v3295_v61 = vld [vmem:[#allocation2 + $0x7f8] sm:$0xff] }
0x13b2   :  { %v3158_v25 = vpop.f32.mrf.mxu1 }
0x13b3   :  { %v3159_v29 = vadd.f32 %v3678_v39, %v3158_v25 }
0x13b5   :  { %v3163_v7 = vadd.f32 %v3159_v29, %v4647_v44 }
0x13b7   :  { %v3170_v30 = vsel %vm2102_vm7, %v3163_v7, 0.0 }
0x13b8   :  { %3171 = vadd.xlane.f32.xlu0 %v3170_v30 }
0x13dc   :  { %v3166_v54 = vpop.xlane.xlu2 %3165 }
0x13dd   :  { %v3173_v31 = vmul.f32 %v3166_v54, %v4106_v23 }
0x13df   :  { %v3176_v40 = vsub.f32 %v3161_v34, %v3173_v31  ;;  %v3297_v34 = vld [vmem:[#allocation2 + $0x808] sm:$0xff] }
0x13e0   :  { %3312 = vmatpush.msra.mxu0 %v3297_v34 }
0x13e1   :  { %v3179_v5 = vmul.f32 %v3176_v40, %v3176_v40 }
0x13e2   :  { %3313 = vmatpush.msra.mxu0 %v3296_v9  ;;  %v3418_v9 = vld [vmem:[#allocation2 + $0x878] sm:$0xff] }
0x13e3   :  { %v3182_v27 = vsel %vm114_vm0, %v3179_v5, 0.0  ;;  %3438 = vmatpush.msrb.mxu2 %v3418_v9 }
0x13e4   :  { %3183 = vadd.xlane.f32.xlu2 %v3182_v27  ;;  %3314 = vmatpush.msra.mxu0 %v3295_v61  ;;  %v3415_v61 = vld [vmem:[#allocation2 + $0x860] sm:$0xff] }
0x1423   :  { %v3169_v47 = vpop.xlane.xlu1 %3168 }
0x1424   :  { %v3174_v3 = vmul.f32 %v3169_v47, %v4106_v23  ;;  %v3292_v47 = vld [vmem:[#allocation2 + $0x7e0] sm:$0xff] }
0x1426   :  { %v4985_v4 = vsub.f32 %v3162_v59, %v3174_v3 }
0x1428   :  { %v3180_v48 = vmul.f32 %v4985_v4, %v4985_v4 }
0x142a   :  { %v3185_v44 = vsel %vm114_vm0, %v3180_v48, 0.0 }
0x142b   :  { %3186 = vadd.xlane.f32.xlu1 %v3185_v44  ;;  %v3172_v13 = vpop.xlane.xlu0 %3171  ;;  %v3291_v44 = vld [vmem:[#allocation2 + $0x7d8] sm:$0xff] }
0x142c   :  { %v3175_v8 = vmul.f32 %v3172_v13, %v4106_v23 }
0x142e   :  { %v4991_v2 = vsub.f32 %v3163_v7, %v3175_v8  ;;  %v3294_v7 = vld [vmem:[#allocation2 + $0x7f0] sm:$0xff] }
0x142f   :  { %3315 = vmatpush.msra.mxu0 %v3294_v7  ;;  %v3412_v7 = vld [vmem:[#allocation2 + $0x848] sm:$0xff] }
0x1430   :  { %v3181_v38 = vmul.f32 %v4991_v2, %v4991_v2 }
0x1432   :  { %v3188_v56 = vsel %vm2102_vm7, %v3181_v38, 0.0 }
0x1433   :  { %3189 = vadd.xlane.f32.xlu0 %v3188_v56 }
0x1457   :  { %v3184_v10 = vpop.xlane.xlu2 %3183 }
0x1458   :  { %v3191_v26 = vmul.f32 %v3184_v10, %v4106_v23 }
0x145a   :  { %v3194_v20 = vadd.f32 1e-05, %v3191_v26 }
0x145c   :  { %3862 = vrsqrt.f32 %v3194_v20  ;;  %vm3203_vm2 = vweird.f32 %v3194_v20 }
0x1462   :  { %v3863_v63 = vpop.eup %3862 }
0x1463   :  { %v3198_v12 = vmul.f32 %v3863_v63, %v3194_v20  ;;  %vm3204_vm1 = vweird.f32 %v3863_v63 }
0x1464   :  { %vm3205_vm3 = vmor %vm3203_vm2, %vm3204_vm1 }
0x1465   :  { %v3199_v19 = vmul.f32 %v3863_v63, %v3198_v12  ;;  %v3682_v12 = vld [vmem:[#allocation4 + $0x160] ss:$0 sm:$0xff] }
0x1467   :  { %v3200_v14 = vmul.f32 0.5, %v3199_v19 }
0x1469   :  { %v3201_v1 = vsub.f32 1.5, %v3200_v14 }
0x146b   :  { %v3202_v15 = vmul.f32 %v3863_v63, %v3201_v1 }
0x146d   :  { %v3206_v32 = vsel %vm3205_vm3, %v3863_v63, %v3202_v15 }
0x146e   :  { %v3227_v28 = vmul.f32 %v3206_v32, %v3176_v40  ;;  %v3293_v40 = vld [vmem:[#allocation2 + $0x7e8] sm:$0xff] }
0x146f   :  { %3316 = vmatpush.msra.mxu0 %v3293_v40 }
0x1470   :  { %v3232_v17 = vmul.f32 %v4997_v55, %v3227_v28 }
0x1471   :  { %3317 = vmatpush.msra.mxu0 %v3292_v47 }
0x1472   :  { %v5003_v46 = vadd.f32 %v4999_v51, %v3232_v17 }
0x1473   :  { %3318 = vmatpush.msra.mxu0 %v3291_v44 }
0x1474   :  { %3635 = vmatmul.msk.f32.vlgmr.msrb.gmra.mxu3 %vm114_vm0, %v5003_v46 }
0x1475   :  { %3319 = vmatpush.msra.mxu0 %v3290_v41 }
0x1477   :  { %3320 = vmatpush.msra.mxu0 %v3289_v50 }
0x1479   :  { %3321 = vmatpush.msra.mxu0 %v3288_v21 }
0x149e   :  { %v3187_v33 = vpop.xlane.xlu1 %3186 }
0x149f   :  { %v3192_v36 = vmul.f32 %v3187_v33, %v4106_v23 }
0x14a1   :  { %v3195_v53 = vadd.f32 1e-05, %v3192_v36 }
0x14a3   :  { %3864 = vrsqrt.f32 %v3195_v53  ;;  %vm3213_vm9 = vweird.f32 %v3195_v53 }
0x14a6   :  { %v3190_v0 = vpop.xlane.xlu0 %3189 }
0x14a7   :  { %v3193_v6 = vmul.f32 %v3190_v0, %v4106_v23 }
0x14a9   :  { %v3865_v11 = vpop.eup %3864  ;;  %v3196_v18 = vadd.f32 1e-05, %v3193_v6 }
0x14aa   :  { %v3208_v39 = vmul.f32 %v3865_v11, %v3195_v53  ;;  %vm3214_vm4 = vweird.f32 %v3865_v11 }
0x14ab   :  { %3866 = vrsqrt.f32 %v3196_v18  ;;  %vm3215_vm5 = vmor %vm3213_vm9, %vm3214_vm4  ;;  %vm3223_vm10 = vweird.f32 %v3196_v18 }
0x14ac   :  { %v3209_v37 = vmul.f32 %v3865_v11, %v3208_v39 }
0x14ae   :  { %v3210_v58 = vmul.f32 0.5, %v3209_v37 }
0x14b0   :  { %v3211_v57 = vsub.f32 1.5, %v3210_v58 }
0x14b1   :  { %v3867_v59 = vpop.eup %3866 }
0x14b2   :  { %v3212_v25 = vmul.f32 %v3865_v11, %v3211_v57  ;;  %v3218_v29 = vmul.f32 %v3867_v59, %v3196_v18  ;;  %vm3224_vm8 = vweird.f32 %v3867_v59  ;;  %v3417_v57 = vld [vmem:[#allocation2 + $0x870] sm:$0xff] }
0x14b3   :  { %vm3225_vm11 = vmor %vm3223_vm10, %vm3224_vm8  ;;  %3439 = vmatpush.msrb.mxu2 %v3417_v57 }
0x14b4   :  { %v3216_v30 = vsel %vm3215_vm5, %v3865_v11, %v3212_v25  ;;  %v3219_v54 = vmul.f32 %v3867_v59, %v3218_v29  ;;  %v3414_v25 = vld [vmem:[#allocation2 + $0x858] sm:$0xff]  ;;  %v3413_v29 = vld [vmem:[#allocation2 + $0x850] sm:$0xff] }
0x14b5   :  { %v3228_v31 = vmul.f32 %v3216_v30, %v4985_v4  ;;  %v3411_v30 = vld [vmem:[#allocation2 + $0x840] sm:$0xff] }
0x14b6   :  { %v3220_v5 = vmul.f32 0.5, %v3219_v54 }
0x14b7   :  { %v3233_v27 = vmul.f32 %v4997_v55, %v3228_v31 }
0x14b8   :  { %v3221_v3 = vsub.f32 1.5, %v3220_v5 }
0x14b9   :  { %v3238_v48 = vadd.f32 %v4999_v51, %v3233_v27 }
0x14ba   :  { %v3222_v13 = vmul.f32 %v3867_v59, %v3221_v3 }
0x14bb   :  { %3636 = vmatmul.msk.f32.gmra.mxu3 %vm114_vm0, %v3238_v48 }
0x14bc   :  { %v3226_v8 = vsel %vm3225_vm11, %v3867_v59, %v3222_v13  ;;  %v3416_v59 = vld [vmem:[#allocation2 + $0x868] sm:$0xff] }
0x14bd   :  { %v3229_v4 = vmul.f32 %v3226_v8, %v4991_v2  ;;  %3440 = vmatpush.msrb.mxu2 %v3416_v59  ;;  %v3683_v13 = vld [vmem:[#allocation4 + $0x168] ss:$0 sm:$0xff] }
0x14bf   :  { %v3234_v38 = vmul.f32 %v4997_v55, %v3229_v4  ;;  %3441 = vmatpush.msrb.mxu2 %v3415_v61  ;;  %v3684_v4 = vld [vmem:[#allocation4 + $0x170] ss:$0 sm:$0xff] }
0x14c1   :  { %v3239_v56 = vadd.f32 %v4999_v51, %v3234_v38  ;;  %3442 = vmatpush.msrb.mxu2 %v3414_v25 }
0x14c3   :  { %3637 = vmatmul.msk.f32.gmra.mxu3 %vm114_vm0, %v3239_v56  ;;  %3443 = vmatpush.msrb.mxu2 %v3413_v29 }
0x14c5   :  { %3444 = vmatpush.msrb.mxu2 %v3412_v7 }
0x14c7   :  { %3445 = vmatpush.msrb.mxu2 %v3411_v30 }
0x14f7   :  { %v3276_v24 = vpop.f32.mrf.mxu3 }
0x14f8   :  { %v3277_v62 = vadd.f32 %v3681_v22, %v3276_v24 }
0x14fa   :  { %v3285_v60 = vmax.f32 %v3277_v62, 0.0 }
0x14fc   :  { %3322 = vmatmul.f32.vlgmr.msra.gmra.mxu0 %v3285_v60 }
0x153e   :  { %v3279_v16 = vpop.f32.mrf.mxu3 }
0x153f   :  { %v3280_v10 = vadd.f32 %v3681_v22, %v3279_v16 }
0x1541   :  { %v3286_v2 = vmax.f32 %v3280_v10, 0.0 }
0x1543   :  { %3325 = vmatmul.f32.gmra.mxu0 %v3286_v2 }
0x1546   :  { %v3282_v26 = vpop.f32.mrf.mxu3 }
0x1547   :  { %v3283_v20 = vadd.f32 %v3681_v22, %v3282_v26 }
0x1549   :  { %v3287_v63 = vmax.f32 %v3283_v20, 0.0 }
0x154b   :  { %3328 = vmatmul.f32.gmra.mxu0 %v3287_v63 }
0x1579   :  { %v3323_v19 = vpop.f32.mrf.mxu0 }
0x157a   :  { %v3324_v14 = vadd.f32 %v3682_v12, %v3323_v19 }
0x157c   :  { %v3332_v1 = vadd.f32 %v3324_v14, %v5003_v46 }
0x157e   :  { %v3335_v15 = vsel %vm114_vm0, %v3332_v1, 0.0 }
0x157f   :  { %3336 = vadd.xlane.f32.xlu2 %v3335_v15 }
0x15c0   :  { %v3326_v55 = vpop.f32.mrf.mxu0 }
0x15c1   :  { %v3327_v32 = vadd.f32 %v3682_v12, %v3326_v55 }
0x15c3   :  { %v3333_v51 = vadd.f32 %v3327_v32, %v3238_v48 }
0x15c5   :  { %v3338_v28 = vsel %vm114_vm0, %v3333_v51, 0.0 }
0x15c6   :  { %3339 = vadd.xlane.f32.xlu1 %v3338_v28 }
0x15c8   :  { %v3329_v17 = vpop.f32.mrf.mxu0 }
0x15c9   :  { %v3330_v33 = vadd.f32 %v3682_v12, %v3329_v17 }
0x15cb   :  { %v3334_v36 = vadd.f32 %v3330_v33, %v3239_v56 }
0x15cd   :  { %v3341_v53 = vsel %vm2102_vm7, %v3334_v36, 0.0 }
0x15ce   :  { %3342 = vadd.xlane.f32.xlu0 %v3341_v53 }
0x15f2   :  { %v3337_v35 = vpop.xlane.xlu2 %3336 }
0x15f3   :  { %v3344_v45 = vmul.f32 %v3337_v35, %v4106_v23  ;;  %v3685_v35 = vld [vmem:[#allocation4 + $0x178] ss:$0 sm:$0xff] }
0x15f5   :  { %v3347_v42 = vsub.f32 %v3332_v1, %v3344_v45 }
0x15f7   :  { %v3350_v46 = vmul.f32 %v3347_v42, %v3347_v42 }
0x15f9   :  { %v3353_v0 = vsel %vm114_vm0, %v3350_v46, 0.0 }
0x15fa   :  { %3354 = vadd.xlane.f32.xlu2 %v3353_v0 }
0x1639   :  { %v3340_v6 = vpop.xlane.xlu1 %3339 }
0x163a   :  { %v3345_v49 = vmul.f32 %v3340_v6, %v4106_v23 }
0x163c   :  { %v5024_v11 = vsub.f32 %v3333_v51, %v3345_v49 }
0x163e   :  { %v3351_v18 = vmul.f32 %v5024_v11, %v5024_v11 }
0x1640   :  { %v3356_v43 = vsel %vm114_vm0, %v3351_v18, 0.0 }
0x1641   :  { %3357 = vadd.xlane.f32.xlu1 %v3356_v43  ;;  %v3343_v39 = vpop.xlane.xlu0 %3342 }
0x1642   :  { %v3346_v52 = vmul.f32 %v3343_v39, %v4106_v23 }
0x1644   :  { %v5030_v37 = vsub.f32 %v3334_v36, %v3346_v52 }
0x1646   :  { %v3352_v34 = vmul.f32 %v5030_v37, %v5030_v37 }
0x1648   :  { %v3359_v58 = vsel %vm2102_vm7, %v3352_v34, 0.0 }
0x1649   :  { %3360 = vadd.xlane.f32.xlu0 %v3359_v58 }
0x166d   :  { %v3355_v54 = vpop.xlane.xlu2 %3354 }
0x166e   :  { %v3362_v31 = vmul.f32 %v3355_v54, %v4106_v23 }
0x1670   :  { %v3365_v40 = vadd.f32 1e-05, %v3362_v31 }
0x1672   :  { %3868 = vrsqrt.f32 %v3365_v40  ;;  %vm3374_vm12 = vweird.f32 %v3365_v40 }
0x1678   :  { %v3869_v5 = vpop.eup %3868 }
0x1679   :  { %v3369_v27 = vmul.f32 %v3869_v5, %v3365_v40  ;;  %vm3375_vm7 = vweird.f32 %v3869_v5 }
0x167a   :  { %vm3376_vm13 = vmor %vm3374_vm12, %vm3375_vm7 }
0x167b   :  { %v3370_v47 = vmul.f32 %v3869_v5, %v3369_v27 }
0x167d   :  { %v3371_v3 = vmul.f32 0.5, %v3370_v47 }
0x167f   :  { %v3372_v48 = vsub.f32 1.5, %v3371_v3 }
0x1681   :  { %v3373_v44 = vmul.f32 %v3869_v5, %v3372_v48 }
0x1683   :  { %v3377_v8 = vsel %vm3376_vm13, %v3869_v5, %v3373_v44 }
0x1684   :  { %v3398_v38 = vmul.f32 %v3377_v8, %v3347_v42 }
0x1686   :  { %v3403_v56 = vmul.f32 %v3683_v13, %v3398_v38 }
0x1688   :  { %v3408_v41 = vadd.f32 %v3684_v4, %v3403_v56 }
0x168a   :  { %3638 = vmatmul.msk.f32.vlgmr.msrb.gmra.mxu2 %vm114_vm0, %v3408_v41 }
0x16b4   :  { %v3358_v50 = vpop.xlane.xlu1 %3357 }
0x16b5   :  { %v3363_v21 = vmul.f32 %v3358_v50, %v4106_v23 }
0x16b7   :  { %v3366_v22 = vadd.f32 1e-05, %v3363_v21 }
0x16b9   :  { %3870 = vrsqrt.f32 %v3366_v22  ;;  %vm3384_vm15 = vweird.f32 %v3366_v22 }
0x16bc   :  { %v3361_v24 = vpop.xlane.xlu0 %3360 }
0x16bd   :  { %v3364_v62 = vmul.f32 %v3361_v24, %v4106_v23 }
0x16bf   :  { %v3871_v60 = vpop.eup %3870  ;;  %v3367_v16 = vadd.f32 1e-05, %v3364_v62 }
0x16c0   :  { %v3379_v10 = vmul.f32 %v3871_v60, %v3366_v22  ;;  %vm3385_vm14 = vweird.f32 %v3871_v60 }
0x16c1   :  { %3872 = vrsqrt.f32 %v3367_v16  ;;  %vm3386_vm6 = vmor %vm3384_vm15, %vm3385_vm14  ;;  %vm3394_vm2 = vweird.f32 %v3367_v16 }
0x16c2   :  { %v3380_v2 = vmul.f32 %v3871_v60, %v3379_v10 }
0x16c4   :  { %v3381_v26 = vmul.f32 0.5, %v3380_v2 }
0x16c6   :  { %v3382_v20 = vsub.f32 1.5, %v3381_v26 }
0x16c7   :  { %v3873_v63 = vpop.eup %3872 }
0x16c8   :  { %v3383_v12 = vmul.f32 %v3871_v60, %v3382_v20  ;;  %v3389_v19 = vmul.f32 %v3873_v63, %v3367_v16  ;;  %vm3395_vm1 = vweird.f32 %v3873_v63 }
0x16c9   :  { %vm3396_vm3 = vmor %vm3394_vm2, %vm3395_vm1 }
0x16ca   :  { %v3387_v14 = vsel %vm3386_vm6, %v3871_v60, %v3383_v12  ;;  %v3390_v1 = vmul.f32 %v3873_v63, %v3389_v19 }
0x16cb   :  { %v3399_v15 = vmul.f32 %v3387_v14, %v5024_v11 }
0x16cc   :  { %v3391_v55 = vmul.f32 0.5, %v3390_v1 }
0x16cd   :  { %v3404_v32 = vmul.f32 %v3683_v13, %v3399_v15 }
0x16ce   :  { %v3392_v23 = vsub.f32 1.5, %v3391_v55 }
0x16cf   :  { %v3409_v51 = vadd.f32 %v3684_v4, %v3404_v32 }
0x16d0   :  { %v3393_v28 = vmul.f32 %v3873_v63, %v3392_v23 }
0x16d1   :  { %3639 = vmatmul.msk.f32.gmra.mxu2 %vm114_vm0, %v3409_v51 }
0x16d2   :  { %v3397_v17 = vsel %vm3396_vm3, %v3873_v63, %v3393_v28 }
0x16d3   :  { %v3400_v33 = vmul.f32 %v3397_v17, %v5030_v37 }
0x16d5   :  { %v3405_v36 = vmul.f32 %v3683_v13, %v3400_v33 }
0x16d7   :  { %v3410_v53 = vadd.f32 %v3684_v4, %v3405_v36 }
0x16d9   :  { %3640 = vmatmul.msk.f32.gmra.mxu2 %vm114_vm0, %v3410_v53 }
0x170d   :  { %v3447_v45 = vpop.f32.mrf.mxu2 }
0x170e   :  { %v3448_v42 = vadd.f32 %v3685_v35, %v3447_v45 }
0x1710   :  { %3456 = vst [vmem:[%s5056_s4] sm:$0xff] %v3448_v42 }
0x1754   :  { %v3450_v46 = vpop.f32.mrf.mxu2 }
0x1755   :  { %v3451_v0 = vadd.f32 %v3685_v35, %v3450_v46 }
0x1757   :  { %3457 = vst [vmem:[%s5056_s4 + $0x8] sm:$0xff] %v3451_v0 }
0x175c   :  { %v3453_v6 = vpop.f32.mrf.mxu2 }
0x175d   :  { %v3454_v49 = vadd.f32 %v3685_v35, %v3453_v6 }
0x175f   :  { %3458 = vst [vmem:[%s5056_s4 + $0x10] sm:$0x3] %v3454_v49 }
0x1760   :  { %3467 = vsyncpa [#allocation3], 1 }
0x1761   :  { %3468 = vsyncpa [#allocation5], 1 }

</bundles_post_ra>
